<compile_context>
chip_gen: v7x
topology: tpu7x:2x2x1
jax: 0.10.0
libtpu: 0.0.40
codegen_flags: <defaults>
</compile_context>

<pallas_src>
import jax
import jax.numpy as jnp
import numpy as np
from jax import lax
from jax.experimental import pallas as pl
from jax.experimental.pallas import tpu as pltpu

N_LAYERS = 4

# Precision policy (perf review): only the fused spectral+conv chain runs at HIGHEST;
# encoder / projection-head dots use the MXU-native default passes.
PREC_SPECTRAL = lax.Precision.HIGHEST
PREC_FAST = lax.Precision.DEFAULT


def gelu_tanh(x):
    c = 0.7978845608028654  # sqrt(2/pi)
    return 0.5 * x * (1.0 + jnp.tanh(c * (x + 0.044715 * x * x * x)))


def gelu_tanh_np(x):
    c = 0.7978845608028654
    return 0.5 * x * (1.0 + np.tanh(c * (x + 0.044715 * x ** 3)))


# ---------------------------------------------------------------------------
# Fused FNO1d forward for one batch tile (single Pallas kernel).
# Hidden state layout: (TB, S*W) with W minor (g[b, s*W + w] = h[b, spatial=s, chan=w]).
# ---------------------------------------------------------------------------
def fno1d_kernel(x_ref, a_ref, lift_ref, fc0b_ref, k_ref, encw_ref, encb_ref,
                 fc1w_ref, fc1b_ref, fc2w_ref, fc2b_ref, o_ref):
    # x_ref:    (1, TB, S*H)   flattened history inputs for this batch tile
    # a_ref:    (1, TB, A)     actions for this batch tile
    # lift_ref: (S*H, S*W)     block-diagonal fc0 (grid column folded into fc0b)
    # fc0b_ref: (1, S*W)
    # k_ref:    (L, S*W, S*W)  fused spectral + 1x1-conv operator per layer
    # encw_ref: (L, A, S*W)    action-encoder weights, columns in (S, W)-minor order
    # encb_ref: (L, 1, S*W)    encoder bias + Conv1d bias
    # fc1w_ref: (S*W, S*F1)    block-diagonal fc1
    # fc1b_ref: (1, S*F1)
    # fc2w_ref: (S*F1, S)      block-diagonal fc2
    # fc2b_ref: (1, S)
    # o_ref:    (1, TB, S)
    a = a_ref[0]                                                        # (TB, A)
    g = (jnp.dot(x_ref[0], lift_ref[...], precision=PREC_SPECTRAL,
                 preferred_element_type=jnp.float32) + fc0b_ref[...])   # (TB, S*W)

    for l in range(N_LAYERS):                                           # static, 4 iters
        acc = (jnp.dot(g, k_ref[l], precision=PREC_SPECTRAL,
                       preferred_element_type=jnp.float32)
               + jnp.dot(a, encw_ref[l], precision=PREC_FAST,
                         preferred_element_type=jnp.float32)
               + encb_ref[l])
        g = gelu_tanh(acc) if l < N_LAYERS - 1 else acc

    t = gelu_tanh(jnp.dot(g, fc1w_ref[...], precision=PREC_FAST,
                          preferred_element_type=jnp.float32) + fc1b_ref[...])  # (TB, S*F1)
    out = (jnp.dot(t, fc2w_ref[...], precision=PREC_FAST,
                   preferred_element_type=jnp.float32) + fc2b_ref[...])         # (TB, S)
    o_ref[0] = out.astype(o_ref.dtype)


# ---------------------------------------------------------------------------
# Host-side operator construction (float64, done once).
# ---------------------------------------------------------------------------
def build_operators(params, S, H, W, M):
    f64 = lambda v: np.asarray(v, dtype=np.float64)
    eye_s = np.eye(S, dtype=np.float64)
    grid = np.linspace(0.0, 1.0, S)

    # fc0 lift as a block-diagonal (S*H, S*W) operator; grid column folded into bias.
    fc0_w = f64(params["fc0_w"])                                    # (W, H+1)
    fc0_b = f64(params["fc0_b"])                                    # (W,)
    lift = np.einsum("sp,wh->shpw", eye_s, fc0_w[:, :H]).reshape(S * H, S * W)
    fc0b = (fc0_b[None, :] + grid[:, None] * fc0_w[:, H][None, :]).reshape(1, S * W)

    # Truncated forward DFT (first M rfft bins) and exact inverse-rFFT basis.
    ang = 2.0 * np.pi * np.arange(S)[:, None] * np.arange(M)[None, :] / S
    frT = np.cos(ang).T                                             # (M, S)  Re fwd DFT
    fiT = -np.sin(ang).T                                            # (M, S)  Im fwd DFT
    half = S // 2 + 1
    irT = np.zeros((S, M))
    iiT = np.zeros((S, M))
    for k in range(M):
        e = np.zeros(half, np.complex128); e[k] = 1.0
        irT[:, k] = np.fft.irfft(e, n=S)
        e = np.zeros(half, np.complex128); e[k] = 1.0j
        iiT[:, k] = np.fft.irfft(e, n=S)

    # Column permutation taking the encoder's (W, S) row-major output to (S, W)-minor.
    perm = (np.arange(W)[None, :] * S + np.arange(S)[:, None]).reshape(-1)

    k_ops, enc_ws, enc_bs = [], [], []
    for l in range(N_LAYERS):
        spec = np.asarray(params[f"spec{l}_w"])                     # (W_in, W_out, M)
        swr = np.real(spec).astype(np.float64).transpose(2, 0, 1)   # (M, i, o)
        swi = np.imag(spec).astype(np.float64).transpose(2, 0, 1)
        a1 = np.einsum("ks,kio->ksio", frT, swr) - np.einsum("ks,kio->ksio", fiT, swi)
        a2 = np.einsum("ks,kio->ksio", frT, swi) + np.einsum("ks,kio->ksio", fiT, swr)
        k_spec = (np.einsum("pk,ksio->sipo", irT, a1)
                  + np.einsum("pk,ksio->sipo", iiT, a2))
        conv_w = f64(params[f"conv{l}_w"])[:, :, 0].T               # (in, out)
        k_conv = np.einsum("sp,io->sipo", eye_s, conv_w)
        k_ops.append((k_spec + k_conv).reshape(S * W, S * W))

        enc_w = f64(params[f"enc{l}_w"])                            # (W*S, A)
        enc_b = f64(params[f"enc{l}_b"])                            # (W*S,)
        conv_b = f64(params[f"conv{l}_b"])                          # (W,)
        enc_ws.append(enc_w.T[:, perm])                             # (A, S*W)
        enc_bs.append((enc_b[perm] + np.tile(conv_b, S))[None, :])  # (1, S*W)

    # Projection head as block-diagonal flattened operators (no in-kernel reshapes).
    fc1_w = f64(params["fc1_w"]); fc1_b = f64(params["fc1_b"])      # (F1, W), (F1,)
    fc2_w = f64(params["fc2_w"]); fc2_b = f64(params["fc2_b"])      # (1, F1), (1,)
    f1 = fc1_w.shape[0]
    fc1_bd = np.einsum("sp,ji->sipj", eye_s, fc1_w).reshape(S * W, S * f1)
    fc1b_bd = np.tile(fc1_b, S)[None, :]                            # (1, S*F1)
    fc2_bd = np.einsum("sp,j->sjp", eye_s, fc2_w[0]).reshape(S * f1, S)
    fc2b_bd = np.full((1, S), fc2_b[0])                             # (1, S)

    as_f32 = lambda v: jnp.asarray(v, jnp.float32)
    return dict(
        lift=as_f32(lift), fc0b=as_f32(fc0b), k=as_f32(np.stack(k_ops)),
        enc_w=as_f32(np.stack(enc_ws)), enc_b=as_f32(np.stack(enc_bs)),
        fc1_w=as_f32(fc1_bd), fc1_b=as_f32(fc1b_bd),
        fc2_w=as_f32(fc2_bd), fc2_b=as_f32(fc2b_bd))


# ---------------------------------------------------------------------------
# Wrapper
# ---------------------------------------------------------------------------
def fno1d_forward(x, a, params, *, batch_tile=2):
    B, S, H = x.shape                  # (batch, spatial=state_dim, history)
    A = a.shape[1]
    W = params["fc0_w"].shape[0]
    M = params["spec0_w"].shape[-1]
    F1 = params["fc1_w"].shape[0]
    TB = min(batch_tile, B)
    assert B % TB == 0, "batch must be divisible by batch_tile"
    n_steps = B // TB

    ops = build_operators(params, S, H, W, M)

    # Layout plumbing only: flatten (S, H) so the lift is one matmul, and group the batch
    # into (n_steps, TB, ...) so every BlockSpec's last two dims equal the full array dims.
    x3 = x.astype(jnp.float32).reshape(n_steps, TB, S * H)
    a3 = a.astype(jnp.float32).reshape(n_steps, TB, A)

    out = pl.pallas_call(
        fno1d_kernel,
        out_shape=jax.ShapeDtypeStruct((n_steps, TB, S), jnp.float32),
        grid_spec=pltpu.PrefetchScalarGridSpec(
            num_scalar_prefetch=0,
            grid=(n_steps,),
            in_specs=[
                pl.BlockSpec((1, TB, S * H), lambda i: (i, 0, 0)),            # x tile
                pl.BlockSpec((1, TB, A), lambda i: (i, 0, 0)),                # action tile
                pl.BlockSpec((S * H, S * W), lambda i: (0, 0)),               # lift (fc0)
                pl.BlockSpec((1, S * W), lambda i: (0, 0)),                   # fc0 bias
                pl.BlockSpec((N_LAYERS, S * W, S * W), lambda i: (0, 0, 0)),  # fused K_l
                pl.BlockSpec((N_LAYERS, A, S * W), lambda i: (0, 0, 0)),      # enc weights
                pl.BlockSpec((N_LAYERS, 1, S * W), lambda i: (0, 0, 0)),      # enc bias
                pl.BlockSpec((S * W, S * F1), lambda i: (0, 0)),              # fc1 block-diag
                pl.BlockSpec((1, S * F1), lambda i: (0, 0)),                  # fc1 bias
                pl.BlockSpec((S * F1, S), lambda i: (0, 0)),                  # fc2 block-diag
                pl.BlockSpec((1, S), lambda i: (0, 0)),                       # fc2 bias
            ],
            out_specs=pl.BlockSpec((1, TB, S), lambda i: (i, 0, 0)),
        ),
        compiler_params=pltpu.CompilerParams(
            dimension_semantics=("parallel",),
            # Resident weights total ~1.6 MiB (double-buffered ~3.2 MiB): far under the
            # 64 MiB physical VMEM of v7x. If S*W is scaled up, stream one K_l per grid
            # step (layer axis) or single-buffer the constant-index-map weight specs.
            vmem_limit_bytes=32 * 1024 * 1024,
        ),
    )(x3, a3, ops["lift"], ops["fc0b"], ops["k"], ops["enc_w"], ops["enc_b"],
      ops["fc1_w"], ops["fc1_b"], ops["fc2_w"], ops["fc2_b"])
    return out.reshape(B, S, 1)


# ---------------------------------------------------------------------------
# Parameter init (mirrors nn.Linear / nn.Conv1d / SpectralConv1d_fast shapes)
# ---------------------------------------------------------------------------
def init_params(key, width, state_dim, ac_dim, history, modes):
    keys = iter(jax.random.split(key, 32))
    unif = lambda k, shape, b: jax.random.uniform(k, shape, jnp.float32, -b, b)
    p = {}
    b0 = 1.0 / np.sqrt(history + 1)
    p["fc0_w"] = unif(next(keys), (width, history + 1), b0)
    p["fc0_b"] = unif(next(keys), (width,), b0)
    scale = 1.0 / (width * width)
    bc = 1.0 / np.sqrt(width)
    be = 1.0 / np.sqrt(ac_dim)
    for l in range(N_LAYERS):
        wr = jax.random.uniform(next(keys), (width, width, modes), jnp.float32)
        wi = jax.random.uniform(next(keys), (width, width, modes), jnp.float32)
        p[f"spec{l}_w"] = (scale * (wr + 1j * wi)).astype(jnp.complex64)
        p[f"conv{l}_w"] = unif(next(keys), (width, width, 1), bc)
        p[f"conv{l}_b"] = unif(next(keys), (width,), bc)
        p[f"enc{l}_w"] = unif(next(keys), (width * state_dim, ac_dim), be)
        p[f"enc{l}_b"] = unif(next(keys), (width * state_dim,), be)
    b1 = 1.0 / np.sqrt(width)
    p["fc1_w"] = unif(next(keys), (128, width), b1)
    p["fc1_b"] = unif(next(keys), (128,), b1)
    b2 = 1.0 / np.sqrt(128)
    p["fc2_w"] = unif(next(keys), (1, 128), b2)
    p["fc2_b"] = unif(next(keys), (1,), b2)
    return p


# ---------------------------------------------------------------------------
# Host-side (numpy float64) reference mirroring FNO1d.forward
# ---------------------------------------------------------------------------
def reference_forward_np(x, a, params):
    x = np.asarray(x, np.float64)
    a = np.asarray(a, np.float64)
    g = lambda k: np.asarray(params[k], np.float64)
    B, S, H = x.shape
    W = params["fc0_w"].shape[0]
    M = params["spec0_w"].shape[-1]
    grid = np.linspace(0.0, 1.0, S)
    xg = np.concatenate([x, np.broadcast_to(grid[None, :, None], (B, S, 1))], axis=-1)
    h = xg @ g("fc0_w").T + g("fc0_b")
    h = h.transpose(0, 2, 1)                               # (B, W, S)
    for l in range(N_LAYERS):
        x_ft = np.fft.rfft(h, axis=-1)
        wspec = np.asarray(params[f"spec{l}_w"]).astype(np.complex128)
        mixed = np.einsum("bix,iox->box", x_ft[:, :, :M], wspec)
        out_ft = np.zeros((B, W, S // 2 + 1), np.complex128)
        out_ft[:, :, :M] = mixed
        x1 = np.fft.irfft(out_ft, n=S, axis=-1)
        x2 = np.einsum("oi,bis->bos", g(f"conv{l}_w")[:, :, 0], h)
        x2 = x2 + g(f"conv{l}_b")[None, :, None]
        enc = (a @ g(f"enc{l}_w").T + g(f"enc{l}_b")).reshape(B, W, S)
        h = x1 + x2 + enc
        if l < N_LAYERS - 1:
            h = gelu_tanh_np(h)
    h = h.transpose(0, 2, 1)                               # (B, S, W)
    t = gelu_tanh_np(h @ g("fc1_w").T + g("fc1_b"))
    return t @ g("fc2_w").T + g("fc2_b")                   # (B, S, 1)


if __name__ == "__main__":
    batch, width, state_dim, history, modes, ac_dim = 4, 8, 16, 4, 4, 4

    key = jax.random.PRNGKey(0)
    kx, ka, kp = jax.random.split(key, 3)
    x = jax.random.normal(kx, (batch, state_dim, history), jnp.float32)   # (B, S, history)
    a = jax.random.normal(ka, (batch, ac_dim), jnp.float32)
    params = init_params(kp, width, state_dim, ac_dim, history, modes)

    # batch_tile=2 keeps >=2 parallel grid steps (v7x megacore); on v5e/v6e use
    # batch_tile=batch for a single grid step.
    out = fno1d_forward(x, a, params, batch_tile=2)
    out = jax.block_until_ready(out)

    ref = reference_forward_np(np.asarray(x), np.asarray(a), params)
    # Tolerance relaxed vs. the float64 reference because the encoder/fc1/fc2 dots run
    # at MXU-native default precision (per the performance review).
    np.testing.assert_allclose(np.asarray(out), ref, rtol=5e-3, atol=5e-3)
    print("KERNEL_OK")
</pallas_src>

<mosaic_0001>
module attributes {stable_mosaic.version = 11 : i64} {
  func.func @fno1d_kernel(%arg0: i32, %arg1: memref<1x2x64xf32, #tpu.memory_space<vmem>>, %arg2: memref<1x2x4xf32, #tpu.memory_space<vmem>>, %arg3: memref<64x128xf32, #tpu.memory_space<vmem>>, %arg4: memref<1x128xf32, #tpu.memory_space<vmem>>, %arg5: memref<4x128x128xf32, #tpu.memory_space<vmem>>, %arg6: memref<4x4x128xf32, #tpu.memory_space<vmem>>, %arg7: memref<4x1x128xf32, #tpu.memory_space<vmem>>, %arg8: memref<128x2048xf32, #tpu.memory_space<vmem>>, %arg9: memref<1x2048xf32, #tpu.memory_space<vmem>>, %arg10: memref<2048x16xf32, #tpu.memory_space<vmem>>, %arg11: memref<1x16xf32, #tpu.memory_space<vmem>>, %arg12: memref<1x2x16xf32, #tpu.memory_space<vmem>>) attributes {dimension_semantics = [#tpu.dimension_semantics<parallel>], iteration_bounds = array<i64: 2>, scalar_prefetch = 0 : i64, scratch_operands = 0 : i64, tpu.core_type = #tpu.core_type<tc>, window_params = [{transform_indices = @transform_0, window_bounds = array<i64: 1, 2, 64>}, {transform_indices = @transform_1, window_bounds = array<i64: 1, 2, 4>}, {pipeline_mode = #tpu.pipeline_mode<synchronous>, transform_indices = @transform_2, window_bounds = array<i64: 64, 128>}, {pipeline_mode = #tpu.pipeline_mode<synchronous>, transform_indices = @transform_3, window_bounds = array<i64: 1, 128>}, {pipeline_mode = #tpu.pipeline_mode<synchronous>, transform_indices = @transform_4, window_bounds = array<i64: 4, 128, 128>}, {pipeline_mode = #tpu.pipeline_mode<synchronous>, transform_indices = @transform_5, window_bounds = array<i64: 4, 4, 128>}, {pipeline_mode = #tpu.pipeline_mode<synchronous>, transform_indices = @transform_6, window_bounds = array<i64: 4, 1, 128>}, {pipeline_mode = #tpu.pipeline_mode<synchronous>, transform_indices = @transform_7, window_bounds = array<i64: 128, 2048>}, {pipeline_mode = #tpu.pipeline_mode<synchronous>, transform_indices = @transform_8, window_bounds = array<i64: 1, 2048>}, {pipeline_mode = #tpu.pipeline_mode<synchronous>, transform_indices = @transform_9, window_bounds = array<i64: 2048, 16>}, {pipeline_mode = #tpu.pipeline_mode<synchronous>, transform_indices = @transform_10, window_bounds = array<i64: 1, 16>}, {transform_indices = @transform_11, window_bounds = array<i64: 1, 2, 16>}]} {
    %c0 = arith.constant 0 : index
    %c0_0 = arith.constant 0 : index
    %c0_1 = arith.constant 0 : index
    %0 = vector.load %arg2[%c0, %c0_0, %c0_1] : memref<1x2x4xf32, #tpu.memory_space<vmem>>, vector<1x2x4xf32>
    %1 = vector.shape_cast %0 : vector<1x2x4xf32> to vector<2x4xf32>
    %c0_2 = arith.constant 0 : index
    %c0_3 = arith.constant 0 : index
    %c0_4 = arith.constant 0 : index
    %2 = vector.load %arg1[%c0_2, %c0_3, %c0_4] : memref<1x2x64xf32, #tpu.memory_space<vmem>>, vector<1x2x64xf32>
    %3 = vector.shape_cast %2 : vector<1x2x64xf32> to vector<2x64xf32>
    %c0_5 = arith.constant 0 : index
    %c0_6 = arith.constant 0 : index
    %4 = vector.load %arg3[%c0_5, %c0_6] : memref<64x128xf32, #tpu.memory_space<vmem>>, vector<64x128xf32>
    %cst = arith.constant dense<0.000000e+00> : vector<2x128xf32>
    %5 = tpu.matmul %3, %4, %cst {dimension_numbers = #tpu.dot_dimension_numbers<[1], [0], [0], [1], [0, 0, 1, 1], [], []>, precision = #tpu.contract_precision<fp32>} : vector<2x64xf32>, vector<64x128xf32>, vector<2x128xf32> -> vector<2x128xf32>
    %c0_7 = arith.constant 0 : index
    %c0_8 = arith.constant 0 : index
    %6 = vector.load %arg4[%c0_7, %c0_8] : memref<1x128xf32, #tpu.memory_space<vmem>>, vector<1x128xf32>
    %7 = vector.broadcast %6 : vector<1x128xf32> to vector<2x128xf32>
    %8 = arith.addf %5, %7 : vector<2x128xf32>
    %c0_9 = arith.constant 0 : index
    %c0_10 = arith.constant 0 : index
    %c0_11 = arith.constant 0 : index
    %9 = vector.load %arg5[%c0_9, %c0_10, %c0_11] : memref<4x128x128xf32, #tpu.memory_space<vmem>>, vector<1x128x128xf32>
    %10 = vector.shape_cast %9 : vector<1x128x128xf32> to vector<128x128xf32>
    %cst_12 = arith.constant dense<0.000000e+00> : vector<2x128xf32>
    %11 = tpu.matmul %8, %10, %cst_12 {dimension_numbers = #tpu.dot_dimension_numbers<[1], [0], [0], [1], [0, 0, 1, 1], [], []>, precision = #tpu.contract_precision<fp32>} : vector<2x128xf32>, vector<128x128xf32>, vector<2x128xf32> -> vector<2x128xf32>
    %c0_13 = arith.constant 0 : index
    %c0_14 = arith.constant 0 : index
    %c0_15 = arith.constant 0 : index
    %12 = vector.load %arg6[%c0_13, %c0_14, %c0_15] : memref<4x4x128xf32, #tpu.memory_space<vmem>>, vector<1x4x128xf32>
    %13 = vector.shape_cast %12 : vector<1x4x128xf32> to vector<4x128xf32>
    %cst_16 = arith.constant dense<0.000000e+00> : vector<2x128xf32>
    %14 = tpu.matmul %1, %13, %cst_16 {dimension_numbers = #tpu.dot_dimension_numbers<[1], [0], [0], [1], [0, 0, 1, 1], [], []>} : vector<2x4xf32>, vector<4x128xf32>, vector<2x128xf32> -> vector<2x128xf32>
    %15 = arith.addf %11, %14 : vector<2x128xf32>
    %c0_17 = arith.constant 0 : index
    %c0_18 = arith.constant 0 : index
    %c0_19 = arith.constant 0 : index
    %16 = vector.load %arg7[%c0_17, %c0_18, %c0_19] : memref<4x1x128xf32, #tpu.memory_space<vmem>>, vector<1x1x128xf32>
    %17 = vector.shape_cast %16 : vector<1x1x128xf32> to vector<1x128xf32>
    %18 = vector.broadcast %17 : vector<1x128xf32> to vector<2x128xf32>
    %19 = arith.addf %15, %18 : vector<2x128xf32>
    %cst_20 = arith.constant 5.000000e-01 : f32
    %20 = vector.broadcast %cst_20 : f32 to vector<2x128xf32>
    %21 = arith.mulf %20, %19 : vector<2x128xf32>
    %cst_21 = arith.constant 4.471500e-02 : f32
    %22 = vector.broadcast %cst_21 : f32 to vector<2x128xf32>
    %23 = arith.mulf %22, %19 : vector<2x128xf32>
    %24 = arith.mulf %23, %19 : vector<2x128xf32>
    %25 = arith.mulf %24, %19 : vector<2x128xf32>
    %26 = arith.addf %19, %25 : vector<2x128xf32>
    %cst_22 = arith.constant 0.797884583 : f32
    %27 = vector.broadcast %cst_22 : f32 to vector<2x128xf32>
    %28 = arith.mulf %27, %26 : vector<2x128xf32>
    %29 = math.tanh %28 : vector<2x128xf32>
    %cst_23 = arith.constant 1.000000e+00 : f32
    %30 = vector.broadcast %cst_23 : f32 to vector<2x128xf32>
    %31 = arith.addf %30, %29 : vector<2x128xf32>
    %32 = arith.mulf %21, %31 : vector<2x128xf32>
    %c1 = arith.constant 1 : index
    %c0_24 = arith.constant 0 : index
    %c0_25 = arith.constant 0 : index
    %33 = vector.load %arg5[%c1, %c0_24, %c0_25] : memref<4x128x128xf32, #tpu.memory_space<vmem>>, vector<1x128x128xf32>
    %34 = vector.shape_cast %33 : vector<1x128x128xf32> to vector<128x128xf32>
    %cst_26 = arith.constant dense<0.000000e+00> : vector<2x128xf32>
    %35 = tpu.matmul %32, %34, %cst_26 {dimension_numbers = #tpu.dot_dimension_numbers<[1], [0], [0], [1], [0, 0, 1, 1], [], []>, precision = #tpu.contract_precision<fp32>} : vector<2x128xf32>, vector<128x128xf32>, vector<2x128xf32> -> vector<2x128xf32>
    %c1_27 = arith.constant 1 : index
    %c0_28 = arith.constant 0 : index
    %c0_29 = arith.constant 0 : index
    %36 = vector.load %arg6[%c1_27, %c0_28, %c0_29] : memref<4x4x128xf32, #tpu.memory_space<vmem>>, vector<1x4x128xf32>
    %37 = vector.shape_cast %36 : vector<1x4x128xf32> to vector<4x128xf32>
    %cst_30 = arith.constant dense<0.000000e+00> : vector<2x128xf32>
    %38 = tpu.matmul %1, %37, %cst_30 {dimension_numbers = #tpu.dot_dimension_numbers<[1], [0], [0], [1], [0, 0, 1, 1], [], []>} : vector<2x4xf32>, vector<4x128xf32>, vector<2x128xf32> -> vector<2x128xf32>
    %39 = arith.addf %35, %38 : vector<2x128xf32>
    %c1_31 = arith.constant 1 : index
    %c0_32 = arith.constant 0 : index
    %c0_33 = arith.constant 0 : index
    %40 = vector.load %arg7[%c1_31, %c0_32, %c0_33] : memref<4x1x128xf32, #tpu.memory_space<vmem>>, vector<1x1x128xf32>
    %41 = vector.shape_cast %40 : vector<1x1x128xf32> to vector<1x128xf32>
    %42 = vector.broadcast %41 : vector<1x128xf32> to vector<2x128xf32>
    %43 = arith.addf %39, %42 : vector<2x128xf32>
    %cst_34 = arith.constant 5.000000e-01 : f32
    %44 = vector.broadcast %cst_34 : f32 to vector<2x128xf32>
    %45 = arith.mulf %44, %43 : vector<2x128xf32>
    %cst_35 = arith.constant 4.471500e-02 : f32
    %46 = vector.broadcast %cst_35 : f32 to vector<2x128xf32>
    %47 = arith.mulf %46, %43 : vector<2x128xf32>
    %48 = arith.mulf %47, %43 : vector<2x128xf32>
    %49 = arith.mulf %48, %43 : vector<2x128xf32>
    %50 = arith.addf %43, %49 : vector<2x128xf32>
    %cst_36 = arith.constant 0.797884583 : f32
    %51 = vector.broadcast %cst_36 : f32 to vector<2x128xf32>
    %52 = arith.mulf %51, %50 : vector<2x128xf32>
    %53 = math.tanh %52 : vector<2x128xf32>
    %cst_37 = arith.constant 1.000000e+00 : f32
    %54 = vector.broadcast %cst_37 : f32 to vector<2x128xf32>
    %55 = arith.addf %54, %53 : vector<2x128xf32>
    %56 = arith.mulf %45, %55 : vector<2x128xf32>
    %c2 = arith.constant 2 : index
    %c0_38 = arith.constant 0 : index
    %c0_39 = arith.constant 0 : index
    %57 = vector.load %arg5[%c2, %c0_38, %c0_39] : memref<4x128x128xf32, #tpu.memory_space<vmem>>, vector<1x128x128xf32>
    %58 = vector.shape_cast %57 : vector<1x128x128xf32> to vector<128x128xf32>
    %cst_40 = arith.constant dense<0.000000e+00> : vector<2x128xf32>
    %59 = tpu.matmul %56, %58, %cst_40 {dimension_numbers = #tpu.dot_dimension_numbers<[1], [0], [0], [1], [0, 0, 1, 1], [], []>, precision = #tpu.contract_precision<fp32>} : vector<2x128xf32>, vector<128x128xf32>, vector<2x128xf32> -> vector<2x128xf32>
    %c2_41 = arith.constant 2 : index
    %c0_42 = arith.constant 0 : index
    %c0_43 = arith.constant 0 : index
    %60 = vector.load %arg6[%c2_41, %c0_42, %c0_43] : memref<4x4x128xf32, #tpu.memory_space<vmem>>, vector<1x4x128xf32>
    %61 = vector.shape_cast %60 : vector<1x4x128xf32> to vector<4x128xf32>
    %cst_44 = arith.constant dense<0.000000e+00> : vector<2x128xf32>
    %62 = tpu.matmul %1, %61, %cst_44 {dimension_numbers = #tpu.dot_dimension_numbers<[1], [0], [0], [1], [0, 0, 1, 1], [], []>} : vector<2x4xf32>, vector<4x128xf32>, vector<2x128xf32> -> vector<2x128xf32>
    %63 = arith.addf %59, %62 : vector<2x128xf32>
    %c2_45 = arith.constant 2 : index
    %c0_46 = arith.constant 0 : index
    %c0_47 = arith.constant 0 : index
    %64 = vector.load %arg7[%c2_45, %c0_46, %c0_47] : memref<4x1x128xf32, #tpu.memory_space<vmem>>, vector<1x1x128xf32>
    %65 = vector.shape_cast %64 : vector<1x1x128xf32> to vector<1x128xf32>
    %66 = vector.broadcast %65 : vector<1x128xf32> to vector<2x128xf32>
    %67 = arith.addf %63, %66 : vector<2x128xf32>
    %cst_48 = arith.constant 5.000000e-01 : f32
    %68 = vector.broadcast %cst_48 : f32 to vector<2x128xf32>
    %69 = arith.mulf %68, %67 : vector<2x128xf32>
    %cst_49 = arith.constant 4.471500e-02 : f32
    %70 = vector.broadcast %cst_49 : f32 to vector<2x128xf32>
    %71 = arith.mulf %70, %67 : vector<2x128xf32>
    %72 = arith.mulf %71, %67 : vector<2x128xf32>
    %73 = arith.mulf %72, %67 : vector<2x128xf32>
    %74 = arith.addf %67, %73 : vector<2x128xf32>
    %cst_50 = arith.constant 0.797884583 : f32
    %75 = vector.broadcast %cst_50 : f32 to vector<2x128xf32>
    %76 = arith.mulf %75, %74 : vector<2x128xf32>
    %77 = math.tanh %76 : vector<2x128xf32>
    %cst_51 = arith.constant 1.000000e+00 : f32
    %78 = vector.broadcast %cst_51 : f32 to vector<2x128xf32>
    %79 = arith.addf %78, %77 : vector<2x128xf32>
    %80 = arith.mulf %69, %79 : vector<2x128xf32>
    %c3 = arith.constant 3 : index
    %c0_52 = arith.constant 0 : index
    %c0_53 = arith.constant 0 : index
    %81 = vector.load %arg5[%c3, %c0_52, %c0_53] : memref<4x128x128xf32, #tpu.memory_space<vmem>>, vector<1x128x128xf32>
    %82 = vector.shape_cast %81 : vector<1x128x128xf32> to vector<128x128xf32>
    %cst_54 = arith.constant dense<0.000000e+00> : vector<2x128xf32>
    %83 = tpu.matmul %80, %82, %cst_54 {dimension_numbers = #tpu.dot_dimension_numbers<[1], [0], [0], [1], [0, 0, 1, 1], [], []>, precision = #tpu.contract_precision<fp32>} : vector<2x128xf32>, vector<128x128xf32>, vector<2x128xf32> -> vector<2x128xf32>
    %c3_55 = arith.constant 3 : index
    %c0_56 = arith.constant 0 : index
    %c0_57 = arith.constant 0 : index
    %84 = vector.load %arg6[%c3_55, %c0_56, %c0_57] : memref<4x4x128xf32, #tpu.memory_space<vmem>>, vector<1x4x128xf32>
    %85 = vector.shape_cast %84 : vector<1x4x128xf32> to vector<4x128xf32>
    %cst_58 = arith.constant dense<0.000000e+00> : vector<2x128xf32>
    %86 = tpu.matmul %1, %85, %cst_58 {dimension_numbers = #tpu.dot_dimension_numbers<[1], [0], [0], [1], [0, 0, 1, 1], [], []>} : vector<2x4xf32>, vector<4x128xf32>, vector<2x128xf32> -> vector<2x128xf32>
    %87 = arith.addf %83, %86 : vector<2x128xf32>
    %c3_59 = arith.constant 3 : index
    %c0_60 = arith.constant 0 : index
    %c0_61 = arith.constant 0 : index
    %88 = vector.load %arg7[%c3_59, %c0_60, %c0_61] : memref<4x1x128xf32, #tpu.memory_space<vmem>>, vector<1x1x128xf32>
    %89 = vector.shape_cast %88 : vector<1x1x128xf32> to vector<1x128xf32>
    %90 = vector.broadcast %89 : vector<1x128xf32> to vector<2x128xf32>
    %91 = arith.addf %87, %90 : vector<2x128xf32>
    %c0_62 = arith.constant 0 : index
    %c0_63 = arith.constant 0 : index
    %92 = vector.load %arg8[%c0_62, %c0_63] : memref<128x2048xf32, #tpu.memory_space<vmem>>, vector<128x2048xf32>
    %cst_64 = arith.constant dense<0.000000e+00> : vector<2x2048xf32>
    %93 = tpu.matmul %91, %92, %cst_64 {dimension_numbers = #tpu.dot_dimension_numbers<[1], [0], [0], [1], [0, 0, 1, 1], [], []>} : vector<2x128xf32>, vector<128x2048xf32>, vector<2x2048xf32> -> vector<2x2048xf32>
    %c0_65 = arith.constant 0 : index
    %c0_66 = arith.constant 0 : index
    %94 = vector.load %arg9[%c0_65, %c0_66] : memref<1x2048xf32, #tpu.memory_space<vmem>>, vector<1x2048xf32>
    %95 = vector.broadcast %94 : vector<1x2048xf32> to vector<2x2048xf32>
    %96 = arith.addf %93, %95 : vector<2x2048xf32>
    %cst_67 = arith.constant 5.000000e-01 : f32
    %97 = vector.broadcast %cst_67 : f32 to vector<2x2048xf32>
    %98 = arith.mulf %97, %96 : vector<2x2048xf32>
    %cst_68 = arith.constant 4.471500e-02 : f32
    %99 = vector.broadcast %cst_68 : f32 to vector<2x2048xf32>
    %100 = arith.mulf %99, %96 : vector<2x2048xf32>
    %101 = arith.mulf %100, %96 : vector<2x2048xf32>
    %102 = arith.mulf %101, %96 : vector<2x2048xf32>
    %103 = arith.addf %96, %102 : vector<2x2048xf32>
    %cst_69 = arith.constant 0.797884583 : f32
    %104 = vector.broadcast %cst_69 : f32 to vector<2x2048xf32>
    %105 = arith.mulf %104, %103 : vector<2x2048xf32>
    %106 = math.tanh %105 : vector<2x2048xf32>
    %cst_70 = arith.constant 1.000000e+00 : f32
    %107 = vector.broadcast %cst_70 : f32 to vector<2x2048xf32>
    %108 = arith.addf %107, %106 : vector<2x2048xf32>
    %109 = arith.mulf %98, %108 : vector<2x2048xf32>
    %c0_71 = arith.constant 0 : index
    %c0_72 = arith.constant 0 : index
    %110 = vector.load %arg10[%c0_71, %c0_72] : memref<2048x16xf32, #tpu.memory_space<vmem>>, vector<2048x16xf32>
    %cst_73 = arith.constant dense<0.000000e+00> : vector<2x16xf32>
    %111 = tpu.matmul %109, %110, %cst_73 {dimension_numbers = #tpu.dot_dimension_numbers<[1], [0], [0], [1], [0, 0, 1, 1], [], []>} : vector<2x2048xf32>, vector<2048x16xf32>, vector<2x16xf32> -> vector<2x16xf32>
    %c0_74 = arith.constant 0 : index
    %c0_75 = arith.constant 0 : index
    %112 = vector.load %arg11[%c0_74, %c0_75] : memref<1x16xf32, #tpu.memory_space<vmem>>, vector<1x16xf32>
    %113 = vector.broadcast %112 : vector<1x16xf32> to vector<2x16xf32>
    %114 = arith.addf %111, %113 : vector<2x16xf32>
    %c0_76 = arith.constant 0 : index
    %c0_77 = arith.constant 0 : index
    %c0_78 = arith.constant 0 : index
    %115 = vector.load %arg12[%c0_76, %c0_77, %c0_78] : memref<1x2x16xf32, #tpu.memory_space<vmem>>, vector<1x2x16xf32>
    %116 = vector.shape_cast %115 : vector<1x2x16xf32> to vector<2x16xf32>
    %117 = vector.shape_cast %114 : vector<2x16xf32> to vector<1x2x16xf32>
    tpu.vector_store %arg12[%c0_76, %c0_77, %c0_78], %117 {strides = array<i32>} : memref<1x2x16xf32, #tpu.memory_space<vmem>>, vector<1x2x16xf32>,
    return
  }
  func.func @transform_0(%arg0: i32) -> (i32, i32, i32) {
    %c0_i32 = arith.constant 0 : i32
    %c0_i32_0 = arith.constant 0 : i32
    %c0_i32_1 = arith.constant 0 : i32
    return %arg0, %c0_i32, %c0_i32_0 : i32, i32, i32
  }
  func.func @transform_1(%arg0: i32) -> (i32, i32, i32) {
    %c0_i32 = arith.constant 0 : i32
    %c0_i32_0 = arith.constant 0 : i32
    %c0_i32_1 = arith.constant 0 : i32
    return %arg0, %c0_i32, %c0_i32_0 : i32, i32, i32
  }
  func.func @transform_2(%arg0: i32) -> (i32, i32) {
    %c0_i32 = arith.constant 0 : i32
    %c0_i32_0 = arith.constant 0 : i32
    %c0_i32_1 = arith.constant 0 : i32
    return %c0_i32, %c0_i32_0 : i32, i32
  }
  func.func @transform_3(%arg0: i32) -> (i32, i32) {
    %c0_i32 = arith.constant 0 : i32
    %c0_i32_0 = arith.constant 0 : i32
    %c0_i32_1 = arith.constant 0 : i32
    return %c0_i32, %c0_i32_0 : i32, i32
  }
  func.func @transform_4(%arg0: i32) -> (i32, i32, i32) {
    %c0_i32 = arith.constant 0 : i32
    %c0_i32_0 = arith.constant 0 : i32
    %c0_i32_1 = arith.constant 0 : i32
    %c0_i32_2 = arith.constant 0 : i32
    return %c0_i32, %c0_i32_0, %c0_i32_1 : i32, i32, i32
  }
  func.func @transform_5(%arg0: i32) -> (i32, i32, i32) {
    %c0_i32 = arith.constant 0 : i32
    %c0_i32_0 = arith.constant 0 : i32
    %c0_i32_1 = arith.constant 0 : i32
    %c0_i32_2 = arith.constant 0 : i32
    return %c0_i32, %c0_i32_0, %c0_i32_1 : i32, i32, i32
  }
  func.func @transform_6(%arg0: i32) -> (i32, i32, i32) {
    %c0_i32 = arith.constant 0 : i32
    %c0_i32_0 = arith.constant 0 : i32
    %c0_i32_1 = arith.constant 0 : i32
    %c0_i32_2 = arith.constant 0 : i32
    return %c0_i32, %c0_i32_0, %c0_i32_1 : i32, i32, i32
  }
  func.func @transform_7(%arg0: i32) -> (i32, i32) {
    %c0_i32 = arith.constant 0 : i32
    %c0_i32_0 = arith.constant 0 : i32
    %c0_i32_1 = arith.constant 0 : i32
    return %c0_i32, %c0_i32_0 : i32, i32
  }
  func.func @transform_8(%arg0: i32) -> (i32, i32) {
    %c0_i32 = arith.constant 0 : i32
    %c0_i32_0 = arith.constant 0 : i32
    %c0_i32_1 = arith.constant 0 : i32
    return %c0_i32, %c0_i32_0 : i32, i32
  }
  func.func @transform_9(%arg0: i32) -> (i32, i32) {
    %c0_i32 = arith.constant 0 : i32
    %c0_i32_0 = arith.constant 0 : i32
    %c0_i32_1 = arith.constant 0 : i32
    return %c0_i32, %c0_i32_0 : i32, i32
  }
  func.func @transform_10(%arg0: i32) -> (i32, i32) {
    %c0_i32 = arith.constant 0 : i32
    %c0_i32_0 = arith.constant 0 : i32
    %c0_i32_1 = arith.constant 0 : i32
    return %c0_i32, %c0_i32_0 : i32, i32
  }
  func.func @transform_11(%arg0: i32) -> (i32, i32, i32) {
    %c0_i32 = arith.constant 0 : i32
    %c0_i32_0 = arith.constant 0 : i32
    %c0_i32_1 = arith.constant 0 : i32
    return %arg0, %c0_i32, %c0_i32_0 : i32, i32, i32
  }
}

</mosaic_0001>

<bundles_post_ra>
// kernel: tpu_custom_call.1
= control target key start
LH: loop header
LB: loop body
LE: loop exit
PB: predicated region body
PF: predicated region fallthrough
CT: control target
= control target key end

     0   :  { %s12524_s0 = inlined_call_operand.vmem [shape: f32[2,2,64], index: 0, kind: input, shape index: {}]   ;;  %s12525_s1 = inlined_call_operand.vmem [shape: f32[2,2,4], index: 1, kind: input, shape index: {}]   ;;  %s12526_s2 = inlined_call_operand.vmem [shape: f32[64,128], index: 2, kind: input, shape index: {}]   ;;  %s12527_s3 = inlined_call_operand.vmem [shape: f32[1,128], index: 3, kind: input, shape index: {}]   ;;  %s12528_s4 = inlined_call_operand.hbm [shape: f32[4,128,128], index: 4, kind: input, shape index: {}]   ;;  %s12529_s5 = inlined_call_operand.vmem [shape: f32[4,4,128], index: 5, kind: input, shape index: {}]   ;;  %s12530_s6 = inlined_call_operand.vmem [shape: f32[4,1,128], index: 6, kind: input, shape index: {}]   ;;  %s12531_s7 = inlined_call_operand.vmem [shape: f32[128,2048], index: 7, kind: input, shape index: {}]   ;;  %s12532_s8 = inlined_call_operand.vmem [shape: f32[1,2048], index: 8, kind: input, shape index: {}]   ;;  %s12533_s9 = inlined_call_operand.vmem [shape: f32[2048,16], index: 9, kind: input, shape index: {}]   ;;  %s12534_s10 = inlined_call_operand.vmem [shape: f32[1,16], index: 10, kind: input, shape index: {}]   ;;  %s12535_s11 = inlined_call_operand.hbm [shape: f32[2,2,16], index: 11, kind: output, shape index: {}]  }
   0x1   :  { %12561 = sst [smem:[#allocation9_spill]] %s12528_s4 }
   0x2   :  { %16 = vsyncpa [#allocation3], 0 }
   0x3   :  { %17 = vsyncpa [#allocation4], 0 }
   0x4   :  { %19 = vsyncpa [#allocation4 + $0x1], 0  ;;  %s9128_s17 = smov 0   ;;  %s9130_s18 = smov 0  }
   0x5   :  { %s9132_s19 = smov 0   ;;  %s9134_s20 = smov 0  }
   0x6 LB: > { %s9149_s21 = sadd.s32 4294967295, %s9059_s20   ;;  %s5943_s22 = sadd.s32 4294967294, %s9059_s20   ;;  %s9059_s20 = sphi %s9134_s20, %s12599_s20   ;;  %s9055_s19 = sphi %s9132_s19, %s12598_s19   ;;  %s9051_s18 = sphi %s9130_s18, %s12597_s18   ;;  %s9047_s17 = sphi %s9128_s17, %s12596_s17  }
   0x7   : > { %s9153_s23 = sadd.s32 1, %s9059_s20   ;;  %s273_s24 = sadd.s32 1, %s9055_s19 }
   0x8   : > { %s270_s25 = ssub.s32 %s9059_s20, %s9153_s23  ;;  %p283_p0 = scmp.ne.s32.totalorder %s9055_s19, %s9051_s18 }
   0x9   : > { %p271_p1 = scmp.eq.s32.totalorder %s270_s25, 0  ;;  %p284_p2 = scmp.eq.s32.totalorder %s9149_s21, 1 }
   0xa   : > { %p289_p3 = scmp.ne.s32.totalorder %s9051_s18, %s9047_s17  ;;  %p290_p4 = scmp.eq.s32.totalorder %s5943_s22, 1 }
   0xb   : > { %s9164_s26 = scalar_select %p271_p1, %s9055_s19, %s273_s24  }
   0xc   : > { %p9166_p5 = por %p284_p2, %p283_p0  ;;  %p9170_p6 = por %p290_p4, %p289_p3 }
   0xd   : > { %12562 = sst [smem:[#allocation8_spill]] %s9164_s26  ;;  %p5944_p7 = scmp.ge.s32.totalorder %s9059_s20, 1 }
   0xe   : > { %s12563_s27 = scalar_select %p9166_p5, 1, 0 }
   0xf   : > { %s12564_s28 = scalar_select %p9170_p6, 1, 0 }
  0x10   : > { %p297_p8 = scmp.lt.s32.totalorder %s9059_s20, 3  ;;  %p12536_p9 = scmp.eq.s32.totalorder %s9149_s21, 0 }
  0x11   : > { %s9061_s30 = smov [#allocation2]   ;;  %s12567_s4 = sld [smem:[#allocation9_spill]] }
  0x12   : > { %p9177_p10 = pnand %p5944_p7, %p297_p8  ;;  %s315_s12 = sshll.u32 %s9061_s30, 4  ;;  %s316_s12 = int_to_ptr.vmem [resolvable:$true] %s315_s12 }
  0x14   : > { %s12565_s29 = scalar_select %p9177_p10, 1, 0 }
  0x15   : > { %p8877_p11 = pneg %p9177_p10 }
  0x17   : > { %p9185_p12 = pnand %p12536_p9, %p8877_p11  ;;  %s8965_s16 = scalar_lea.hbm %s12567_s4, 8192 }
  0x18   : > { %p8966_p13 = scmp.ne.s32.totalorder %s12567_s4, %s8965_s16  ;;  %p8972_p3 = scmp.lt.u32.totalorder %s8965_s16, %s12567_s4 }
  0x19   : > { %p8967_p0 = pneg %p9185_p12 }
  0x1b   : > { %p8968_p1 = pnand %p8967_p0, %p8966_p13 }
  0x1d   : > { %p8969_p2 = pneg %p8968_p1 }
  0x1f   : > { %p8974_p4 = pnand %p8972_p3, %p8969_p2 }
  0x21   : > { %8977 = shalt.err (!%p8974_p4)
}
  0x22   : > { %s8978_s26 = scalar_lea.vmem %s316_s12, 8192  ;;  %p8986_p9 = scmp.lt.s32.totalorder %s316_s12, %s316_s12 }
  0x23   : > { %p8979_p7 = scmp.ne.s32.totalorder %s316_s12, %s8978_s26  ;;  %p8987_p6 = scmp.lt.s32.totalorder %s8978_s26, %s8978_s26 }
  0x25   : > { %p8981_p8 = pnand %p8979_p7, %p8967_p0  ;;  %p8988_p5 = por %p8987_p6, %p8986_p9 }
  0x27   : > { %p8982_p11 = pneg %p8981_p8 }
  0x29   : > { %p8989_p10 = pnand %p8988_p5, %p8982_p11 }
  0x2b   : > { %8992 = shalt.err (!%p8989_p10)
}
  0x2c   : > { %s9062_s14 = smov 128   ;;  %s9063_s15 = smov 8  }
  0x2d   : > { %8880 = dma.hbm_to_vmem [thread:$0]  (!%p9185_p12), %s12567_s4, 8192, %s316_s12, [#allocation3], %s9062_s14, %s9062_s14, %s9063_s15  }
  0x2e   : > { %p12568_p13 = scmp.ne.s32.totalorder %s12565_s29, 0 }
  0x2f   : > { %p12569_p1 = scmp.eq.s32.totalorder (!%p12568_p13), %s9149_s21, 0 }
  0x30   : > { %363 = sbr.rel (%p12568_p13) target bundleno = 2215 (0x8a7), region = 64 }
  0x37   : > { %9038 = dma.done.wait (%p12569_p1), [#allocation3], 8192   ;;  %p12570_p0 = pmov %p12569_p1 }
  0x38   : > { %p406_p5 = scmp.lt.s32.totalorder %s9149_s21, 1  ;;  %v9064_v0 = vmov 0.0|0.0   ;;  %vm9065_vm0 = vmmov 0   ;;  %v9066_v1 = vmov 0.0   ;;  %v416_v2 = vld [vmem:[%s12526_s2] sm:$0xff]  ;;  %v417_v3 = vld [vmem:[%s12526_s2 + $0x8] sm:$0xff] }
  0x39   : > { %9040 = vsyncadd (%p12570_p0), [#allocation3], 4294959104  ;;  %7700 = vmatprep.subr.bf16.mxu0 %v9064_v0  ;;  %6742 = vmatprep.mubr.msk.f32.mxu0 %vm9065_vm0, %v9066_v1  ;;  %v418_v4 = vld [vmem:[%s12526_s2 + $0x10] sm:$0xff]  ;;  %vm993_vm1 = vcmask 1043456   ;;  %v436_v5 = vand.u32 4294901760, %v416_v2  ;;  %v439_v6 = vand.u32 4294901760, %v417_v3 }
  0x3a   : > { %s407_s26 = scalar_select %p406_p5, %s9149_s21, 1  ;;  %6840 = vmatprep.subr.mxu1 %v9066_v1  ;;  %6842 = vmatprep.mubr.msk.f32.mxu1 %vm9065_vm0, %v9066_v1  ;;  %v419_v7 = vld [vmem:[%s12526_s2 + $0x18] sm:$0xff]  ;;  %v442_v8 = vand.u32 4294901760, %v418_v4  ;;  %v420_v9 = vld [vmem:[%s12526_s2 + $0x20] sm:$0xff]  ;;  %v421_v10 = vld [vmem:[%s12526_s2 + $0x28] sm:$0xff]  ;;  %vm431_vm2 = vcmask 523264  }
  0x3b   : > { %v445_v11 = vand.u32 4294901760, %v419_v7  ;;  %v448_v12 = vand.u32 4294901760, %v420_v9  ;;  %v422_v13 = vld [vmem:[%s12526_s2 + $0x30] sm:$0xff]  ;;  %vm989_vm3 = vcmask 31744   ;;  %v9248_v14 = vpack.c.bf16 %v439_v6, %v436_v5  ;;  %v988_v19 = vld [vmem:[%s12529_s5] sm:$0xf] }
  0x3c   : > { %s5950_s29 = sshll.u32 %s407_s26, 1  ;;  %v9250_v15 = vsub.f32 %v416_v2, %v436_v5  ;;  %v9252_v16 = vsub.f32 %v417_v3, %v439_v6  ;;  %v9254_v17 = vsub.f32 %v418_v4, %v442_v8  ;;  %v451_v21 = vand.u32 4294901760, %v421_v10  ;;  %6841 = vmatpush3.msk.msra.mxu1 %vm993_vm1, %v988_v19  ;;  %v423_v27 = vld [vmem:[%s12526_s2 + $0x38] sm:$0xff]  ;;  %v972_v54 = vld [vmem:[#allocation2] sm:$0xff]  ;;  %v973_v55 = vld [vmem:[#allocation2 + $0x8] sm:$0xff]  ;;  %s403_s25 = sand.u32 1, %s9051_s18  }
  0x3d   : > { %s409_s24 = scalar_lea.vmem %s12524_s0, %s5950_s29  ;;  %s9243_s15 = scalar_lea.vmem %s12525_s1, %s5950_s29  ;;  %v9259_v20 = vsub.f32 %v419_v7, %v445_v11  ;;  %7702 = vmatpush3.bf16.msra.mxu0 %v9248_v14  ;;  %v9266_v23 = vpack.c.bf16 %v445_v11, %v442_v8  ;;  %v9268_v24 = vsub.f32 %v420_v9, %v448_v12  ;;  %v454_v25 = vand.u32 4294901760, %v422_v13  ;;  %7772 = vmatprep.subr.bf16.mxu1 %v9064_v0  ;;  %v974_v56 = vld [vmem:[#allocation2 + $0x10] sm:$0xff]  ;;  %v975_v59 = vld [vmem:[#allocation2 + $0x18] sm:$0xff]  ;;  %v976_v60 = vld [vmem:[#allocation2 + $0x20] sm:$0xff] }
  0x3e   : > { %v415_v18 = vld [vmem:[%s409_s24] sm:$0x3]  ;;  %7703 = vmatprep.subr.bf16.mxu0 %v9064_v0  ;;  %v521_v29 = vand.u32 4294901760, %v9250_v15  ;;  %v528_v30 = vand.u32 4294901760, %v9252_v16  ;;  %v535_v31 = vand.u32 4294901760, %v9254_v17  ;;  %v9283_v32 = vsub.f32 %v421_v10, %v451_v21  ;;  %v977_v61 = vld [vmem:[#allocation2 + $0x28] sm:$0xff] }
  0x3f   : > { %v9263_v22 = vld [vmem:[%s9243_s15] sm:$0x3]  ;;  %v433_v26 = vsel %vm431_vm2, %v415_v18, 0  ;;  %v9285_v33 = vsub.f32 %v422_v13, %v454_v25  ;;  %v542_v34 = vand.u32 4294901760, %v9259_v20  ;;  %v9290_v35 = vpack.c.bf16 %v451_v21, %v448_v12  ;;  %v978_v4 = vld [vmem:[#allocation2 + $0x30] sm:$0xff]  ;;  %v979_v13 = vld [vmem:[#allocation2 + $0x38] sm:$0xff] }
  0x40   : > { %6843 = vmatmul.mubr.msk.f32.vlgmr.msra.gmra.mrb[0].mxu1 %vm989_vm3, %v9263_v22  ;;  %v9277_v28 = vand.u32 4294901760, %v433_v26  ;;  %v522_v37 = vsub.f32 %v9250_v15, %v521_v29  ;;  %v529_v38 = vsub.f32 %v9252_v16, %v528_v30  ;;  %v457_v39 = vand.u32 4294901760, %v423_v27  ;;  %v980_v18 = vld [vmem:[#allocation2 + $0x40] sm:$0xff]  ;;  %s5949_s30 = sshll.u32 %s403_s25, 1  ;;  %s5973_s14 = sshll.u32 %s9149_s21, 5 }
  0x41   : > { %6877 = vmatprep.mubr.msk.f32.mxu1 %vm9065_vm0, %v9066_v1  ;;  %7705 = vmatpush3.bf16.msra.mxu0 %v9266_v23  ;;  %v536_v40 = vsub.f32 %v9254_v17, %v535_v31  ;;  %v543_v41 = vsub.f32 %v9259_v20, %v542_v34  ;;  %v549_v42 = vand.u32 4294901760, %v9268_v24  ;;  %v556_v44 = vand.u32 4294901760, %v9283_v32  ;;  %s405_s22 = scalar_lea.vmem [#allocation5], %s5949_s30  ;;  %s12482_s26 = scalar_lea.hbm %s12535_s11, %s5973_s14 }
  0x42   : > { %v9293_v36 = vsub.f32 %v433_v26, %v9277_v28  ;;  %7706 = vmatprep.subr.bf16.mxu0 %v9064_v0  ;;  %v563_v45 = vand.u32 4294901760, %v9285_v33  ;;  %v9313_v46 = vsub.f32 %v423_v27, %v457_v39  ;;  %v523_v48 = vand.u32 4294901760, %v522_v37  ;;  %v981_v27 = vld [vmem:[#allocation2 + $0x48] sm:$0xff]  ;;  %v982_v37 = vld [vmem:[#allocation2 + $0x50] sm:$0xff]  ;;  %s5860_s4 = sshll.u32 %s405_s22, 4  ;;  %s5847_s24 = scalar_lea.sflag [#allocation4], %s403_s25  ;;  %s12484_s4 = int_to_ptr.vmem [resolvable:$true] %s5860_s4 }
  0x43   : > { %v530_v49 = vand.u32 4294901760, %v529_v38  ;;  %v9319_v50 = vpack.c.bf16 %v457_v39, %v454_v25  ;;  %v537_v51 = vand.u32 4294901760, %v536_v40  ;;  %v544_v52 = vand.u32 4294901760, %v543_v41  ;;  %v983_v38 = vld [vmem:[#allocation2 + $0x58] sm:$0xff]  ;;  %s8993_s12 = scalar_lea.vmem %s12484_s4, 32  ;;  %p12593_p9 = scmp.ne.s32.totalorder %s12563_s27, 0 }
  0x44   : > { %v510_v43 = vand.u32 4294901760, %v9293_v36  ;;  %v550_v53 = vsub.f32 %v9268_v24, %v549_v42  ;;  %v557_v57 = vsub.f32 %v9283_v32, %v556_v44  ;;  %v564_v58 = vsub.f32 %v9285_v33, %v563_v45  ;;  %p8994_p6 = scmp.ne.s32.totalorder %s12484_s4, %s8993_s12  ;;  %s9067_s21 = smov [#allocation5]  }
  0x45   : > { %7708 = vmatpush3.bf16.msra.mxu0 %v9290_v35  ;;  %v7713_v63 = vpack.c.bf16 %v530_v49, %v523_v48  ;;  %v570_v2 = vand.u32 4294901760, %v9313_v46  ;;  %v1068_v3 = vand.u32 4294901760, %v972_v54  ;;  %v7716_v5 = vpack.c.bf16 %v544_v52, %v537_v51  ;;  %s8997_s13 = sshll.u32 %s9067_s21, 4  ;;  %s8998_s13 = int_to_ptr.vmem [resolvable:$false] %s8997_s13 }
  0x46   : > { %v511_v47 = vsub.f32 %v9293_v36, %v510_v43  ;;  %7709 = vmatprep.subr.bf16.mxu0 %v9064_v0  ;;  %v551_v6 = vand.u32 4294901760, %v550_v53  ;;  %v1071_v7 = vand.u32 4294901760, %v973_v55  ;;  %v1074_v8 = vand.u32 4294901760, %v974_v56  ;;  %p8995_p10 = pnand %p8994_p6, %p12593_p9  ;;  %s8999_s16 = scalar_lea.vmem %s8998_s13, 64 }
  0x47   : > { %v9334_v9 = vsub.f32 %v972_v54, %v1068_v3  ;;  %v1077_v10 = vand.u32 4294901760, %v975_v59  ;;  %v1080_v11 = vand.u32 4294901760, %v976_v60  ;;  %v1083_v12 = vand.u32 4294901760, %v977_v61  ;;  %p9000_p2 = scmp.lt.s32.totalorder %s12484_s4, %s8998_s13  ;;  %p9001_p3 = scmp.lt.s32.totalorder %s8999_s16, %s8993_s12 }
  0x48   : > { %v512_v62 = vand.u32 4294901760, %v511_v47  ;;  %v558_v19 = vand.u32 4294901760, %v557_v57  ;;  %v9336_v21 = vsub.f32 %v973_v55, %v1071_v7  ;;  %v9338_v25 = vsub.f32 %v974_v56, %v1074_v8  ;;  %p8996_p12 = pneg %p8995_p10 }
  0x49   : > { %7711 = vmatpush3.bf16.msra.mxu0 %v9319_v50  ;;  %v1086_v26 = vand.u32 4294901760, %v978_v4  ;;  %v9340_v39 = vpack.c.bf16 %v1071_v7, %v1068_v3  ;;  %v9342_v40 = vsub.f32 %v975_v59, %v1077_v10  ;;  %v9344_v41 = vsub.f32 %v976_v60, %v1080_v11  ;;  %p9002_p4 = por %p9001_p3, %p9000_p2 }
  0x4a   : > { %7712 = vmatprep.subr.bf16.mxu0 %v9064_v0  ;;  %v9346_v47 = vsub.f32 %v977_v61, %v1083_v12  ;;  %v571_v48 = vsub.f32 %v9313_v46, %v570_v2  ;;  %v1089_v49 = vand.u32 4294901760, %v979_v13  ;;  %v1092_v52 = vand.u32 4294901760, %v980_v18 }
  0x4b   : > { %v9353_v51 = vsub.f32 %v978_v4, %v1086_v26  ;;  %7774 = vmatpush3.bf16.msra.mxu1 %v9340_v39  ;;  %v1095_v53 = vand.u32 4294901760, %v981_v27  ;;  %v1098_v54 = vand.u32 4294901760, %v982_v37  ;;  %v1101_v55 = vand.u32 4294901760, %v983_v38  ;;  %p9003_p7 = pnand %p9002_p4, %p8996_p12 }
  0x4c   : > { %6743 = vmatmul.mubr.f32.vlgmr.msra.gmra.mrb[0].mxu0 %v512_v62  ;;  %7775 = vmatprep.subr.bf16.mxu1 %v9064_v0  ;;  %v9358_v56 = vsub.f32 %v979_v13, %v1089_v49  ;;  %v9360_v57 = vsub.f32 %v980_v18, %v1092_v52  ;;  %v9362_v59 = vpack.c.bf16 %v1077_v10, %v1074_v8  ;;  %v565_v3 = vand.u32 4294901760, %v564_v58 }
  0x4d   : > { %7714 = vmatpush3.bf16.msra.mxu0 %v7713_v63  ;;  %6761 = vmatprep.mubr.msk.f32.mxu0 %vm9065_vm0, %v9066_v1  ;;  %v9364_v60 = vsub.f32 %v981_v27, %v1095_v53  ;;  %v9366_v61 = vsub.f32 %v982_v37, %v1098_v54  ;;  %v9368_v62 = vsub.f32 %v983_v38, %v1101_v55  ;;  %v572_v4 = vand.u32 4294901760, %v571_v48 }
  0x4e   : > { %7715 = vmatprep.subr.bf16.mxu0 %v9064_v0  ;;  %v7719_v63 = vpack.c.bf16 %v558_v19, %v551_v6  ;;  %v9373_v7 = vpack.c.bf16 %v1083_v12, %v1080_v11  ;;  %v7725_v58 = vpack.c.bf16 %v9252_v16, %v9250_v15  ;;  %v9386_v6 = vpack.c.bf16 %v1095_v53, %v1092_v52 }
  0x4f   : > { %7777 = vmatpush3.bf16.msra.mxu1 %v9362_v59  ;;  %v7722_v8 = vpack.c.bf16 %v572_v4, %v565_v3  ;;  %v7728_v10 = vpack.c.bf16 %v9259_v20, %v9254_v17  ;;  %v9395_v11 = vpack.c.bf16 %v1101_v55, %v1098_v54  ;;  %v7731_v12 = vpack.c.bf16 %v9283_v32, %v9268_v24  ;;  %v985_v17 = vld [vmem:[#allocation2 + $0x68] sm:$0xff] }
  0x50   : > { %7778 = vmatprep.subr.bf16.mxu1 %v9064_v0  ;;  %v7734_v13 = vpack.c.bf16 %v9313_v46, %v9285_v33  ;;  %v7749_v18 = vpack.c.bf16 %v528_v30, %v521_v29  ;;  %v7752_v19 = vpack.c.bf16 %v542_v34, %v535_v31  ;;  %v7755_v15 = vpack.c.bf16 %v556_v44, %v549_v42  ;;  %v987_v29 = vld [vmem:[#allocation2 + $0x78] sm:$0xff] }
  0x51   : > { %7717 = vmatpush3.bf16.msra.mxu0 %v7716_v5  ;;  %v9378_v5 = vpack.c.bf16 %v1089_v49, %v1086_v26  ;;  %v7758_v16 = vpack.c.bf16 %v570_v2, %v563_v45  ;;  %v1113_v31 = vand.u32 4294901760, %v987_v29  ;;  %v1161_v33 = vand.u32 4294901760, %v9334_v9 }
  0x52   : > { %7718 = vmatprep.subr.bf16.mxu0 %v9064_v0  ;;  %v1168_v34 = vand.u32 4294901760, %v9336_v21  ;;  %v1175_v2 = vand.u32 4294901760, %v9338_v25  ;;  %v1182_v26 = vand.u32 4294901760, %v9342_v40  ;;  %v1189_v52 = vand.u32 4294901760, %v9344_v41 }
  0x53   : > { %7780 = vmatpush3.bf16.msra.mxu1 %v9373_v7  ;;  %v9493_v45 = vsub.f32 %v987_v29, %v1113_v31  ;;  %v1196_v53 = vand.u32 4294901760, %v9346_v47  ;;  %v1231_v29 = vand.u32 4294901760, %v9366_v61  ;;  %vm5844_vm4 = vcmask 123904  }
  0x54   : > { %7781 = vmatprep.subr.bf16.mxu1 %v9064_v0  ;;  %v1176_v37 = vsub.f32 %v9338_v25, %v1175_v2  ;;  %v1183_v38 = vsub.f32 %v9342_v40, %v1182_v26  ;;  %v1190_v55 = vsub.f32 %v9344_v41, %v1189_v52 }
  0x55   : > { %7720 = vmatpush3.bf16.msra.mxu0 %v7719_v63  ;;  %v1197_v63 = vsub.f32 %v9346_v47, %v1196_v53 }
  0x56   : > { %7721 = vmatprep.subr.bf16.mxu0 %v9064_v0  ;;  %v1177_v48 = vand.u32 4294901760, %v1176_v37  ;;  %v1184_v49 = vand.u32 4294901760, %v1183_v38  ;;  %v1191_v3 = vand.u32 4294901760, %v1190_v55 }
  0x57   : > { %7783 = vmatpush3.bf16.msra.mxu1 %v9378_v5  ;;  %v1198_v4 = vand.u32 4294901760, %v1197_v63 }
  0x58   : > { %7784 = vmatprep.subr.bf16.mxu1 %v9064_v0  ;;  %v9507_v54 = vpack.c.bf16 %v1184_v49, %v1177_v48 }
  0x59   : > { %7723 = vmatpush3.bf16.msra.mxu0 %v7722_v8  ;;  %v1203_v8 = vand.u32 4294901760, %v9353_v51 }
  0x5a   : > { %7724 = vmatprep.subr.bf16.mxu0 %v9064_v0 }
  0x5b   : > { %7786 = vmatpush3.bf16.msra.mxu1 %v9386_v6 }
  0x5c   : > { %6762 = vmatmul.mubr.f32.vlgmr.msra.gmra.mrb[0].mxu0 %v9277_v28  ;;  %7787 = vmatprep.subr.bf16.mxu1 %v9064_v0 }
  0x5d   : > { %7726 = vmatpush3.bf16.msra.mxu0 %v7725_v58  ;;  %6780 = vmatprep.mubr.msk.f32.mxu0 %vm9065_vm0, %v9066_v1  ;;  %v1210_v58 = vand.u32 4294901760, %v9358_v56 }
  0x5e   : > { %7727 = vmatprep.subr.bf16.mxu0 %v9064_v0 }
  0x5f   : > { %7789 = vmatpush3.bf16.msra.mxu1 %v9395_v11 }
  0x60   : > { %7790 = vmatprep.subr.bf16.mxu1 %v9064_v0 }
  0x61   : > { %7729 = vmatpush3.bf16.msra.mxu0 %v7728_v10  ;;  %v9517_v10 = vpack.c.bf16 %v1198_v4, %v1191_v3 }
  0x62   : > { %7730 = vmatprep.subr.bf16.mxu0 %v9064_v0 }
  0x65   : > { %7732 = vmatpush3.bf16.msra.mxu0 %v7731_v12  ;;  %v1204_v12 = vsub.f32 %v9353_v51, %v1203_v8 }
  0x66   : > { %7733 = vmatprep.subr.bf16.mxu0 %v9064_v0 }
  0x69   : > { %7735 = vmatpush3.bf16.msra.mxu0 %v7734_v13  ;;  %v1211_v13 = vsub.f32 %v9358_v56, %v1210_v58 }
  0x6a   : > { %7736 = vmatprep.subr.bf16.mxu0 %v9064_v0 }
  0x6c   : > { %6781 = vmatmul.mubr.f32.vlgmr.msra.gmra.mrb[0].mxu0 %v9293_v36  ;;  %v1169_v36 = vsub.f32 %v9336_v21, %v1168_v34 }
  0x6d   : > { %7738 = vmatpush3.bf16.msra.mxu0 %v9248_v14  ;;  %6799 = vmatprep.mubr.msk.f32.mxu0 %vm9065_vm0, %v9066_v1 }
  0x6e   : > { %7739 = vmatprep.subr.bf16.mxu0 %v9064_v0 }
  0x71   : > { %7741 = vmatpush3.bf16.msra.mxu0 %v9266_v23 }
  0x72   : > { %7742 = vmatprep.subr.bf16.mxu0 %v9064_v0 }
  0x75   : > { %7744 = vmatpush3.bf16.msra.mxu0 %v9290_v35 }
  0x76   : > { %7745 = vmatprep.subr.bf16.mxu0 %v9064_v0 }
  0x79   : > { %7747 = vmatpush3.bf16.msra.mxu0 %v9319_v50 }
  0x7a   : > { %7748 = vmatprep.subr.bf16.mxu0 %v9064_v0 }
  0x7c   : > { %6800 = vmatmul.mubr.f32.vlgmr.msra.gmra.mrb[0].mxu0 %v510_v43 }
  0x7d   : > { %7750 = vmatpush3.bf16.msra.mxu0 %v7749_v18  ;;  %6818 = vmatprep.mubr.msk.f32.mxu0 %vm9065_vm0, %v9066_v1  ;;  %v1205_v18 = vand.u32 4294901760, %v1204_v12  ;;  %v12539_v12 = vand.u32 4294901760, %v9493_v45 }
  0x7e   : > { %7751 = vmatprep.subr.bf16.mxu0 %v9064_v0 }
  0x81   : > { %7753 = vmatpush3.bf16.msra.mxu0 %v7752_v19  ;;  %v1212_v19 = vand.u32 4294901760, %v1211_v13 }
  0x82   : > { %7754 = vmatprep.subr.bf16.mxu0 %v9064_v0 }
  0x85   : > { %7756 = vmatpush3.bf16.msra.mxu0 %v7755_v15  ;;  %v1217_v15 = vand.u32 4294901760, %v9360_v57 }
  0x86   : > { %7757 = vmatprep.subr.bf16.mxu0 %v9064_v0 }
  0x89   : > { %7759 = vmatpush3.bf16.msra.mxu0 %v7758_v16  ;;  %v1224_v16 = vand.u32 4294901760, %v9364_v60 }
  0x8a   : > { %7760 = vmatprep.subr.bf16.mxu0 %v9064_v0 }
  0x8c   : > { %6819 = vmatmul.mubr.f32.vlgmr.msra.gmra.mrb[0].mxu0 %v9277_v28 }
  0x8d   : > { %7762 = vmatpush3.bf16.msra.mxu0 %v9248_v14  ;;  %6837 = vmatprep.mubr.msk.f32.mxu0 %vm9065_vm0, %v9066_v1  ;;  %v984_v14 = vld [vmem:[#allocation2 + $0x60] sm:$0xff] }
  0x8e   : > { %7763 = vmatprep.subr.bf16.mxu0 %v9064_v0  ;;  %v1104_v20 = vand.u32 4294901760, %v984_v14 }
  0x90   : > { %v9487_v42 = vsub.f32 %v984_v14, %v1104_v20  ;;  %v9527_v14 = vpack.c.bf16 %v1212_v19, %v1205_v18  ;;  %v1267_v19 = vsub.f32 %v9493_v45, %v12539_v12 }
  0x91   : > { %7765 = vmatpush3.bf16.msra.mxu0 %v9266_v23  ;;  %v1107_v23 = vand.u32 4294901760, %v985_v17 }
  0x92   : > { %7766 = vmatprep.subr.bf16.mxu0 %v9064_v0  ;;  %v12542_v37 = vand.u32 4294901760, %v9487_v42 }
  0x93   : > { %v9467_v24 = vpack.c.bf16 %v1107_v23, %v1104_v20  ;;  %v9489_v43 = vsub.f32 %v985_v17, %v1107_v23  ;;  %v1218_v17 = vsub.f32 %v9360_v57, %v1217_v15  ;;  %v1225_v20 = vsub.f32 %v9364_v60, %v1224_v16 }
  0x94   : > { %v1246_v49 = vsub.f32 %v9487_v42, %v12542_v37 }
  0x95   : > { %7768 = vmatpush3.bf16.msra.mxu0 %v9290_v35  ;;  %7792 = vmatpush3.bf16.msra.mxu1 %v9467_v24  ;;  %v1162_v35 = vsub.f32 %v9334_v9, %v1161_v33  ;;  %v1219_v23 = vand.u32 4294901760, %v1218_v17  ;;  %v12541_v38 = vand.u32 4294901760, %v9489_v43 }
  0x96   : > { %7769 = vmatprep.subr.bf16.mxu0 %v9064_v0  ;;  %7793 = vmatprep.subr.bf16.mxu1 %v9064_v0  ;;  %v1247_v63 = vand.u32 4294901760, %v1246_v49  ;;  %v7836_v49 = vpack.c.bf16 %v9368_v62, %v9366_v61 }
  0x97   : > { %v1163_v46 = vand.u32 4294901760, %v1162_v35  ;;  %v1232_v35 = vsub.f32 %v9366_v61, %v1231_v29  ;;  %v1253_v55 = vsub.f32 %v9489_v43, %v12541_v38  ;;  %v1726_v61 = vld [vmem:[#allocation2 + $0x80] sm:$0xff] }
  0x99   : > { %7771 = vmatpush3.bf16.msra.mxu0 %v9319_v50  ;;  %v1170_v50 = vand.u32 4294901760, %v1169_v36  ;;  %v1254_v3 = vand.u32 4294901760, %v1253_v55  ;;  %v7839_v55 = vpack.c.bf16 %v9489_v43, %v9487_v42 }
  0x9a   : > { %7844 = vmatprep.subr.bf16.mxu0 %v9064_v0 }
  0x9b   : > { %v9497_v27 = vpack.c.bf16 %v1170_v50, %v1163_v46  ;;  %v1233_v46 = vand.u32 4294901760, %v1232_v35  ;;  %v7815_v13 = vpack.c.bf16 %v1254_v3, %v1247_v63  ;;  %v7824_v35 = vpack.c.bf16 %v9342_v40, %v9338_v25 }
  0x9c   : > { %6838 = vmatmul.mubr.f32.vlgmr.msra.gmra.mrb[0].mxu0 %v9277_v28  ;;  %v986_v28 = vld [vmem:[#allocation2 + $0x70] sm:$0xff]  ;;  %v7881_v25 = vpack.c.bf16 %v1224_v16, %v1217_v15  ;;  %v12571_v40 = vand.u32 4294901760, %v9368_v62 }
  0x9d   : > { %7846 = vmatpush3.bf16.msra.mxu0 %v9340_v39  ;;  %6982 = vmatprep.mubr.msk.f32.mxu0 %vm9065_vm0, %v9066_v1  ;;  %v1110_v30 = vand.u32 4294901760, %v986_v28 }
  0x9e   : > { %7847 = vmatprep.subr.bf16.mxu0 %v9064_v0 }
  0x9f   : > { %v9473_v32 = vpack.c.bf16 %v1113_v31, %v1110_v30  ;;  %v9491_v44 = vsub.f32 %v986_v28, %v1110_v30  ;;  %v1226_v28 = vand.u32 4294901760, %v1225_v20  ;;  %v12543_v30 = vand.u32 4294901760, %v9368_v62 }
  0xa0   : > { %v1268_v20 = vand.u32 4294901760, %v1267_v19  ;;  %v5952_v19 = vld [vmem:[%s12527_s3] ss:$0 sm:$0xff] }
  0xa1   : > { %7849 = vmatpush3.bf16.msra.mxu0 %v9362_v59  ;;  %7795 = vmatpush3.bf16.msra.mxu1 %v9473_v32  ;;  %v7809_v31 = vpack.c.bf16 %v1226_v28, %v1219_v23  ;;  %v1239_v36 = vsub.f32 %v9368_v62, %v12543_v30  ;;  %v12540_v4 = vand.u32 4294901760, %v9491_v44  ;;  %v7821_v28 = vpack.c.bf16 %v9336_v21, %v9334_v9  ;;  %v1727_v62 = vld [vmem:[#allocation2 + $0x88] sm:$0xff] }
  0xa2   : > { %7850 = vmatprep.subr.bf16.mxu0 %v9064_v0  ;;  %7796 = vmatprep.subr.bf16.mxu1 %v9064_v0  ;;  %v7842_v63 = vpack.c.bf16 %v9493_v45, %v9491_v44  ;;  %v7875_v9 = vpack.c.bf16 %v1196_v53, %v1189_v52  ;;  %v7878_v21 = vpack.c.bf16 %v1210_v58, %v1203_v8  ;;  %v9711_v52 = vld [vmem:[#allocation2 + $0xa0] sm:$0xff]  ;;  %v9713_v53 = vld [vmem:[#allocation2 + $0xa8] sm:$0xff] }
  0xa3   : > { %v1240_v50 = vand.u32 4294901760, %v1239_v36  ;;  %v1260_v18 = vsub.f32 %v9491_v44, %v12540_v4  ;;  %v7827_v36 = vpack.c.bf16 %v9346_v47, %v9344_v41  ;;  %v7884_v41 = vpack.c.bf16 %v12571_v40, %v1231_v29 }
  0xa4   : > { %v12572_v47 = vand.u32 4294901760, %v9487_v42  ;;  %v1830_v15 = vand.u32 4294901760, %v9711_v52  ;;  %v1833_v16 = vand.u32 4294901760, %v9713_v53 }
  0xa5   : > { %7852 = vmatpush3.bf16.msra.mxu0 %v9373_v7  ;;  %v7812_v48 = vpack.c.bf16 %v1240_v50, %v1233_v46  ;;  %v1261_v17 = vand.u32 4294901760, %v1260_v18  ;;  %v7830_v46 = vpack.c.bf16 %v9358_v56, %v9353_v51  ;;  %v7833_v50 = vpack.c.bf16 %v9364_v60, %v9360_v57 }
  0xa6   : > { %7853 = vmatprep.subr.bf16.mxu0 %v9064_v0  ;;  %v12573_v51 = vand.u32 4294901760, %v9489_v43  ;;  %v12574_v57 = vand.u32 4294901760, %v9491_v44  ;;  %v12575_v60 = vand.u32 4294901760, %v9493_v45 }
  0xa7   : > { %v7818_v23 = vpack.c.bf16 %v1268_v20, %v1261_v17 }
  0xa8   : > { %v7887_v56 = vpack.c.bf16 %v12573_v51, %v12572_v47 }
  0xa9   : > { %7855 = vmatpush3.bf16.msra.mxu0 %v9378_v5 }
  0xaa   : > { %7856 = vmatprep.subr.bf16.mxu0 %v9064_v0 }
  0xad   : > { %7858 = vmatpush3.bf16.msra.mxu0 %v9386_v6 }
  0xae   : > { %7859 = vmatprep.subr.bf16.mxu0 %v9064_v0 }
  0xb1   : > { %7861 = vmatpush3.bf16.msra.mxu0 %v9395_v11 }
  0xb2   : > { %7862 = vmatprep.subr.bf16.mxu0 %v9064_v0 }
  0xb5   : > { %7864 = vmatpush3.bf16.msra.mxu0 %v9467_v24 }
  0xb6   : > { %7865 = vmatprep.subr.bf16.mxu0 %v9064_v0 }
  0xb9   : > { %7867 = vmatpush3.bf16.msra.mxu0 %v9473_v32 }
  0xba   : > { %7892 = vmatprep.subr.bf16.mxu0 %v9064_v0 }
 0x113   : > { %v9575_v3 = vpop.f32.mrb[0].mxu1 }
 0x114   : > { %v6844_v18 = vpop.f32.mrb[1].mxu1 }
 0x16f   : > { %v968_v17 = vpop.f32.mrb[0].mxu0 }
 0x170   : > { %v8860_v20 = vadd.f32 %v5952_v19, %v968_v17  ;;  %v6839_v12 = vpop.f32.mrb[1].mxu0  ;;  %v9762_v19 = vld [vmem:[#allocation2 + $0xc8] sm:$0xff] }
 0x172   : > { %v9580_v4 = vand.u32 4294901760, %v8860_v20 }
 0x174   : > { %v1149_v38 = vsub.f32 %v8860_v20, %v9580_v4 }
 0x176   : > { %v1150_v37 = vand.u32 4294901760, %v1149_v38 }
 0x178   : > { %v1151_v30 = vsub.f32 %v1149_v38, %v1150_v37  ;;  %6983 = vmatmul.mubr.f32.vlgmr.msra.gmra.mrb[2].mxu0 %v1150_v37  ;;  %v9733_v37 = vsub.f32 %v9713_v53, %v1833_v16 }
 0x179   : > { %7894 = vmatpush3.bf16.msra.mxu0 %v9340_v39  ;;  %7052 = vmatprep.mubr.msk.f32.mxu0 %vm9065_vm0, %v9066_v1  ;;  %v7869_v39 = vpack.c.bf16 %v1168_v34, %v1161_v33  ;;  %v9689_v33 = vld [vmem:[#allocation2 + $0x98] sm:$0xff] }
 0x17a   : > { %7895 = vmatprep.subr.bf16.mxu0 %v9064_v0  ;;  %v1152_v18 = vand.u32 4294901760, %v1151_v30  ;;  %v1827_v44 = vand.u32 4294901760, %v9689_v33 }
 0x17c   : > { %6878 = vmatmul.mubr.f32.vlgmr.msra.gmra.mrb[2].mxu1 %v1152_v18 }
 0x17d   : > { %7798 = vmatpush3.bf16.msra.mxu1 %v9497_v27  ;;  %7897 = vmatpush3.bf16.msra.mxu0 %v9362_v59  ;;  %v7872_v59 = vpack.c.bf16 %v1182_v26, %v1175_v2  ;;  %v9709_v27 = vsub.f32 %v9689_v33, %v1827_v44  ;;  %v9825_v33 = vld [vmem:[#allocation2 + $0xf0] sm:$0xff] }
 0x17e   : > { %7799 = vmatprep.subr.bf16.mxu1 %v9064_v0  ;;  %7898 = vmatprep.subr.bf16.mxu0 %v9064_v0 }
 0x17f   : > { %6912 = vmatprep.mubr.msk.f32.mxu1 %vm9065_vm0, %v9066_v1 }
 0x181   : > { %7801 = vmatpush3.bf16.msra.mxu1 %v9507_v54  ;;  %7900 = vmatpush3.bf16.msra.mxu0 %v9373_v7  ;;  %v7890_v7 = vpack.c.bf16 %v12575_v60, %v12574_v57  ;;  %v9794_v57 = vld [vmem:[#allocation2 + $0xd0] sm:$0xff]  ;;  %v9796_v60 = vld [vmem:[#allocation2 + $0xd8] sm:$0xff] }
 0x182   : > { %7802 = vmatprep.subr.bf16.mxu1 %v9064_v0  ;;  %7901 = vmatprep.subr.bf16.mxu0 %v9064_v0 }
 0x185   : > { %7804 = vmatpush3.bf16.msra.mxu1 %v9517_v10  ;;  %7903 = vmatpush3.bf16.msra.mxu0 %v9378_v5  ;;  %v1818_v5 = vand.u32 4294901760, %v1726_v61  ;;  %v1932_v10 = vand.u32 4294901760, %v9709_v27 }
 0x186   : > { %7805 = vmatprep.subr.bf16.mxu1 %v9064_v0  ;;  %7904 = vmatprep.subr.bf16.mxu0 %v9064_v0 }
 0x187   : > { %v1933_v30 = vsub.f32 %v9709_v27, %v1932_v10 }
 0x189   : > { %7807 = vmatpush3.bf16.msra.mxu1 %v9527_v14  ;;  %7906 = vmatpush3.bf16.msra.mxu0 %v9386_v6  ;;  %v1821_v6 = vand.u32 4294901760, %v1727_v62  ;;  %v1934_v12 = vand.u32 4294901760, %v1933_v30  ;;  %v9832_v30 = vld [vmem:[#allocation2 + $0xf8] sm:$0xff] }
 0x18a   : > { %7808 = vmatprep.subr.bf16.mxu1 %v9064_v0  ;;  %7907 = vmatprep.subr.bf16.mxu0 %v9064_v0 }
 0x18d   : > { %7810 = vmatpush3.bf16.msra.mxu1 %v7809_v31  ;;  %7909 = vmatpush3.bf16.msra.mxu0 %v9395_v11  ;;  %v9683_v11 = vsub.f32 %v1726_v61, %v1818_v5  ;;  %v9728_v31 = vsub.f32 %v9711_v52, %v1830_v15  ;;  %v1860_v52 = vand.u32 4294901760, %v9825_v33 }
 0x18e   : > { %7811 = vmatprep.subr.bf16.mxu1 %v9064_v0  ;;  %7910 = vmatprep.subr.bf16.mxu0 %v9064_v0 }
 0x18f   : > { %v1911_v34 = vand.u32 4294901760, %v9683_v11 }
 0x191   : > { %7813 = vmatpush3.bf16.msra.mxu1 %v7812_v48  ;;  %7912 = vmatpush3.bf16.msra.mxu0 %v9467_v24  ;;  %v9685_v24 = vsub.f32 %v1727_v62, %v1821_v6  ;;  %v1912_v45 = vsub.f32 %v9683_v11, %v1911_v34  ;;  %v9737_v48 = vld [vmem:[#allocation2 + $0xb8] sm:$0xff] }
 0x192   : > { %7814 = vmatprep.subr.bf16.mxu1 %v9064_v0  ;;  %7913 = vmatprep.subr.bf16.mxu0 %v9064_v0 }
 0x193   : > { %v1918_v42 = vand.u32 4294901760, %v9685_v24  ;;  %v1913_v54 = vand.u32 4294901760, %v1912_v45  ;;  %v9811_v45 = vld [vmem:[#allocation2 + $0xe0] sm:$0xff] }
 0x195   : > { %7816 = vmatpush3.bf16.msra.mxu1 %v7815_v13  ;;  %7915 = vmatpush3.bf16.msra.mxu0 %v9473_v32  ;;  %v9687_v32 = vld [vmem:[#allocation2 + $0x90] sm:$0xff]  ;;  %v1919_v2 = vsub.f32 %v9685_v24, %v1918_v42 }
 0x196   : > { %7817 = vmatprep.subr.bf16.mxu1 %v9064_v0  ;;  %7940 = vmatprep.subr.bf16.mxu0 %v9064_v0  ;;  %v1824_v43 = vand.u32 4294901760, %v9687_v32 }
 0x197   : > { %v1920_v8 = vand.u32 4294901760, %v1919_v2  ;;  %v9813_v2 = vld [vmem:[#allocation2 + $0xe8] sm:$0xff] }
 0x198   : > { %7053 = vmatmul.mubr.f32.vlgmr.msra.gmra.mrb[4].mxu0 %v9580_v4  ;;  %v9704_v26 = vsub.f32 %v9687_v32, %v1824_v43 }
 0x199   : > { %7819 = vmatpush3.bf16.msra.mxu1 %v7818_v23  ;;  %7127 = vmatprep.mubr.msk.f32.mxu0 %vm9065_vm0, %v9066_v1  ;;  %v7941_v14 = vpack.c.bf16 %v1920_v8, %v1913_v54  ;;  %v1839_v23 = vand.u32 4294901760, %v9737_v48 }
 0x19a   : > { %7820 = vmatprep.subr.bf16.mxu1 %v9064_v0  ;;  %v1925_v58 = vand.u32 4294901760, %v9704_v26 }
 0x19b   : > { %7942 = vmatpush3.bf16.msra.mxu0 %v7941_v14  ;;  %v1851_v14 = vand.u32 4294901760, %v9796_v60 }
 0x19c   : > { %6913 = vmatmul.mubr.f32.vlgmr.msra.gmra.mrb[4].mxu1 %v9580_v4  ;;  %v1926_v29 = vsub.f32 %v9704_v26, %v1925_v58  ;;  %7943 = vmatprep.subr.bf16.mxu0 %v9064_v0 }
 0x19d   : > { %7822 = vmatpush3.bf16.msra.mxu1 %v7821_v28  ;;  %6947 = vmatprep.mubr.msk.f32.mxu1 %vm9065_vm0, %v9066_v1  ;;  %v1939_v28 = vand.u32 4294901760, %v9728_v31 }
 0x19e   : > { %7823 = vmatprep.subr.bf16.mxu1 %v9064_v0 }
 0x1a1   : > { %7825 = vmatpush3.bf16.msra.mxu1 %v7824_v35  ;;  %v1946_v35 = vand.u32 4294901760, %v9733_v37 }
 0x1a2   : > { %7826 = vmatprep.subr.bf16.mxu1 %v9064_v0 }
 0x1a5   : > { %7828 = vmatpush3.bf16.msra.mxu1 %v7827_v36 }
 0x1a6   : > { %7829 = vmatprep.subr.bf16.mxu1 %v9064_v0 }
 0x1a9   : > { %7831 = vmatpush3.bf16.msra.mxu1 %v7830_v46 }
 0x1aa   : > { %7832 = vmatprep.subr.bf16.mxu1 %v9064_v0 }
 0x1ad   : > { %7834 = vmatpush3.bf16.msra.mxu1 %v7833_v50  ;;  %v9752_v50 = vsub.f32 %v9737_v48, %v1839_v23 }
 0x1ae   : > { %7835 = vmatprep.subr.bf16.mxu1 %v9064_v0 }
 0x1af   : > { %v1960_v20 = vand.u32 4294901760, %v9752_v50 }
 0x1b1   : > { %7837 = vmatpush3.bf16.msra.mxu1 %v7836_v49  ;;  %v1940_v49 = vsub.f32 %v9728_v31, %v1939_v28 }
 0x1b2   : > { %7838 = vmatprep.subr.bf16.mxu1 %v9064_v0 }
 0x1b5   : > { %7840 = vmatpush3.bf16.msra.mxu1 %v7839_v55  ;;  %v1947_v55 = vsub.f32 %v9733_v37, %v1946_v35 }
 0x1b6   : > { %7841 = vmatprep.subr.bf16.mxu1 %v9064_v0 }
 0x1b9   : > { %7843 = vmatpush3.bf16.msra.mxu1 %v7842_v63  ;;  %v9760_v63 = vld [vmem:[#allocation2 + $0xc0] sm:$0xff] }
 0x1ba   : > { %7868 = vmatprep.subr.bf16.mxu1 %v9064_v0  ;;  %v1842_v18 = vand.u32 4294901760, %v9760_v63 }
 0x1bc   : > { %6948 = vmatmul.mubr.f32.vlgmr.msra.gmra.mrb[6].mxu1 %v1149_v38  ;;  %v9735_v38 = vld [vmem:[#allocation2 + $0xb0] sm:$0xff]  ;;  %v9784_v47 = vsub.f32 %v9760_v63, %v1842_v18 }
 0x1bd   : > { %7870 = vmatpush3.bf16.msra.mxu1 %v7869_v39  ;;  %7017 = vmatprep.mubr.msk.f32.mxu1 %vm9065_vm0, %v9066_v1  ;;  %v1836_v13 = vand.u32 4294901760, %v9735_v38  ;;  %v1845_v39 = vand.u32 4294901760, %v9762_v19 }
 0x1be   : > { %7871 = vmatprep.subr.bf16.mxu1 %v9064_v0  ;;  %v1967_v62 = vand.u32 4294901760, %v9784_v47 }
 0x1bf   : > { %v9747_v46 = vsub.f32 %v9735_v38, %v1836_v13 }
 0x1c0   : > { %v1968_v8 = vsub.f32 %v9784_v47, %v1967_v62 }
 0x1c1   : > { %7873 = vmatpush3.bf16.msra.mxu1 %v7872_v59  ;;  %v1953_v17 = vand.u32 4294901760, %v9747_v46  ;;  %v5956_v59 = vld [vmem:[%s12529_s5 + $0x4] sm:$0xf] }
 0x1c2   : > { %7874 = vmatprep.subr.bf16.mxu1 %v9064_v0 }
 0x1c3   : > { %v1954_v40 = vsub.f32 %v9747_v46, %v1953_v17 }
 0x1c5   : > { %7876 = vmatpush3.bf16.msra.mxu1 %v7875_v9  ;;  %v1941_v9 = vand.u32 4294901760, %v1940_v49  ;;  %v9843_v49 = vsub.f32 %v9796_v60, %v1851_v14  ;;  %v9869_v60 = vpack.c.bf16 %v1839_v23, %v1836_v13 }
 0x1c6   : > { %7877 = vmatprep.subr.bf16.mxu1 %v9064_v0 }
 0x1c9   : > { %7879 = vmatpush3.bf16.msra.mxu1 %v7878_v21  ;;  %v1948_v21 = vand.u32 4294901760, %v1947_v55 }
 0x1ca   : > { %7880 = vmatprep.subr.bf16.mxu1 %v9064_v0 }
 0x1cb   : > { %v7947_v51 = vpack.c.bf16 %v1948_v21, %v1941_v9 }
 0x1cd   : > { %7882 = vmatpush3.bf16.msra.mxu1 %v7881_v25  ;;  %v9773_v25 = vpack.c.bf16 %v1821_v6, %v1818_v5  ;;  %v9808_v5 = vpack.c.bf16 %v1827_v44, %v1824_v43  ;;  %v1854_v44 = vand.u32 4294901760, %v9811_v45 }
 0x1ce   : > { %7883 = vmatprep.subr.bf16.mxu1 %v9064_v0 }
 0x1d1   : > { %7885 = vmatpush3.bf16.msra.mxu1 %v7884_v41  ;;  %v1961_v41 = vsub.f32 %v9752_v50, %v1960_v20 }
 0x1d2   : > { %7886 = vmatprep.subr.bf16.mxu1 %v9064_v0 }
 0x1d3   : > { %v1962_v61 = vand.u32 4294901760, %v1961_v41 }
 0x1d5   : > { %7888 = vmatpush3.bf16.msra.mxu1 %v7887_v56  ;;  %v9792_v56 = vsub.f32 %v9762_v19, %v1845_v39 }
 0x1d6   : > { %7889 = vmatprep.subr.bf16.mxu1 %v9064_v0 }
 0x1d7   : > { %v1974_v6 = vand.u32 4294901760, %v9792_v56 }
 0x1d9   : > { %7891 = vmatpush3.bf16.msra.mxu1 %v7890_v7  ;;  %v1955_v7 = vand.u32 4294901760, %v1954_v40  ;;  %v1975_v43 = vsub.f32 %v9792_v56, %v1974_v6 }
 0x1da   : > { %7055 = vmatprep.subr.mxu1 %v9066_v1 }
 0x1db   : > { %v7950_v54 = vpack.c.bf16 %v1962_v61, %v1955_v7  ;;  %v1976_v55 = vand.u32 4294901760, %v1975_v43 }
 0x1dc   : > { %7018 = vmatmul.mubr.f32.vlgmr.msra.gmra.mrb[8].mxu1 %v9580_v4  ;;  %v1927_v4 = vand.u32 4294901760, %v1926_v29  ;;  %v1857_v29 = vand.u32 4294901760, %v9813_v2 }
 0x1dd   : > { %7057 = vmatprep.mubr.msk.f32.mxu1 %vm9065_vm0, %v9066_v1  ;;  %7056 = vmatpush3.msk.msra.mxu1 %vm993_vm1, %v5956_v59  ;;  %v9847_v59 = vsub.f32 %v9811_v45, %v1854_v44 }
 0x1de   : > { %v7944_v36 = vpack.c.bf16 %v1934_v12, %v1927_v4  ;;  %7916 = vmatprep.subr.bf16.mxu1 %v9064_v0  ;;  %v9839_v4 = vpack.c.bf16 %v1833_v16, %v1830_v15  ;;  %v1969_v12 = vand.u32 4294901760, %v1968_v8  ;;  %v9850_v9 = vsub.f32 %v9813_v2, %v1857_v29 }
 0x1df   : > { %v12548_v15 = vand.u32 4294901760, %v9843_v49  ;;  %v1863_v16 = vand.u32 4294901760, %v9832_v30  ;;  %v12547_v40 = vand.u32 4294901760, %v9847_v59 }
 0x1e0   : > { %7945 = vmatpush3.bf16.msra.mxu0 %v7944_v36  ;;  %7058 = vmatmul.mubr.msk.f32.vlgmr.msra.gmra.mrb[10].mxu1 %vm989_vm3, %v9263_v22  ;;  %v1848_v22 = vand.u32 4294901760, %v9794_v57  ;;  %v7953_v21 = vpack.c.bf16 %v1976_v55, %v1969_v12  ;;  %v12546_v41 = vand.u32 4294901760, %v9850_v9 }
 0x1e1   : > { %7946 = vmatprep.subr.bf16.mxu0 %v9064_v0  ;;  %7918 = vmatpush3.bf16.msra.mxu1 %v9773_v25  ;;  %v1989_v61 = vsub.f32 %v9843_v49, %v12548_v15  ;;  %v9875_v45 = vsub.f32 %v9832_v30, %v1863_v16  ;;  %v1996_v2 = vsub.f32 %v9847_v59, %v12547_v40 }
 0x1e2   : > { %7092 = vmatprep.mubr.msk.f32.mxu1 %vm9065_vm0, %v9066_v1  ;;  %7919 = vmatprep.subr.bf16.mxu1 %v9064_v0  ;;  %v9823_v32 = vsub.f32 %v9794_v57, %v1848_v22  ;;  %v2003_v38 = vsub.f32 %v9850_v9, %v12546_v41  ;;  %v9895_v30 = vpack.c.bf16 %v1845_v39, %v1842_v18 }
 0x1e3   : > { %v1990_v13 = vand.u32 4294901760, %v1989_v61  ;;  %v12544_v23 = vand.u32 4294901760, %v9875_v45  ;;  %v9905_v63 = vpack.c.bf16 %v1851_v14, %v1848_v22  ;;  %v9917_v14 = vpack.c.bf16 %v1863_v16, %v1860_v52 }
 0x1e4   : > { %7948 = vmatpush3.bf16.msra.mxu0 %v7947_v51  ;;  %v12549_v36 = vand.u32 4294901760, %v9823_v32  ;;  %v9862_v51 = vsub.f32 %v9825_v33, %v1860_v52  ;;  %v2004_v8 = vand.u32 4294901760, %v2003_v38  ;;  %v7977_v52 = vpack.c.bf16 %v9792_v56, %v9784_v47 }
 0x1e5   : > { %7949 = vmatprep.subr.bf16.mxu0 %v9064_v0  ;;  %7921 = vmatpush3.bf16.msra.mxu1 %v9808_v5  ;;  %v2017_v12 = vsub.f32 %v9875_v45, %v12544_v23  ;;  %v7980_v38 = vpack.c.bf16 %v9843_v49, %v9823_v32 }
 0x1e6   : > { %7922 = vmatprep.subr.bf16.mxu1 %v9064_v0  ;;  %v1982_v53 = vsub.f32 %v9823_v32, %v12549_v36  ;;  %v12545_v48 = vand.u32 4294901760, %v9862_v51 }
 0x1e8   : > { %7951 = vmatpush3.bf16.msra.mxu0 %v7950_v54  ;;  %v1983_v7 = vand.u32 4294901760, %v1982_v53  ;;  %v1997_v54 = vand.u32 4294901760, %v1996_v2  ;;  %v2010_v33 = vsub.f32 %v9862_v51, %v12545_v48  ;;  %v7974_v2 = vpack.c.bf16 %v9752_v50, %v9747_v46 }
 0x1e9   : > { %7952 = vmatprep.subr.bf16.mxu0 %v9064_v0  ;;  %7924 = vmatpush3.bf16.msra.mxu1 %v9839_v4  ;;  %v12581_v46 = vand.u32 4294901760, %v9875_v45 }
 0x1ea   : > { %7925 = vmatprep.subr.bf16.mxu1 %v9064_v0  ;;  %v7956_v43 = vpack.c.bf16 %v1990_v13, %v1983_v7  ;;  %v7959_v55 = vpack.c.bf16 %v2004_v8, %v1997_v54  ;;  %v2011_v53 = vand.u32 4294901760, %v2010_v33  ;;  %v9910_v7 = vpack.c.bf16 %v1857_v29, %v1854_v44 }
 0x1eb   : > { %v7965_v44 = vpack.c.bf16 %v9685_v24, %v9683_v11  ;;  %v7968_v29 = vpack.c.bf16 %v9709_v27, %v9704_v26  ;;  %v8019_v11 = vpack.c.bf16 %v1946_v35, %v1939_v28  ;;  %v8022_v24 = vpack.c.bf16 %v1960_v20, %v1953_v17  ;;  %v2477_v17 = vld [vmem:[#allocation2 + $0x100] sm:$0xff]  ;;  %v2478_v20 = vld [vmem:[#allocation2 + $0x108] sm:$0xff] }
 0x1ec   : > { %7954 = vmatpush3.bf16.msra.mxu0 %v7953_v21  ;;  %v2018_v21 = vand.u32 4294901760, %v2017_v12  ;;  %v7986_v12 = vpack.c.bf16 %v9875_v45, %v9862_v51  ;;  %v12577_v26 = vand.u32 4294901760, %v9843_v49  ;;  %v12580_v35 = vand.u32 4294901760, %v9862_v51 }
 0x1ed   : > { %7955 = vmatprep.subr.bf16.mxu0 %v9064_v0  ;;  %7927 = vmatpush3.bf16.msra.mxu1 %v9869_v60  ;;  %v2569_v47 = vand.u32 4294901760, %v2477_v17  ;;  %v2572_v56 = vand.u32 4294901760, %v2478_v20 }
 0x1ee   : > { %7928 = vmatprep.subr.bf16.mxu1 %v9064_v0  ;;  %v7962_v18 = vpack.c.bf16 %v2018_v21, %v2011_v53  ;;  %v8034_v50 = vpack.c.bf16 %v12581_v46, %v12580_v35  ;;  %v10157_v35 = vld [vmem:[#allocation2 + $0x150] sm:$0xff]  ;;  %v10159_v46 = vld [vmem:[#allocation2 + $0x158] sm:$0xff] }
 0x1f0   : > { %7957 = vmatpush3.bf16.msra.mxu0 %v7956_v43  ;;  %v7983_v43 = vpack.c.bf16 %v9850_v9, %v9847_v59 }
 0x1f1   : > { %7958 = vmatprep.subr.bf16.mxu0 %v9064_v0  ;;  %7930 = vmatpush3.bf16.msra.mxu1 %v9895_v30 }
 0x1f2   : > { %7931 = vmatprep.subr.bf16.mxu1 %v9064_v0 }
 0x1f4   : > { %7960 = vmatpush3.bf16.msra.mxu0 %v7959_v55 }
 0x1f5   : > { %7961 = vmatprep.subr.bf16.mxu0 %v9064_v0  ;;  %7933 = vmatpush3.bf16.msra.mxu1 %v9905_v63 }
 0x1f6   : > { %7934 = vmatprep.subr.bf16.mxu1 %v9064_v0 }
 0x1f8   : > { %7963 = vmatpush3.bf16.msra.mxu0 %v7962_v18 }
 0x1f9   : > { %7988 = vmatprep.subr.bf16.mxu0 %v9064_v0  ;;  %7936 = vmatpush3.bf16.msra.mxu1 %v9910_v7 }
 0x1fa   : > { %7937 = vmatprep.subr.bf16.mxu1 %v9064_v0 }
 0x1fd   : > { %7939 = vmatpush3.bf16.msra.mxu1 %v9917_v14 }
 0x1fe   : > { %7964 = vmatprep.subr.bf16.mxu1 %v9064_v0 }
 0x24b   : > { %v1498_v19 = vpop.f32.mrb[2].mxu0 }
 0x24c   : > { %v6984_v39 = vpop.f32.mrb[3].mxu0 }
 0x24f   : > { %v1154_v61 = vpop.f32.mrb[2].mxu1 }
 0x250   : > { %v1155_v57 = vadd.f32 %v1154_v61, %v9575_v3  ;;  %v6879_v22 = vpop.f32.mrb[3].mxu1  ;;  %v7971_v3 = vpack.c.bf16 %v9733_v37, %v9728_v31  ;;  %v12578_v31 = vand.u32 4294901760, %v9847_v59  ;;  %v12579_v37 = vand.u32 4294901760, %v9850_v9 }
 0x252   : > { %v8031_v28 = vpack.c.bf16 %v12579_v37, %v12578_v31  ;;  %v10147_v31 = vld [vmem:[%s9243_s15] sm:$0x3] }
 0x26b   : > { %v1704_v16 = vpop.f32.mrb[4].mxu0 }
 0x26c   : > { %v7054_v13 = vpop.f32.mrb[5].mxu0 }
 0x26d   : > { %v5955_v13 = vld [vmem:[%s12530_s6] ss:$0 sm:$0xff] }
 0x26f   : > { %v1305_v54 = vpop.f32.mrb[4].mxu1 }
 0x270   : > { %v1306_v8 = vadd.f32 %v1305_v54, %v1155_v57  ;;  %v6914_v33 = vpop.f32.mrb[5].mxu1 }
 0x28f   : > { %v1409_v55 = vpop.f32.mrb[6].mxu1 }
 0x290   : > { %v1410_v53 = vadd.f32 %v1409_v55, %v1306_v8  ;;  %v6949_v21 = vpop.f32.mrb[7].mxu1 }
 0x291   : > { %v10097_v21 = vld [vmem:[#allocation2 + $0x138] sm:$0xff] }
 0x292   : > { %v1499_v18 = vadd.f32 %v1498_v19, %v1410_v53 }
 0x2af   : > { %v1617_v39 = vpop.f32.mrb[8].mxu1 }
 0x2b0   : > { %v1618_v61 = vadd.f32 %v1617_v39, %v1499_v18  ;;  %v7019_v22 = vpop.f32.mrb[9].mxu1 }
 0x2b1   : > { %v2590_v22 = vand.u32 4294901760, %v10097_v21 }
 0x2b2   : > { %v1705_v23 = vadd.f32 %v1704_v16, %v1618_v61 }
 0x2b4   : > { %v1715_v57 = vadd.f32 %v5955_v13, %v1705_v23  ;;  %v10071_v23 = vld [vmem:[#allocation2 + $0x120] sm:$0xff] }
 0x2b6   : > { %v1717_v54 = vmul.f32 0.044715, %v1715_v57  ;;  %v1716_v36 = vmul.f32 0.5, %v1715_v57 }
 0x2b8   : > { %v1718_v33 = vmul.f32 %v1717_v54, %v1715_v57 }
 0x2ba   : > { %v1719_v48 = vmul.f32 %v1718_v33, %v1715_v57 }
 0x2bc   : > { %v1720_v41 = vadd.f32 %v1719_v48, %v1715_v57 }
 0x2be   : > { %v1721_v40 = vmul.f32 0.7978846, %v1720_v41 }
 0x2c0   : > { %8926 = vtanh.f32 %v1721_v40 }
 0x2ca   : > { %v8927_v15 = vpop.eup %8926 }
 0x2cb   : > { %v1723_v8 = vadd.f32 1.0, %v8927_v15  ;;  %v8013_v15 = vpack.c.bf16 %v1918_v42, %v1911_v34  ;;  %v8025_v34 = vpack.c.bf16 %v1974_v6, %v1967_v62  ;;  %v12576_v42 = vand.u32 4294901760, %v9823_v32  ;;  %v10047_v6 = vld [vmem:[#allocation2 + $0x110] sm:$0xff]  ;;  %v10049_v32 = vld [vmem:[#allocation2 + $0x118] sm:$0xff] }
 0x2cc   : > { %v10043_v62 = vsub.f32 %v2477_v17, %v2569_v47  ;;  %v2575_v59 = vand.u32 4294901760, %v10047_v6  ;;  %v2578_v9 = vand.u32 4294901760, %v10049_v32 }
 0x2cd   : > { %v1724_v55 = vmul.f32 %v1723_v8, %v1716_v36  ;;  %v8028_v27 = vpack.c.bf16 %v12577_v26, %v12576_v42  ;;  %v10112_v8 = vsub.f32 %v10097_v21, %v2590_v22  ;;  %v10133_v42 = vpack.c.bf16 %v2572_v56, %v2569_v47 }
 0x2ce   : > { %v10069_v45 = vsub.f32 %v10049_v32, %v2578_v9  ;;  %v2599_v47 = vand.u32 4294901760, %v10157_v35  ;;  %v10188_v32 = vld [vmem:[#allocation2 + $0x170] sm:$0xff] }
 0x2cf   : > { %v9940_v19 = vand.u32 4294901760, %v1724_v55 }
 0x2d1   : > { %v1899_v53 = vsub.f32 %v1724_v55, %v9940_v19  ;;  %7128 = vmatmul.mubr.f32.vlgmr.msra.gmra.mrb[6].mxu0 %v9940_v19 }
 0x2d2   : > { %7990 = vmatpush3.bf16.msra.mxu0 %v9773_v25  ;;  %7197 = vmatprep.mubr.msk.f32.mxu0 %vm9065_vm0, %v9066_v1 }
 0x2d3   : > { %7991 = vmatprep.subr.bf16.mxu0 %v9064_v0  ;;  %v1900_v48 = vand.u32 4294901760, %v1899_v53 }
 0x2d5   : > { %v1901_v41 = vsub.f32 %v1899_v53, %v1900_v48 }
 0x2d6   : > { %7993 = vmatpush3.bf16.msra.mxu0 %v9808_v5 }
 0x2d7   : > { %7994 = vmatprep.subr.bf16.mxu0 %v9064_v0  ;;  %v1902_v36 = vand.u32 4294901760, %v1901_v41 }
 0x2d9   : > { %7093 = vmatmul.mubr.f32.vlgmr.msra.gmra.mrb[12].mxu1 %v1902_v36  ;;  %v2711_v36 = vand.u32 4294901760, %v10112_v8 }
 0x2da   : > { %7966 = vmatpush3.bf16.msra.mxu1 %v7965_v44  ;;  %7996 = vmatpush3.bf16.msra.mxu0 %v9839_v4  ;;  %v2683_v44 = vand.u32 4294901760, %v10069_v45 }
 0x2db   : > { %7967 = vmatprep.subr.bf16.mxu1 %v9064_v0  ;;  %7997 = vmatprep.subr.bf16.mxu0 %v9064_v0 }
 0x2dc   : > { %7162 = vmatprep.mubr.msk.f32.mxu1 %vm9065_vm0, %v9066_v1  ;;  %v2684_v16 = vsub.f32 %v10069_v45, %v2683_v44 }
 0x2de   : > { %7969 = vmatpush3.bf16.msra.mxu1 %v7968_v29  ;;  %7999 = vmatpush3.bf16.msra.mxu0 %v9869_v60  ;;  %v2581_v29 = vand.u32 4294901760, %v10071_v23  ;;  %v2685_v39 = vand.u32 4294901760, %v2684_v16 }
 0x2df   : > { %7970 = vmatprep.subr.bf16.mxu1 %v9064_v0  ;;  %8000 = vmatprep.subr.bf16.mxu0 %v9064_v0 }
 0x2e2   : > { %7972 = vmatpush3.bf16.msra.mxu1 %v7971_v3  ;;  %8002 = vmatpush3.bf16.msra.mxu0 %v9895_v30 }
 0x2e3   : > { %7973 = vmatprep.subr.bf16.mxu1 %v9064_v0  ;;  %8003 = vmatprep.subr.bf16.mxu0 %v9064_v0 }
 0x2e6   : > { %7975 = vmatpush3.bf16.msra.mxu1 %v7974_v2  ;;  %8005 = vmatpush3.bf16.msra.mxu0 %v9905_v63 }
 0x2e7   : > { %7976 = vmatprep.subr.bf16.mxu1 %v9064_v0  ;;  %8006 = vmatprep.subr.bf16.mxu0 %v9064_v0 }
 0x2ea   : > { %7978 = vmatpush3.bf16.msra.mxu1 %v7977_v52  ;;  %8008 = vmatpush3.bf16.msra.mxu0 %v9910_v7 }
 0x2eb   : > { %7979 = vmatprep.subr.bf16.mxu1 %v9064_v0  ;;  %8009 = vmatprep.subr.bf16.mxu0 %v9064_v0 }
 0x2ee   : > { %7981 = vmatpush3.bf16.msra.mxu1 %v7980_v38  ;;  %8011 = vmatpush3.bf16.msra.mxu0 %v9917_v14  ;;  %v10088_v38 = vsub.f32 %v10071_v23, %v2581_v29  ;;  %v2611_v23 = vand.u32 4294901760, %v10188_v32 }
 0x2ef   : > { %7982 = vmatprep.subr.bf16.mxu1 %v9064_v0  ;;  %8036 = vmatprep.subr.bf16.mxu0 %v9064_v0 }
 0x2f0   : > { %v2690_v13 = vand.u32 4294901760, %v10088_v38 }
 0x2f1   : > { %7198 = vmatmul.mubr.f32.vlgmr.msra.gmra.mrb[8].mxu0 %v1900_v48  ;;  %v10122_v48 = vld [vmem:[#allocation2 + $0x148] sm:$0xff] }
 0x2f2   : > { %7984 = vmatpush3.bf16.msra.mxu1 %v7983_v43  ;;  %8038 = vmatpush3.bf16.msra.mxu0 %v9773_v25  ;;  %v8016_v25 = vpack.c.bf16 %v1932_v10, %v1925_v58  ;;  %v10022_v58 = vpop.f32.mrb[10].mxu1  ;;  %v2691_v55 = vsub.f32 %v10088_v38, %v2690_v13 }
 0x2f3   : > { %7985 = vmatprep.subr.bf16.mxu1 %v9064_v0  ;;  %8039 = vmatprep.subr.bf16.mxu0 %v9064_v0  ;;  %v7059_v10 = vpop.f32.mrb[11].mxu1 }
 0x2f4   : > { %7267 = vmatprep.mubr.msk.f32.mxu0 %vm9065_vm0, %v9066_v1 }
 0x2f6   : > { %7987 = vmatpush3.bf16.msra.mxu1 %v7986_v12  ;;  %8041 = vmatpush3.bf16.msra.mxu0 %v9808_v5  ;;  %v10045_v5 = vsub.f32 %v2478_v20, %v2572_v56  ;;  %v10095_v12 = vld [vmem:[#allocation2 + $0x130] sm:$0xff]  ;;  %v10171_v56 = vpack.c.bf16 %v2578_v9, %v2575_v59 }
 0x2f7   : > { %8012 = vmatprep.subr.bf16.mxu1 %v9064_v0  ;;  %8042 = vmatprep.subr.bf16.mxu0 %v9064_v0  ;;  %v2587_v61 = vand.u32 4294901760, %v10095_v12 }
 0x2f8   : > { %v2669_v49 = vand.u32 4294901760, %v10045_v5 }
 0x2f9   : > { %7163 = vmatmul.mubr.f32.vlgmr.msra.gmra.mrb[14].mxu1 %v1899_v53  ;;  %v10107_v33 = vsub.f32 %v10095_v12, %v2587_v61  ;;  %v10120_v53 = vld [vmem:[#allocation2 + $0x140] sm:$0xff] }
 0x2fa   : > { %8014 = vmatpush3.bf16.msra.mxu1 %v8013_v15  ;;  %8044 = vmatpush3.bf16.msra.mxu0 %v9839_v4  ;;  %v2662_v4 = vand.u32 4294901760, %v10043_v62  ;;  %v2670_v51 = vsub.f32 %v10045_v5, %v2669_v49  ;;  %v2593_v15 = vand.u32 4294901760, %v10120_v53 }
 0x2fb   : > { %8015 = vmatprep.subr.bf16.mxu1 %v9064_v0  ;;  %8045 = vmatprep.subr.bf16.mxu0 %v9064_v0  ;;  %v2704_v41 = vand.u32 4294901760, %v10107_v33 }
 0x2fc   : > { %7232 = vmatprep.mubr.msk.f32.mxu1 %vm9065_vm0, %v9066_v1  ;;  %v2663_v40 = vsub.f32 %v10043_v62, %v2662_v4  ;;  %v10144_v10 = vsub.f32 %v10120_v53, %v2593_v15 }
 0x2fd   : > { %v2705_v26 = vsub.f32 %v10107_v33, %v2704_v41 }
 0x2fe   : > { %8017 = vmatpush3.bf16.msra.mxu1 %v8016_v25  ;;  %8047 = vmatpush3.bf16.msra.mxu0 %v9869_v60  ;;  %v10064_v60 = vsub.f32 %v10047_v6, %v2575_v59  ;;  %v2596_v25 = vand.u32 4294901760, %v10122_v48  ;;  %v2718_v20 = vand.u32 4294901760, %v10144_v10  ;;  %v10186_v6 = vsub.f32 %v10157_v35, %v2599_v47 }
 0x2ff   : > { %8018 = vmatprep.subr.bf16.mxu1 %v9064_v0  ;;  %8048 = vmatprep.subr.bf16.mxu0 %v9064_v0  ;;  %v8109_v35 = vpack.c.bf16 %v10045_v5, %v10043_v62  ;;  %v8166_v5 = vpack.c.bf16 %v2711_v36, %v2704_v41  ;;  %v3228_v41 = vld [vmem:[#allocation2 + $0x180] sm:$0xff] }
 0x302   : > { %8020 = vmatpush3.bf16.msra.mxu1 %v8019_v11  ;;  %8050 = vmatpush3.bf16.msra.mxu0 %v9895_v30  ;;  %v10073_v30 = vld [vmem:[#allocation2 + $0x128] sm:$0xff] }
 0x303   : > { %8021 = vmatprep.subr.bf16.mxu1 %v9064_v0  ;;  %8051 = vmatprep.subr.bf16.mxu0 %v9064_v0  ;;  %v2584_v3 = vand.u32 4294901760, %v10073_v30  ;;  %v5961_v11 = vld [vmem:[%s12529_s5 + $0x8] sm:$0xf] }
 0x305   : > { %v10093_v43 = vsub.f32 %v10073_v30, %v2584_v3 }
 0x306   : > { %8023 = vmatpush3.bf16.msra.mxu1 %v8022_v24  ;;  %8053 = vmatpush3.bf16.msra.mxu0 %v9905_v63  ;;  %v2664_v63 = vand.u32 4294901760, %v2663_v40  ;;  %v2692_v24 = vand.u32 4294901760, %v2691_v55  ;;  %v12555_v55 = vand.u32 4294901760, %v10186_v6 }
 0x307   : > { %8024 = vmatprep.subr.bf16.mxu1 %v9064_v0  ;;  %8054 = vmatprep.subr.bf16.mxu0 %v9064_v0  ;;  %v2697_v57 = vand.u32 4294901760, %v10093_v43 }
 0x308   : > { %v2733_v30 = vsub.f32 %v10186_v6, %v12555_v55 }
 0x309   : > { %v8163_v62 = vpack.c.bf16 %v2697_v57, %v2690_v13 }
 0x30a   : > { %8026 = vmatpush3.bf16.msra.mxu1 %v8025_v34  ;;  %8056 = vmatpush3.bf16.msra.mxu0 %v9910_v7  ;;  %v2671_v7 = vand.u32 4294901760, %v2670_v51  ;;  %v10174_v51 = vld [vmem:[#allocation2 + $0x160] sm:$0xff] }
 0x30b   : > { %8027 = vmatprep.subr.bf16.mxu1 %v9064_v0  ;;  %8057 = vmatprep.subr.bf16.mxu0 %v9064_v0  ;;  %v2605_v9 = vand.u32 4294901760, %v10174_v51 }
 0x30c   : > { %v8085_v2 = vpack.c.bf16 %v2671_v7, %v2664_v63  ;;  %v10176_v63 = vld [vmem:[#allocation2 + $0x168] sm:$0xff] }
 0x30d   : > { %v2608_v16 = vand.u32 4294901760, %v10176_v63 }
 0x30e   : > { %8029 = vmatpush3.bf16.msra.mxu1 %v8028_v27  ;;  %8059 = vmatpush3.bf16.msra.mxu0 %v9917_v14  ;;  %v2676_v14 = vand.u32 4294901760, %v10064_v60  ;;  %v2712_v27 = vsub.f32 %v10112_v8, %v2711_v36  ;;  %v3229_v36 = vld [vmem:[#allocation2 + $0x188] sm:$0xff] }
 0x30f   : > { %8030 = vmatprep.subr.bf16.mxu1 %v9064_v0  ;;  %8084 = vmatprep.subr.bf16.mxu0 %v9064_v0 }
 0x310   : > { %v2677_v52 = vsub.f32 %v10064_v60, %v2676_v14  ;;  %v2713_v17 = vand.u32 4294901760, %v2712_v27 }
 0x311   : > { %7268 = vmatmul.mubr.f32.vlgmr.msra.gmra.mrb[10].mxu0 %v9940_v19 }
 0x312   : > { %8032 = vmatpush3.bf16.msra.mxu1 %v8031_v28  ;;  %7342 = vmatprep.mubr.msk.f32.mxu0 %vm9065_vm0, %v9066_v1  ;;  %v2678_v18 = vand.u32 4294901760, %v2677_v52  ;;  %v10155_v28 = vsub.f32 %v10122_v48, %v2596_v25  ;;  %v2602_v52 = vand.u32 4294901760, %v10159_v46 }
 0x313   : > { %8033 = vmatprep.subr.bf16.mxu1 %v9064_v0  ;;  %8086 = vmatpush3.bf16.msra.mxu0 %v8085_v2  ;;  %v2719_v2 = vsub.f32 %v10144_v10, %v2718_v20 }
 0x314   : > { %8087 = vmatprep.subr.bf16.mxu0 %v9064_v0  ;;  %v8088_v54 = vpack.c.bf16 %v2685_v39, %v2678_v18  ;;  %v2725_v40 = vand.u32 4294901760, %v10155_v28  ;;  %v2492_v18 = vld [vmem:[#allocation2 + $0x178] sm:$0xff]  ;;  %v10200_v39 = vpack.c.bf16 %v2584_v3, %v2581_v29  ;;  %v10264_v53 = vpack.c.bf16 %v2602_v52, %v2599_v47 }
 0x315   : > { %v2614_v3 = vand.u32 4294901760, %v2492_v18  ;;  %v8112_v47 = vpack.c.bf16 %v10069_v45, %v10064_v60 }
 0x316   : > { %8035 = vmatpush3.bf16.msra.mxu1 %v8034_v50  ;;  %v2706_v50 = vand.u32 4294901760, %v2705_v26  ;;  %v2726_v59 = vsub.f32 %v10155_v28, %v2725_v40 }
 0x317   : > { %7270 = vmatprep.subr.mxu1 %v9066_v1  ;;  %8089 = vmatpush3.bf16.msra.mxu0 %v8088_v54  ;;  %v2720_v54 = vand.u32 4294901760, %v2719_v2 }
 0x318   : > { %8090 = vmatprep.subr.bf16.mxu0 %v9064_v0  ;;  %v8094_v7 = vpack.c.bf16 %v2713_v17, %v2706_v50  ;;  %v10229_v50 = vpack.c.bf16 %v2590_v22, %v2587_v61  ;;  %v2734_v17 = vand.u32 4294901760, %v2733_v30 }
 0x319   : > { %7233 = vmatmul.mubr.f32.vlgmr.msra.gmra.mrb[16].mxu1 %v9940_v19  ;;  %v2698_v19 = vsub.f32 %v10093_v43, %v2697_v57 }
 0x31a   : > { %7272 = vmatprep.mubr.msk.f32.mxu1 %vm9065_vm0, %v9066_v1  ;;  %7271 = vmatpush3.msk.msra.mxu1 %vm993_vm1, %v5961_v11  ;;  %v2727_v11 = vand.u32 4294901760, %v2726_v59 }
 0x31b   : > { %v2699_v34 = vand.u32 4294901760, %v2698_v19  ;;  %8060 = vmatprep.subr.bf16.mxu1 %v9064_v0  ;;  %v10204_v19 = vsub.f32 %v10159_v46, %v2602_v52  ;;  %v10222_v46 = vsub.f32 %v10188_v32, %v2611_v23  ;;  %v8115_v52 = vpack.c.bf16 %v10093_v43, %v10088_v38 }
 0x31c   : > { %v8097_v26 = vpack.c.bf16 %v2727_v11, %v2720_v54  ;;  %v10254_v54 = vpack.c.bf16 %v2596_v25, %v2593_v15  ;;  %v10269_v15 = vpack.c.bf16 %v2608_v16, %v2605_v9  ;;  %v10275_v25 = vpack.c.bf16 %v2614_v3, %v2611_v23 }
 0x31d   : > { %7273 = vmatmul.mubr.msk.f32.vlgmr.msra.gmra.mrb[18].mxu1 %vm989_vm3, %v10147_v31  ;;  %v8091_v37 = vpack.c.bf16 %v2699_v34, %v2692_v24  ;;  %v10208_v24 = vsub.f32 %v10174_v51, %v2605_v9  ;;  %v10211_v34 = vsub.f32 %v10176_v63, %v2608_v16  ;;  %v12554_v29 = vand.u32 4294901760, %v10204_v19 }
 0x31e   : > { %8062 = vmatpush3.bf16.msra.mxu1 %v10133_v42  ;;  %7307 = vmatprep.mubr.msk.f32.mxu1 %vm9065_vm0, %v9066_v1  ;;  %v10234_v63 = vsub.f32 %v2492_v18, %v2614_v3  ;;  %v12551_v21 = vand.u32 4294901760, %v10222_v46  ;;  %v8118_v9 = vpack.c.bf16 %v10112_v8, %v10107_v33  ;;  %v8121_v23 = vpack.c.bf16 %v10155_v28, %v10144_v10 }
 0x31f   : > { %8092 = vmatpush3.bf16.msra.mxu0 %v8091_v37  ;;  %8063 = vmatprep.subr.bf16.mxu1 %v9064_v0  ;;  %v12553_v27 = vand.u32 4294901760, %v10208_v24  ;;  %v12552_v37 = vand.u32 4294901760, %v10211_v34  ;;  %v2740_v51 = vsub.f32 %v10204_v19, %v12554_v29  ;;  %v12583_v60 = vand.u32 4294901760, %v10204_v19 }
 0x320   : > { %8093 = vmatprep.subr.bf16.mxu0 %v9064_v0  ;;  %v12550_v22 = vand.u32 4294901760, %v10234_v63  ;;  %v2761_v59 = vsub.f32 %v10222_v46, %v12551_v21  ;;  %v12584_v38 = vand.u32 4294901760, %v10208_v24  ;;  %v12585_v43 = vand.u32 4294901760, %v10211_v34 }
 0x321   : > { %v2754_v12 = vsub.f32 %v10211_v34, %v12552_v37  ;;  %v2741_v61 = vand.u32 4294901760, %v2740_v51  ;;  %v12586_v57 = vand.u32 4294901760, %v10222_v46  ;;  %v12587_v33 = vand.u32 4294901760, %v10234_v63 }
 0x322   : > { %8065 = vmatpush3.bf16.msra.mxu1 %v10171_v56  ;;  %v2768_v11 = vsub.f32 %v10234_v63, %v12550_v22  ;;  %v8175_v13 = vpack.c.bf16 %v12585_v43, %v12584_v38  ;;  %v3320_v10 = vand.u32 4294901760, %v3228_v41  ;;  %v3323_v28 = vand.u32 4294901760, %v3229_v36 }
 0x323   : > { %8095 = vmatpush3.bf16.msra.mxu0 %v8094_v7  ;;  %8066 = vmatprep.subr.bf16.mxu1 %v9064_v0  ;;  %v2747_v7 = vsub.f32 %v10208_v24, %v12553_v27  ;;  %v2755_v32 = vand.u32 4294901760, %v2754_v12  ;;  %v8100_v18 = vpack.c.bf16 %v2741_v61, %v2734_v17  ;;  %v8124_v17 = vpack.c.bf16 %v10204_v19, %v10186_v6 }
 0x324   : > { %8096 = vmatprep.subr.bf16.mxu0 %v9064_v0  ;;  %v2769_v51 = vand.u32 4294901760, %v2768_v11  ;;  %v8178_v8 = vpack.c.bf16 %v12587_v33, %v12586_v57  ;;  %v10519_v57 = vld [vmem:[#allocation2 + $0x1d0] sm:$0xff]  ;;  %v10521_v33 = vld [vmem:[#allocation2 + $0x1d8] sm:$0xff] }
 0x325   : > { %v2748_v2 = vand.u32 4294901760, %v2747_v7 }
 0x326   : > { %8068 = vmatpush3.bf16.msra.mxu1 %v10200_v39 }
 0x327   : > { %8098 = vmatpush3.bf16.msra.mxu0 %v8097_v26  ;;  %8069 = vmatprep.subr.bf16.mxu1 %v9064_v0  ;;  %v8103_v30 = vpack.c.bf16 %v2755_v32, %v2748_v2  ;;  %v2762_v26 = vand.u32 4294901760, %v2761_v59  ;;  %v8127_v2 = vpack.c.bf16 %v10211_v34, %v10208_v24  ;;  %v8130_v59 = vpack.c.bf16 %v10234_v63, %v10222_v46 }
 0x328   : > { %8099 = vmatprep.subr.bf16.mxu0 %v9064_v0 }
 0x329   : > { %v8106_v48 = vpack.c.bf16 %v2769_v51, %v2762_v26 }
 0x32a   : > { %8071 = vmatpush3.bf16.msra.mxu1 %v10229_v50 }
 0x32b   : > { %8072 = vmatprep.subr.bf16.mxu1 %v9064_v0  ;;  %8101 = vmatpush3.bf16.msra.mxu0 %v8100_v18 }
 0x32c   : > { %8102 = vmatprep.subr.bf16.mxu0 %v9064_v0 }
 0x32e   : > { %8074 = vmatpush3.bf16.msra.mxu1 %v10254_v54 }
 0x32f   : > { %8075 = vmatprep.subr.bf16.mxu1 %v9064_v0  ;;  %8104 = vmatpush3.bf16.msra.mxu0 %v8103_v30 }
 0x330   : > { %8105 = vmatprep.subr.bf16.mxu0 %v9064_v0 }
 0x332   : > { %8077 = vmatpush3.bf16.msra.mxu1 %v10264_v53 }
 0x333   : > { %8078 = vmatprep.subr.bf16.mxu1 %v9064_v0  ;;  %8107 = vmatpush3.bf16.msra.mxu0 %v8106_v48 }
 0x334   : > { %8132 = vmatprep.subr.bf16.mxu0 %v9064_v0 }
 0x336   : > { %8080 = vmatpush3.bf16.msra.mxu1 %v10269_v15 }
 0x337   : > { %8081 = vmatprep.subr.bf16.mxu1 %v9064_v0 }
 0x33a   : > { %8083 = vmatpush3.bf16.msra.mxu1 %v10275_v25 }
 0x33b   : > { %8108 = vmatprep.subr.bf16.mxu1 %v9064_v0 }
 0x3a4   : > { %v2055_v16 = vpop.f32.mrb[6].mxu0 }
 0x3a5   : > { %v7129_v3 = vpop.f32.mrb[7].mxu0 }
 0x3ac   : > { %v1904_v7 = vpop.f32.mrb[12].mxu1 }
 0x3ad   : > { %v1905_v12 = vadd.f32 %v1904_v7, %v10022_v58  ;;  %v7094_v61 = vpop.f32.mrb[13].mxu1  ;;  %v5960_v58 = vld [vmem:[%s12530_s6 + $0x1] ss:$0 sm:$0xff] }
 0x3af   : > { %v2056_v32 = vadd.f32 %v2055_v16, %v1905_v12 }
 0x3c4   : > { %v2248_v18 = vpop.f32.mrb[8].mxu0 }
 0x3c5   : > { %v7199_v11 = vpop.f32.mrb[9].mxu0 }
 0x3cc   : > { %v2159_v30 = vpop.f32.mrb[14].mxu1 }
 0x3cd   : > { %v2160_v26 = vadd.f32 %v2159_v30, %v2056_v32  ;;  %v7164_v51 = vpop.f32.mrb[15].mxu1 }
 0x3cf   : > { %v2249_v48 = vadd.f32 %v2248_v18, %v2160_v26 }
 0x3e4   : > { %v2454_v3 = vpop.f32.mrb[10].mxu0 }
 0x3e5   : > { %v7269_v22 = vpop.f32.mrb[11].mxu0 }
 0x3ec   : > { %v2367_v21 = vpop.f32.mrb[16].mxu1 }
 0x3ed   : > { %v2368_v37 = vadd.f32 %v2367_v21, %v2249_v48  ;;  %v7234_v27 = vpop.f32.mrb[17].mxu1  ;;  %v8157_v21 = vpack.c.bf16 %v2669_v49, %v2662_v4  ;;  %v8169_v4 = vpack.c.bf16 %v2725_v40, %v2718_v20  ;;  %v12582_v49 = vand.u32 4294901760, %v10186_v6  ;;  %v10412_v40 = vld [vmem:[#allocation2 + $0x190] sm:$0xff]  ;;  %v10414_v6 = vld [vmem:[#allocation2 + $0x198] sm:$0xff] }
 0x3ee   : > { %v10408_v20 = vsub.f32 %v3228_v41, %v3320_v10  ;;  %v3326_v24 = vand.u32 4294901760, %v10412_v40  ;;  %v3329_v34 = vand.u32 4294901760, %v10414_v6 }
 0x3ef   : > { %v2455_v7 = vadd.f32 %v2454_v3, %v2368_v37  ;;  %v8172_v45 = vpack.c.bf16 %v12583_v60, %v12582_v49  ;;  %v10460_v3 = vld [vmem:[#allocation2 + $0x1b0] sm:$0xff]  ;;  %v10498_v60 = vpack.c.bf16 %v3323_v28, %v3320_v10 }
 0x3f0   : > { %v10429_v63 = vsub.f32 %v10412_v40, %v3326_v24  ;;  %v10533_v10 = vpack.c.bf16 %v3329_v34, %v3326_v24 }
 0x3f1   : > { %v2466_v16 = vadd.f32 %v5960_v58, %v2455_v7  ;;  %v10462_v58 = vld [vmem:[#allocation2 + $0x1b8] sm:$0xff] }
 0x3f3   : > { %v2468_v12 = vmul.f32 0.044715, %v2466_v16  ;;  %v2467_v30 = vmul.f32 0.5, %v2466_v16 }
 0x3f5   : > { %v2469_v61 = vmul.f32 %v2468_v12, %v2466_v16  ;;  %v3338_v12 = vand.u32 4294901760, %v10460_v3 }
 0x3f7   : > { %v2470_v29 = vmul.f32 %v2469_v61, %v2466_v16  ;;  %v3341_v61 = vand.u32 4294901760, %v10462_v58 }
 0x3f9   : > { %v2471_v55 = vadd.f32 %v2470_v29, %v2466_v16 }
 0x3fb   : > { %v2472_v11 = vmul.f32 0.7978846, %v2471_v55 }
 0x3fd   : > { %8928 = vtanh.f32 %v2472_v11 }
 0x407   : > { %v8929_v32 = vpop.eup %8928 }
 0x408   : > { %v2474_v18 = vadd.f32 1.0, %v8929_v32 }
 0x40a   : > { %v2475_v26 = vmul.f32 %v2474_v18, %v2467_v30  ;;  %v10472_v18 = vsub.f32 %v10460_v3, %v3338_v12 }
 0x40c   : > { %v10299_v22 = vand.u32 4294901760, %v2475_v26 }
 0x40e   : > { %v2650_v27 = vsub.f32 %v2475_v26, %v10299_v22  ;;  %7343 = vmatmul.mubr.f32.vlgmr.msra.gmra.mrb[12].mxu0 %v10299_v22  ;;  %v10477_v26 = vsub.f32 %v10462_v58, %v3341_v61 }
 0x40f   : > { %8134 = vmatpush3.bf16.msra.mxu0 %v10133_v42  ;;  %7412 = vmatprep.mubr.msk.f32.mxu0 %vm9065_vm0, %v9066_v1 }
 0x410   : > { %8135 = vmatprep.subr.bf16.mxu0 %v9064_v0  ;;  %v2651_v29 = vand.u32 4294901760, %v2650_v27 }
 0x412   : > { %v2652_v55 = vsub.f32 %v2650_v27, %v2651_v29 }
 0x413   : > { %8137 = vmatpush3.bf16.msra.mxu0 %v10171_v56 }
 0x414   : > { %8138 = vmatprep.subr.bf16.mxu0 %v9064_v0  ;;  %v2653_v37 = vand.u32 4294901760, %v2652_v55  ;;  %v10487_v55 = vld [vmem:[#allocation2 + $0x1c8] sm:$0xff] }
 0x416   : > { %7308 = vmatmul.mubr.f32.vlgmr.msra.gmra.mrb[20].mxu1 %v2653_v37  ;;  %v3455_v37 = vand.u32 4294901760, %v10472_v18 }
 0x417   : > { %8110 = vmatpush3.bf16.msra.mxu1 %v8109_v35  ;;  %8140 = vmatpush3.bf16.msra.mxu0 %v10200_v39 }
 0x418   : > { %8111 = vmatprep.subr.bf16.mxu1 %v9064_v0  ;;  %8141 = vmatprep.subr.bf16.mxu0 %v9064_v0 }
 0x419   : > { %7377 = vmatprep.mubr.msk.f32.mxu1 %vm9065_vm0, %v9066_v1 }
 0x41b   : > { %8113 = vmatpush3.bf16.msra.mxu1 %v8112_v47  ;;  %8143 = vmatpush3.bf16.msra.mxu0 %v10229_v50  ;;  %v3427_v47 = vand.u32 4294901760, %v10429_v63 }
 0x41c   : > { %8114 = vmatprep.subr.bf16.mxu1 %v9064_v0  ;;  %8144 = vmatprep.subr.bf16.mxu0 %v9064_v0 }
 0x41f   : > { %8116 = vmatpush3.bf16.msra.mxu1 %v8115_v52  ;;  %8146 = vmatpush3.bf16.msra.mxu0 %v10254_v54 }
 0x420   : > { %8117 = vmatprep.subr.bf16.mxu1 %v9064_v0  ;;  %8147 = vmatprep.subr.bf16.mxu0 %v9064_v0 }
 0x423   : > { %8119 = vmatpush3.bf16.msra.mxu1 %v8118_v9  ;;  %8149 = vmatpush3.bf16.msra.mxu0 %v10264_v53 }
 0x424   : > { %8120 = vmatprep.subr.bf16.mxu1 %v9064_v0  ;;  %8150 = vmatprep.subr.bf16.mxu0 %v9064_v0 }
 0x427   : > { %8122 = vmatpush3.bf16.msra.mxu1 %v8121_v23  ;;  %8152 = vmatpush3.bf16.msra.mxu0 %v10269_v15 }
 0x428   : > { %8123 = vmatprep.subr.bf16.mxu1 %v9064_v0  ;;  %8153 = vmatprep.subr.bf16.mxu0 %v9064_v0 }
 0x42b   : > { %8125 = vmatpush3.bf16.msra.mxu1 %v8124_v17  ;;  %8155 = vmatpush3.bf16.msra.mxu0 %v10275_v25 }
 0x42c   : > { %8126 = vmatprep.subr.bf16.mxu1 %v9064_v0  ;;  %8180 = vmatprep.subr.bf16.mxu0 %v9064_v0 }
 0x42e   : > { %7413 = vmatmul.mubr.f32.vlgmr.msra.gmra.mrb[14].mxu0 %v2651_v29  ;;  %v10485_v29 = vld [vmem:[#allocation2 + $0x1c0] sm:$0xff] }
 0x42f   : > { %8128 = vmatpush3.bf16.msra.mxu1 %v8127_v2  ;;  %8182 = vmatpush3.bf16.msra.mxu0 %v10133_v42  ;;  %v8160_v42 = vpack.c.bf16 %v2683_v44, %v2676_v14  ;;  %v10387_v14 = vpop.f32.mrb[18].mxu1  ;;  %v3428_v2 = vsub.f32 %v10429_v63, %v3427_v47 }
 0x430   : > { %8129 = vmatprep.subr.bf16.mxu1 %v9064_v0  ;;  %8183 = vmatprep.subr.bf16.mxu0 %v9064_v0  ;;  %v7274_v44 = vpop.f32.mrb[19].mxu1 }
 0x431   : > { %7482 = vmatprep.mubr.msk.f32.mxu0 %vm9065_vm0, %v9066_v1  ;;  %v3429_v7 = vand.u32 4294901760, %v3428_v2 }
 0x433   : > { %8131 = vmatpush3.bf16.msra.mxu1 %v8130_v59  ;;  %8185 = vmatpush3.bf16.msra.mxu0 %v10171_v56  ;;  %v10410_v56 = vsub.f32 %v3229_v36, %v3323_v28 }
 0x434   : > { %8156 = vmatprep.subr.bf16.mxu1 %v9064_v0  ;;  %8186 = vmatprep.subr.bf16.mxu0 %v9064_v0 }
 0x435   : > { %v3420_v19 = vand.u32 4294901760, %v10410_v56 }
 0x436   : > { %7378 = vmatmul.mubr.f32.vlgmr.msra.gmra.mrb[22].mxu1 %v2650_v27 }
 0x437   : > { %8158 = vmatpush3.bf16.msra.mxu1 %v8157_v21  ;;  %8188 = vmatpush3.bf16.msra.mxu0 %v10200_v39  ;;  %v3413_v39 = vand.u32 4294901760, %v10408_v20  ;;  %v3462_v21 = vand.u32 4294901760, %v10477_v26 }
 0x438   : > { %8159 = vmatprep.subr.bf16.mxu1 %v9064_v0  ;;  %8189 = vmatprep.subr.bf16.mxu0 %v9064_v0 }
 0x439   : > { %7447 = vmatprep.mubr.msk.f32.mxu1 %vm9065_vm0, %v9066_v1  ;;  %v3414_v46 = vsub.f32 %v10408_v20, %v3413_v39  ;;  %v3463_v44 = vsub.f32 %v10477_v26, %v3462_v21 }
 0x43b   : > { %8161 = vmatpush3.bf16.msra.mxu1 %v8160_v42  ;;  %8191 = vmatpush3.bf16.msra.mxu0 %v10229_v50  ;;  %v3421_v50 = vsub.f32 %v10410_v56, %v3420_v19  ;;  %v3344_v42 = vand.u32 4294901760, %v10485_v29  ;;  %v3464_v41 = vand.u32 4294901760, %v3463_v44 }
 0x43c   : > { %8162 = vmatprep.subr.bf16.mxu1 %v9064_v0  ;;  %8192 = vmatprep.subr.bf16.mxu0 %v9064_v0 }
 0x43d   : > { %v3422_v35 = vand.u32 4294901760, %v3421_v50  ;;  %v10509_v38 = vsub.f32 %v10485_v29, %v3344_v42  ;;  %v10538_v50 = vld [vmem:[#allocation2 + $0x1e8] sm:$0xff] }
 0x43e   : > { %v3359_v2 = vand.u32 4294901760, %v10538_v50 }
 0x43f   : > { %8164 = vmatpush3.bf16.msra.mxu1 %v8163_v62  ;;  %8194 = vmatpush3.bf16.msra.mxu0 %v10254_v54  ;;  %v10434_v54 = vsub.f32 %v10414_v6, %v3329_v34  ;;  %v3347_v62 = vand.u32 4294901760, %v10487_v55  ;;  %v3469_v36 = vand.u32 4294901760, %v10509_v38  ;;  %v10550_v6 = vld [vmem:[#allocation2 + $0x1f0] sm:$0xff] }
 0x440   : > { %8165 = vmatprep.subr.bf16.mxu1 %v9064_v0  ;;  %8195 = vmatprep.subr.bf16.mxu0 %v9064_v0 }
 0x441   : > { %v3434_v52 = vand.u32 4294901760, %v10434_v54 }
 0x443   : > { %8167 = vmatpush3.bf16.msra.mxu1 %v8166_v5  ;;  %8197 = vmatpush3.bf16.msra.mxu0 %v10264_v53  ;;  %v10436_v53 = vld [vmem:[#allocation2 + $0x1a0] sm:$0xff]  ;;  %v3435_v59 = vsub.f32 %v10434_v54, %v3434_v52  ;;  %v5966_v5 = vld [vmem:[%s12529_s5 + $0xc] sm:$0xf] }
 0x444   : > { %8168 = vmatprep.subr.bf16.mxu1 %v9064_v0  ;;  %8198 = vmatprep.subr.bf16.mxu0 %v9064_v0  ;;  %v3332_v9 = vand.u32 4294901760, %v10436_v53 }
 0x445   : > { %v3436_v16 = vand.u32 4294901760, %v3435_v59  ;;  %v3243_v59 = vld [vmem:[#allocation2 + $0x1f8] sm:$0xff] }
 0x446   : > { %v10453_v51 = vsub.f32 %v10436_v53, %v3332_v9  ;;  %v3362_v53 = vand.u32 4294901760, %v10550_v6 }
 0x447   : > { %8170 = vmatpush3.bf16.msra.mxu1 %v8169_v4  ;;  %8200 = vmatpush3.bf16.msra.mxu0 %v10269_v15  ;;  %v10438_v15 = vld [vmem:[#allocation2 + $0x1a8] sm:$0xff]  ;;  %v8232_v30 = vpack.c.bf16 %v3436_v16, %v3429_v7 }
 0x448   : > { %8171 = vmatprep.subr.bf16.mxu1 %v9064_v0  ;;  %8201 = vmatprep.subr.bf16.mxu0 %v9064_v0  ;;  %v3335_v23 = vand.u32 4294901760, %v10438_v15  ;;  %v3441_v11 = vand.u32 4294901760, %v10453_v51 }
 0x44a   : > { %v10458_v48 = vsub.f32 %v10438_v15, %v3335_v23  ;;  %v10562_v7 = vpack.c.bf16 %v3335_v23, %v3332_v9  ;;  %v3365_v23 = vand.u32 4294901760, %v3243_v59 }
 0x44b   : > { %8173 = vmatpush3.bf16.msra.mxu1 %v8172_v45  ;;  %8203 = vmatpush3.bf16.msra.mxu0 %v10275_v25  ;;  %v3415_v25 = vand.u32 4294901760, %v3414_v46  ;;  %v3456_v45 = vsub.f32 %v10472_v18, %v3455_v37  ;;  %v10536_v46 = vld [vmem:[#allocation2 + $0x1e0] sm:$0xff] }
 0x44c   : > { %8174 = vmatprep.subr.bf16.mxu1 %v9064_v0  ;;  %8228 = vmatprep.subr.bf16.mxu0 %v9064_v0  ;;  %v3448_v32 = vand.u32 4294901760, %v10458_v48  ;;  %v3356_v34 = vand.u32 4294901760, %v10536_v46 }
 0x44d   : > { %v8229_v17 = vpack.c.bf16 %v3422_v35, %v3415_v25  ;;  %v3470_v35 = vsub.f32 %v10509_v38, %v3469_v36 }
 0x44e   : > { %7483 = vmatmul.mubr.f32.vlgmr.msra.gmra.mrb[16].mxu0 %v10299_v22  ;;  %v3449_v27 = vsub.f32 %v10458_v48, %v3448_v32 }
 0x44f   : > { %8176 = vmatpush3.bf16.msra.mxu1 %v8175_v13  ;;  %7557 = vmatprep.mubr.msk.f32.mxu0 %vm9065_vm0, %v9066_v1  ;;  %v10517_v13 = vsub.f32 %v10487_v55, %v3347_v62  ;;  %v3471_v16 = vand.u32 4294901760, %v3470_v35 }
 0x450   : > { %8177 = vmatprep.subr.bf16.mxu1 %v9064_v0  ;;  %8230 = vmatpush3.bf16.msra.mxu0 %v8229_v17  ;;  %v3450_v49 = vand.u32 4294901760, %v3449_v27  ;;  %v3353_v17 = vand.u32 4294901760, %v10521_v33 }
 0x451   : > { %8231 = vmatprep.subr.bf16.mxu0 %v9064_v0  ;;  %v3476_v28 = vand.u32 4294901760, %v10517_v13 }
 0x453   : > { %8179 = vmatpush3.bf16.msra.mxu1 %v8178_v8  ;;  %v3457_v8 = vand.u32 4294901760, %v3456_v45  ;;  %v3477_v24 = vsub.f32 %v10517_v13, %v3476_v28 }
 0x454   : > { %7485 = vmatprep.subr.mxu1 %v9066_v1  ;;  %8233 = vmatpush3.bf16.msra.mxu0 %v8232_v30 }
 0x455   : > { %8234 = vmatprep.subr.bf16.mxu0 %v9064_v0  ;;  %v8238_v25 = vpack.c.bf16 %v3464_v41, %v3457_v8  ;;  %v3478_v27 = vand.u32 4294901760, %v3477_v24 }
 0x456   : > { %7448 = vmatmul.mubr.f32.vlgmr.msra.gmra.mrb[24].mxu1 %v10299_v22  ;;  %v3442_v22 = vsub.f32 %v10453_v51, %v3441_v11 }
 0x457   : > { %7487 = vmatprep.mubr.msk.f32.mxu1 %vm9065_vm0, %v9066_v1  ;;  %7486 = vmatpush3.msk.msra.mxu1 %vm993_vm1, %v5966_v5  ;;  %v10570_v5 = vsub.f32 %v10536_v46, %v3356_v34  ;;  %v10596_v46 = vsub.f32 %v3243_v59, %v3365_v23  ;;  %v10616_v59 = vpack.c.bf16 %v3347_v62, %v3344_v42 }
 0x458   : > { %v3443_v4 = vand.u32 4294901760, %v3442_v22  ;;  %8204 = vmatprep.subr.bf16.mxu1 %v9064_v0  ;;  %v10566_v22 = vsub.f32 %v10521_v33, %v3353_v17  ;;  %v10591_v33 = vpack.c.bf16 %v3341_v61, %v3338_v12  ;;  %v10631_v42 = vpack.c.bf16 %v3359_v2, %v3356_v34 }
 0x459   : > { %v12559_v45 = vand.u32 4294901760, %v10570_v5  ;;  %v12556_v61 = vand.u32 4294901760, %v10596_v46  ;;  %v10637_v62 = vpack.c.bf16 %v3365_v23, %v3362_v53  ;;  %v8262_v34 = vpack.c.bf16 %v10477_v26, %v10472_v18  ;;  %v3970_v26 = vld [vmem:[%s12531_s7 + $0x8] sm:$0xff] }
 0x45a   : > { %7488 = vmatmul.mubr.msk.f32.vlgmr.msra.gmra.mrb[26].mxu1 %vm989_vm3, %v10147_v31  ;;  %v8235_v43 = vpack.c.bf16 %v3450_v49, %v3443_v4  ;;  %v3350_v31 = vand.u32 4294901760, %v10519_v57  ;;  %v10573_v4 = vsub.f32 %v10538_v50, %v3359_v2  ;;  %v12560_v9 = vand.u32 4294901760, %v10566_v22 }
 0x45b   : > { %8206 = vmatpush3.bf16.msra.mxu1 %v10498_v60  ;;  %7522 = vmatprep.mubr.msk.f32.mxu1 %vm9065_vm0, %v9066_v1  ;;  %v8241_v49 = vpack.c.bf16 %v3478_v27, %v3471_v16  ;;  %v3498_v50 = vsub.f32 %v10570_v5, %v12559_v45  ;;  %v3519_v16 = vsub.f32 %v10596_v46, %v12556_v61 }
 0x45c   : > { %8236 = vmatpush3.bf16.msra.mxu0 %v8235_v43  ;;  %8207 = vmatprep.subr.bf16.mxu1 %v9064_v0  ;;  %v10548_v40 = vsub.f32 %v10519_v57, %v3350_v31  ;;  %v12558_v44 = vand.u32 4294901760, %v10573_v4  ;;  %v10584_v43 = vsub.f32 %v10550_v6, %v3362_v53  ;;  %v3491_v41 = vsub.f32 %v10566_v22, %v12560_v9 }
 0x45d   : > { %8237 = vmatprep.subr.bf16.mxu0 %v9064_v0  ;;  %v10626_v29 = vpack.c.bf16 %v3353_v17, %v3350_v31  ;;  %v8253_v57 = vpack.c.bf16 %v10410_v56, %v10408_v20  ;;  %v8256_v31 = vpack.c.bf16 %v10434_v54, %v10429_v63  ;;  %v8259_v17 = vpack.c.bf16 %v10458_v48, %v10453_v51 }
 0x45e   : > { %v3483_v30 = vand.u32 4294901760, %v10548_v40  ;;  %v3505_v3 = vsub.f32 %v10573_v4, %v12558_v44  ;;  %v12557_v58 = vand.u32 4294901760, %v10584_v43  ;;  %v3492_v12 = vand.u32 4294901760, %v3491_v41 }
 0x45f   : > { %8209 = vmatpush3.bf16.msra.mxu1 %v10533_v10  ;;  %v8265_v53 = vpack.c.bf16 %v10517_v13, %v10509_v38  ;;  %v8307_v20 = vpack.c.bf16 %v3448_v32, %v3441_v11  ;;  %v8310_v56 = vpack.c.bf16 %v3462_v21, %v3455_v37  ;;  %v12590_v51 = vand.u32 4294901760, %v10573_v4  ;;  %v3986_v37 = vld [vmem:[%s12531_s7 + $0x88] sm:$0xff]  ;;  %v3972_v21 = vld [vmem:[%s12531_s7 + $0x18] sm:$0xff]  ;;  %v3969_v13 = vld [vmem:[%s12531_s7] sm:$0xff] }
 0x460   : > { %8239 = vmatpush3.bf16.msra.mxu0 %v8238_v25  ;;  %8210 = vmatprep.subr.bf16.mxu1 %v9064_v0  ;;  %v3484_v15 = vsub.f32 %v10548_v40, %v3483_v30  ;;  %v3499_v25 = vand.u32 4294901760, %v3498_v50  ;;  %v3506_v35 = vand.u32 4294901760, %v3505_v3  ;;  %v3512_v6 = vsub.f32 %v10584_v43, %v12557_v58 }
 0x461   : > { %8240 = vmatprep.subr.bf16.mxu0 %v9064_v0  ;;  %v12591_v11 = vand.u32 4294901760, %v10584_v43  ;;  %v12592_v32 = vand.u32 4294901760, %v10596_v46  ;;  %v8348_v38 = vpack.c.bf16 %v3986_v37, %v3970_v26  ;;  %v4132_v26 = vld [vmem:[%s12531_s7 + $0x518] sm:$0xff] }
 0x462   : > { %v3485_v8 = vand.u32 4294901760, %v3484_v15  ;;  %v8247_v27 = vpack.c.bf16 %v3506_v35, %v3499_v25  ;;  %v3513_v15 = vand.u32 4294901760, %v3512_v6  ;;  %v8274_v35 = vpack.c.bf16 %v10596_v46, %v10584_v43  ;;  %v4020_v43 = vld [vmem:[%s12531_s7 + $0x198] sm:$0xff] }
 0x463   : > { %8212 = vmatpush3.bf16.msra.mxu1 %v10562_v7  ;;  %v8322_v18 = vpack.c.bf16 %v12592_v32, %v12591_v11  ;;  %v4130_v32 = vld [vmem:[%s12531_s7 + $0x508] sm:$0xff] }
 0x464   : > { %8242 = vmatpush3.bf16.msra.mxu0 %v8241_v49  ;;  %8213 = vmatprep.subr.bf16.mxu1 %v9064_v0  ;;  %v8244_v24 = vpack.c.bf16 %v3492_v12, %v3485_v8  ;;  %v3520_v49 = vand.u32 4294901760, %v3519_v16  ;;  %v8268_v8 = vpack.c.bf16 %v10566_v22, %v10548_v40  ;;  %v8271_v12 = vpack.c.bf16 %v10573_v4, %v10570_v5  ;;  %v3971_v40 = vld [vmem:[%s12531_s7 + $0x10] sm:$0xff]  ;;  %v4004_v4 = vld [vmem:[%s12531_s7 + $0x118] sm:$0xff] }
 0x465   : > { %8243 = vmatprep.subr.bf16.mxu0 %v9064_v0  ;;  %v8384_v46 = vpack.c.bf16 %v4020_v43, %v4004_v4 }
 0x466   : > { %v8250_v55 = vpack.c.bf16 %v3520_v49, %v3513_v15 }
 0x467   : > { %8215 = vmatpush3.bf16.msra.mxu1 %v10591_v33 }
 0x468   : > { %8216 = vmatprep.subr.bf16.mxu1 %v9064_v0  ;;  %8245 = vmatpush3.bf16.msra.mxu0 %v8244_v24 }
 0x469   : > { %8246 = vmatprep.subr.bf16.mxu0 %v9064_v0 }
 0x46b   : > { %8218 = vmatpush3.bf16.msra.mxu1 %v10616_v59 }
 0x46c   : > { %8219 = vmatprep.subr.bf16.mxu1 %v9064_v0  ;;  %8248 = vmatpush3.bf16.msra.mxu0 %v8247_v27 }
 0x46d   : > { %8249 = vmatprep.subr.bf16.mxu0 %v9064_v0 }
 0x46f   : > { %8221 = vmatpush3.bf16.msra.mxu1 %v10626_v29 }
 0x470   : > { %8222 = vmatprep.subr.bf16.mxu1 %v9064_v0  ;;  %8251 = vmatpush3.bf16.msra.mxu0 %v8250_v55 }
 0x471   : > { %8276 = vmatprep.subr.bf16.mxu0 %v9064_v0 }
 0x473   : > { %8224 = vmatpush3.bf16.msra.mxu1 %v10631_v42 }
 0x474   : > { %8225 = vmatprep.subr.bf16.mxu1 %v9064_v0 }
 0x477   : > { %8227 = vmatpush3.bf16.msra.mxu1 %v10637_v62 }
 0x478   : > { %8252 = vmatprep.subr.bf16.mxu1 %v9064_v0 }
 0x4e1   : > { %v2806_v2 = vpop.f32.mrb[12].mxu0 }
 0x4e2   : > { %v7344_v23 = vpop.f32.mrb[13].mxu0 }
 0x4e9   : > { %v2655_v41 = vpop.f32.mrb[20].mxu1 }
 0x4ea   : > { %v2656_v50 = vadd.f32 %v2655_v41, %v10387_v14  ;;  %v7309_v3 = vpop.f32.mrb[21].mxu1  ;;  %v5965_v14 = vld [vmem:[%s12530_s6 + $0x2] ss:$0 sm:$0xff] }
 0x4ec   : > { %v2807_v25 = vadd.f32 %v2806_v2, %v2656_v50 }
 0x501   : > { %v2999_v6 = vpop.f32.mrb[14].mxu0 }
 0x502   : > { %v7414_v24 = vpop.f32.mrb[15].mxu0 }
 0x509   : > { %v2910_v16 = vpop.f32.mrb[22].mxu1 }
 0x50a   : > { %v2911_v27 = vadd.f32 %v2910_v16, %v2807_v25  ;;  %v7379_v15 = vpop.f32.mrb[23].mxu1 }
 0x50c   : > { %v3000_v49 = vadd.f32 %v2999_v6, %v2911_v27 }
 0x521   : > { %v3205_v55 = vpop.f32.mrb[16].mxu0 }
 0x522   : > { %v7484_v23 = vpop.f32.mrb[17].mxu0 }
 0x523   : > { %v4035_v23 = vld [vmem:[%s12531_s7 + $0x210] sm:$0xff] }
 0x529   : > { %v3118_v61 = vpop.f32.mrb[24].mxu1 }
 0x52a   : > { %v3119_v58 = vadd.f32 %v3118_v61, %v3000_v49  ;;  %v7449_v44 = vpop.f32.mrb[25].mxu1  ;;  %v8301_v61 = vpack.c.bf16 %v3420_v19, %v3413_v39  ;;  %v8313_v39 = vpack.c.bf16 %v3476_v28, %v3469_v36  ;;  %v12588_v19 = vand.u32 4294901760, %v10566_v22  ;;  %v3985_v36 = vld [vmem:[%s12531_s7 + $0x80] sm:$0xff] }
 0x52b   : > { %v8350_v28 = vpack.c.bf16 %v3985_v36, %v3969_v13 }
 0x52c   : > { %v3206_v41 = vadd.f32 %v3205_v55, %v3119_v58  ;;  %v8316_v63 = vpack.c.bf16 %v12588_v19, %v3483_v30  ;;  %v4002_v30 = vld [vmem:[%s12531_s7 + $0x108] sm:$0xff]  ;;  %v4049_v55 = vld [vmem:[%s12531_s7 + $0x280] sm:$0xff] }
 0x52d   : > { %v10749_v54 = vpop.f32.mrb[26].mxu1  ;;  %v4097_v19 = vld [vmem:[%s12531_s7 + $0x400] sm:$0xff] }
 0x52e   : > { %v3217_v2 = vadd.f32 %v5965_v14, %v3206_v41  ;;  %v4051_v14 = vld [vmem:[%s12531_s7 + $0x290] sm:$0xff] }
 0x530   : > { %v3219_v50 = vmul.f32 0.044715, %v3217_v2  ;;  %v3218_v16 = vmul.f32 0.5, %v3217_v2 }
 0x532   : > { %v3220_v3 = vmul.f32 %v3219_v50, %v3217_v2  ;;  %v4082_v50 = vld [vmem:[%s12531_s7 + $0x388] sm:$0xff] }
 0x534   : > { %v3221_v45 = vmul.f32 %v3220_v3, %v3217_v2  ;;  %v4068_v3 = vld [vmem:[%s12531_s7 + $0x318] sm:$0xff] }
 0x536   : > { %v3222_v9 = vadd.f32 %v3221_v45, %v3217_v2  ;;  %v4066_v2 = vld [vmem:[%s12531_s7 + $0x308] sm:$0xff] }
 0x538   : > { %v3223_v24 = vmul.f32 0.7978846, %v3222_v9 }
 0x53a   : > { %8930 = vtanh.f32 %v3223_v24  ;;  %v8390_v24 = vpack.c.bf16 %v4051_v14, %v4035_v23  ;;  %v4211_v23 = vld [vmem:[%s12531_s7 + $0x790] sm:$0xff] }
 0x544   : > { %v8931_v25 = vpop.eup %8930 }
 0x545   : > { %v3225_v6 = vadd.f32 1.0, %v8931_v25  ;;  %v8360_v25 = vpack.c.bf16 %v4082_v50, %v4066_v2  ;;  %v3990_v2 = vld [vmem:[%s12531_s7 + $0xa8] sm:$0xff] }
 0x547   : > { %v3226_v27 = vmul.f32 %v3225_v6, %v3218_v16  ;;  %v4084_v16 = vld [vmem:[%s12531_s7 + $0x398] sm:$0xff]  ;;  %v4065_v6 = vld [vmem:[%s12531_s7 + $0x300] sm:$0xff] }
 0x549   : > { %v10661_v15 = vand.u32 4294901760, %v3226_v27 }
 0x54b   : > { %v3401_v44 = vsub.f32 %v3226_v27, %v10661_v15  ;;  %7558 = vmatmul.mubr.f32.vlgmr.msra.gmra.mrb[18].mxu0 %v10661_v15  ;;  %v4081_v27 = vld [vmem:[%s12531_s7 + $0x380] sm:$0xff] }
 0x54c   : > { %8278 = vmatpush3.bf16.msra.mxu0 %v10498_v60  ;;  %7627 = vmatprep.mubr.msk.f32.mxu0 %vm9065_vm0, %v9066_v1 }
 0x54d   : > { %8279 = vmatprep.subr.bf16.mxu0 %v9064_v0  ;;  %v3402_v45 = vand.u32 4294901760, %v3401_v44 }
 0x54f   : > { %v3403_v9 = vsub.f32 %v3401_v44, %v3402_v45 }
 0x550   : > { %8281 = vmatpush3.bf16.msra.mxu0 %v10533_v10 }
 0x551   : > { %8282 = vmatprep.subr.bf16.mxu0 %v9064_v0  ;;  %v3404_v58 = vand.u32 4294901760, %v3403_v9  ;;  %v4098_v9 = vld [vmem:[%s12531_s7 + $0x408] sm:$0xff] }
 0x553   : > { %7523 = vmatmul.mubr.f32.vlgmr.msra.gmra.mrb[28].mxu1 %v3404_v58  ;;  %v4114_v58 = vld [vmem:[%s12531_s7 + $0x488] sm:$0xff] }
 0x554   : > { %8254 = vmatpush3.bf16.msra.mxu1 %v8253_v57  ;;  %8284 = vmatpush3.bf16.msra.mxu0 %v10562_v7  ;;  %v4019_v57 = vld [vmem:[%s12531_s7 + $0x190] sm:$0xff] }
 0x555   : > { %8255 = vmatprep.subr.bf16.mxu1 %v9064_v0  ;;  %8285 = vmatprep.subr.bf16.mxu0 %v9064_v0 }
 0x556   : > { %7592 = vmatprep.mubr.msk.f32.mxu1 %vm9065_vm0, %v9066_v1 }
 0x558   : > { %8257 = vmatpush3.bf16.msra.mxu1 %v8256_v31  ;;  %8287 = vmatpush3.bf16.msra.mxu0 %v10591_v33  ;;  %v4034_v31 = vld [vmem:[%s12531_s7 + $0x208] sm:$0xff] }
 0x559   : > { %8258 = vmatprep.subr.bf16.mxu1 %v9064_v0  ;;  %8288 = vmatprep.subr.bf16.mxu0 %v9064_v0 }
 0x55c   : > { %8260 = vmatpush3.bf16.msra.mxu1 %v8259_v17  ;;  %8290 = vmatpush3.bf16.msra.mxu0 %v10616_v59  ;;  %v4050_v17 = vld [vmem:[%s12531_s7 + $0x288] sm:$0xff] }
 0x55d   : > { %8261 = vmatprep.subr.bf16.mxu1 %v9064_v0  ;;  %8291 = vmatprep.subr.bf16.mxu0 %v9064_v0 }
 0x560   : > { %8263 = vmatpush3.bf16.msra.mxu1 %v8262_v34  ;;  %8293 = vmatpush3.bf16.msra.mxu0 %v10626_v29 }
 0x561   : > { %8264 = vmatprep.subr.bf16.mxu1 %v9064_v0  ;;  %8294 = vmatprep.subr.bf16.mxu0 %v9064_v0 }
 0x564   : > { %8266 = vmatpush3.bf16.msra.mxu1 %v8265_v53  ;;  %8296 = vmatpush3.bf16.msra.mxu0 %v10631_v42  ;;  %v8356_v53 = vpack.c.bf16 %v4050_v17, %v4034_v31  ;;  %v4210_v31 = vld [vmem:[%s12531_s7 + $0x788] sm:$0xff]  ;;  %v4196_v17 = vld [vmem:[%s12531_s7 + $0x718] sm:$0xff] }
 0x565   : > { %8267 = vmatprep.subr.bf16.mxu1 %v9064_v0  ;;  %8297 = vmatprep.subr.bf16.mxu0 %v9064_v0 }
 0x568   : > { %8269 = vmatpush3.bf16.msra.mxu1 %v8268_v8  ;;  %8299 = vmatpush3.bf16.msra.mxu0 %v10637_v62  ;;  %v4036_v8 = vld [vmem:[%s12531_s7 + $0x218] sm:$0xff] }
 0x569   : > { %8270 = vmatprep.subr.bf16.mxu1 %v9064_v0  ;;  %8324 = vmatprep.subr.bf16.mxu0 %v9064_v0 }
 0x56b   : > { %7628 = vmatmul.mubr.f32.vlgmr.msra.gmra.mrb[20].mxu0 %v3402_v45  ;;  %v4083_v45 = vld [vmem:[%s12531_s7 + $0x390] sm:$0xff] }
 0x56c   : > { %8272 = vmatpush3.bf16.msra.mxu1 %v8271_v12  ;;  %8326 = vmatpush3.bf16.msra.mxu0 %v10498_v60  ;;  %v8304_v60 = vpack.c.bf16 %v3434_v52, %v3427_v47  ;;  %v7489_v47 = vpop.f32.mrb[27].mxu1  ;;  %v12589_v52 = vand.u32 4294901760, %v10570_v5  ;;  %v4018_v5 = vld [vmem:[%s12531_s7 + $0x188] sm:$0xff]  ;;  %v4052_v12 = vld [vmem:[%s12531_s7 + $0x298] sm:$0xff] }
 0x56d   : > { %8273 = vmatprep.subr.bf16.mxu1 %v9064_v0  ;;  %8327 = vmatprep.subr.bf16.mxu0 %v9064_v0  ;;  %v8388_v49 = vpack.c.bf16 %v4052_v12, %v4036_v8  ;;  %v4193_v8 = vld [vmem:[%s12531_s7 + $0x700] sm:$0xff] }
 0x56e   : > { %7697 = vmatprep.mubr.msk.f32.mxu0 %vm9065_vm0, %v9066_v1  ;;  %v8319_v48 = vpack.c.bf16 %v12590_v51, %v12589_v52  ;;  %v4099_v52 = vld [vmem:[%s12531_s7 + $0x410] sm:$0xff]  ;;  %v4209_v12 = vld [vmem:[%s12531_s7 + $0x780] sm:$0xff] }
 0x56f   : > { %v4115_v51 = vld [vmem:[%s12531_s7 + $0x490] sm:$0xff] }
 0x570   : > { %8275 = vmatpush3.bf16.msra.mxu1 %v8274_v35  ;;  %8329 = vmatpush3.bf16.msra.mxu0 %v10533_v10  ;;  %v4033_v35 = vld [vmem:[%s12531_s7 + $0x200] sm:$0xff]  ;;  %v8398_v11 = vpack.c.bf16 %v4115_v51, %v4099_v52 }
 0x571   : > { %8300 = vmatprep.subr.bf16.mxu1 %v9064_v0  ;;  %8330 = vmatprep.subr.bf16.mxu0 %v9064_v0  ;;  %v8358_v41 = vpack.c.bf16 %v4049_v55, %v4033_v35  ;;  %v4195_v55 = vld [vmem:[%s12531_s7 + $0x710] sm:$0xff]  ;;  %v3973_v52 = vld [vmem:[%s12531_s7 + $0x20] sm:$0xff] }
 0x572   : > { %v8410_v14 = vpack.c.bf16 %v4211_v23, %v4195_v55  ;;  %v4069_v55 = vld [vmem:[%s12531_s7 + $0x320] sm:$0xff] }
 0x573   : > { %7593 = vmatmul.mubr.f32.vlgmr.msra.gmra.mrb[30].mxu1 %v3401_v44  ;;  %v4067_v44 = vld [vmem:[%s12531_s7 + $0x310] sm:$0xff]  ;;  %v4085_v23 = vld [vmem:[%s12531_s7 + $0x3a0] sm:$0xff] }
 0x574   : > { %8302 = vmatpush3.bf16.msra.mxu1 %v8301_v61  ;;  %8332 = vmatpush3.bf16.msra.mxu0 %v10562_v7  ;;  %v3987_v7 = vld [vmem:[%s12531_s7 + $0x90] sm:$0xff]  ;;  %v4100_v61 = vld [vmem:[%s12531_s7 + $0x418] sm:$0xff] }
 0x575   : > { %8303 = vmatprep.subr.bf16.mxu1 %v9064_v0  ;;  %8333 = vmatprep.subr.bf16.mxu0 %v9064_v0  ;;  %v8382_v22 = vpack.c.bf16 %v3987_v7, %v3971_v40  ;;  %v4162_v40 = vld [vmem:[%s12531_s7 + $0x608] sm:$0xff] }
 0x576   : > { %7662 = vmatprep.mubr.msk.f32.mxu1 %vm9065_vm0, %v9066_v1 }
 0x578   : > { %8305 = vmatpush3.bf16.msra.mxu1 %v8304_v60  ;;  %8335 = vmatpush3.bf16.msra.mxu0 %v10591_v33  ;;  %v8352_v33 = vpack.c.bf16 %v4018_v5, %v4002_v30  ;;  %v4116_v60 = vld [vmem:[%s12531_s7 + $0x498] sm:$0xff]  ;;  %v4178_v30 = vld [vmem:[%s12531_s7 + $0x688] sm:$0xff] }
 0x579   : > { %8306 = vmatprep.subr.bf16.mxu1 %v9064_v0  ;;  %8336 = vmatprep.subr.bf16.mxu0 %v9064_v0  ;;  %v8396_v47 = vpack.c.bf16 %v4116_v60, %v4100_v61  ;;  %v4180_v5 = vld [vmem:[%s12531_s7 + $0x698] sm:$0xff]  ;;  %v8372_v4 = vpack.c.bf16 %v4178_v30, %v4162_v40  ;;  %v4007_v30 = vld [vmem:[%s12531_s7 + $0x130] sm:$0xff] }
 0x57c   : > { %8308 = vmatpush3.bf16.msra.mxu1 %v8307_v20  ;;  %8338 = vmatpush3.bf16.msra.mxu0 %v10616_v59  ;;  %v4001_v59 = vld [vmem:[%s12531_s7 + $0x100] sm:$0xff]  ;;  %v8362_v20 = vpack.c.bf16 %v4081_v27, %v4065_v6 }
 0x57d   : > { %8309 = vmatprep.subr.bf16.mxu1 %v9064_v0  ;;  %8339 = vmatprep.subr.bf16.mxu0 %v9064_v0 }
 0x580   : > { %8311 = vmatpush3.bf16.msra.mxu1 %v8310_v56  ;;  %8341 = vmatpush3.bf16.msra.mxu0 %v10626_v29  ;;  %v4017_v29 = vld [vmem:[%s12531_s7 + $0x180] sm:$0xff]  ;;  %v8394_v56 = vpack.c.bf16 %v4083_v45, %v4067_v44 }
 0x581   : > { %8312 = vmatprep.subr.bf16.mxu1 %v9064_v0  ;;  %8342 = vmatprep.subr.bf16.mxu0 %v9064_v0 }
 0x584   : > { %8314 = vmatpush3.bf16.msra.mxu1 %v8313_v39  ;;  %8344 = vmatpush3.bf16.msra.mxu0 %v10631_v42  ;;  %v4003_v42 = vld [vmem:[%s12531_s7 + $0x110] sm:$0xff]  ;;  %v8364_v39 = vpack.c.bf16 %v4114_v58, %v4098_v9 }
 0x585   : > { %8315 = vmatprep.subr.bf16.mxu1 %v9064_v0  ;;  %8345 = vmatprep.subr.bf16.mxu0 %v9064_v0  ;;  %v8386_v34 = vpack.c.bf16 %v4019_v57, %v4003_v42  ;;  %v4179_v42 = vld [vmem:[%s12531_s7 + $0x690] sm:$0xff]  ;;  %v4194_v57 = vld [vmem:[%s12531_s7 + $0x708] sm:$0xff] }
 0x588   : > { %8317 = vmatpush3.bf16.msra.mxu1 %v8316_v63  ;;  %8347 = vmatpush3.bf16.msra.mxu0 %v10637_v62  ;;  %v8354_v62 = vpack.c.bf16 %v4017_v29, %v4001_v59  ;;  %v4113_v63 = vld [vmem:[%s12531_s7 + $0x480] sm:$0xff]  ;;  %v4163_v59 = vld [vmem:[%s12531_s7 + $0x610] sm:$0xff] }
 0x589   : > { %8318 = vmatprep.subr.bf16.mxu1 %v9064_v0 }
 0x58b   : > { %7698 = vmatmul.mubr.f32.vlgmr.msra.gmra.mrb[22].mxu0 %v10661_v15 }
 0x58c   : > { %8320 = vmatpush3.bf16.msra.mxu1 %v8319_v48  ;;  %4444 = vmatprep.mubr.f32.mxu0 %v9066_v1  ;;  %v8366_v48 = vpack.c.bf16 %v4113_v63, %v4097_v19 }
 0x58d   : > { %8321 = vmatprep.subr.bf16.mxu1 %v9064_v0  ;;  %v3988_v0 = vld [vmem:[%s12531_s7 + $0x98] sm:$0xff] }
 0x58e   : > { %v8380_v10 = vpack.c.bf16 %v3988_v0, %v3972_v21  ;;  %v4148_v21 = vld [vmem:[%s12531_s7 + $0x598] sm:$0xff]  ;;  %v4145_v0 = vld [vmem:[%s12531_s7 + $0x580] sm:$0xff] }
 0x58f   : > { %v8400_v13 = vpack.c.bf16 %v4148_v21, %v4132_v26  ;;  %v4022_v26 = vld [vmem:[%s12531_s7 + $0x1a8] sm:$0xff]  ;;  %v4024_v21 = vld [vmem:[%s12531_s7 + $0x1b8] sm:$0xff] }
 0x590   : > { %8323 = vmatpush3.bf16.msra.mxu1 %v8322_v18  ;;  %8381 = vmatprep.subr.bf16.mxu0 %v8380_v10  ;;  %v4146_v18 = vld [vmem:[%s12531_s7 + $0x588] sm:$0xff]  ;;  %v4131_v10 = vld [vmem:[%s12531_s7 + $0x510] sm:$0xff] }
 0x591   : > { %8349 = vmatprep.subr.bf16.mxu1 %v8348_v38  ;;  %8383 = vmatpush1.bf16.msra.mxu0 %v8382_v22  ;;  %v8368_v37 = vpack.c.bf16 %v4146_v18, %v4130_v32  ;;  %v4129_v38 = vld [vmem:[%s12531_s7 + $0x500] sm:$0xff]  ;;  %v4164_v22 = vld [vmem:[%s12531_s7 + $0x618] sm:$0xff]  ;;  %v3991_v32 = vld [vmem:[%s12531_s7 + $0xb0] sm:$0xff] }
 0x592   : > { %8385 = vmatprep.subr.bf16.mxu0 %v8384_v46  ;;  %v8370_v36 = vpack.c.bf16 %v4145_v0, %v4129_v38  ;;  %v8404_v43 = vpack.c.bf16 %v4180_v5, %v4164_v22  ;;  %v4177_v46 = vld [vmem:[%s12531_s7 + $0x680] sm:$0xff]  ;;  %v4006_v18 = vld [vmem:[%s12531_s7 + $0x128] sm:$0xff]  ;;  %v4023_v22 = vld [vmem:[%s12531_s7 + $0x1b0] sm:$0xff] }
 0x593   : > { %7663 = vmatmul.mubr.f32.vlgmr.msra.gmra.mrb[32].mxu1 %v10661_v15  ;;  %v8392_v15 = vpack.c.bf16 %v4084_v16, %v4068_v3  ;;  %v3976_v3 = vld [vmem:[%s12531_s7 + $0x38] sm:$0xff]  ;;  %v8416_v40 = vpack.c.bf16 %v4022_v26, %v4006_v18  ;;  %v4038_v5 = vld [vmem:[%s12531_s7 + $0x228] sm:$0xff] }
 0x594   : > { %4373 = vmatprep.mubr.f32.mxu1 %v9066_v1  ;;  %8351 = vmatpush1.bf16.msra.mxu1 %v8350_v28  ;;  %v4147_v28 = vld [vmem:[%s12531_s7 + $0x590] sm:$0xff]  ;;  %v4182_v18 = vld [vmem:[%s12531_s7 + $0x6a8] sm:$0xff]  ;;  %v4168_v26 = vld [vmem:[%s12531_s7 + $0x638] sm:$0xff] }
 0x595   : > { %8353 = vmatprep.subr.bf16.mxu1 %v8352_v33  ;;  %8387 = vmatpush1.bf16.msra.mxu0 %v8386_v34  ;;  %v8402_v7 = vpack.c.bf16 %v4147_v28, %v4131_v10  ;;  %v4161_v33 = vld [vmem:[%s12531_s7 + $0x600] sm:$0xff]  ;;  %v8376_v34 = vpack.c.bf16 %v4210_v31, %v4194_v57  ;;  %v4039_v31 = vld [vmem:[%s12531_s7 + $0x230] sm:$0xff] }
 0x596   : > { %8389 = vmatprep.subr.bf16.mxu0 %v8388_v49  ;;  %v8374_v29 = vpack.c.bf16 %v4177_v46, %v4161_v33  ;;  %v8378_v49 = vpack.c.bf16 %v4209_v12, %v4193_v8  ;;  %v4021_v10 = vld [vmem:[%s12531_s7 + $0x1a0] sm:$0xff]  ;;  %v4056_v33 = vld [vmem:[%s12531_s7 + $0x2b8] sm:$0xff] }
 0x597   : > { %v4072_v8 = vld [vmem:[%s12531_s7 + $0x338] sm:$0xff] }
 0x598   : > { %8355 = vmatpush1.bf16.msra.mxu1 %v8354_v62  ;;  %v8406_v62 = vpack.c.bf16 %v4179_v42, %v4163_v59  ;;  %v8450_v59 = vpack.c.bf16 %v4023_v22, %v4007_v30  ;;  %v4053_v42 = vld [vmem:[%s12531_s7 + $0x2a0] sm:$0xff]  ;;  %v4088_v12 = vld [vmem:[%s12531_s7 + $0x3b8] sm:$0xff]  ;;  %v4198_v30 = vld [vmem:[%s12531_s7 + $0x728] sm:$0xff] }
 0x599   : > { %8357 = vmatprep.subr.bf16.mxu1 %v8356_v53  ;;  %8391 = vmatpush1.bf16.msra.mxu0 %v8390_v24  ;;  %v4212_v53 = vld [vmem:[%s12531_s7 + $0x798] sm:$0xff]  ;;  %v4214_v22 = vld [vmem:[%s12531_s7 + $0x7a8] sm:$0xff] }
 0x59a   : > { %8393 = vmatprep.subr.bf16.mxu0 %v8392_v15  ;;  %v8408_v35 = vpack.c.bf16 %v4212_v53, %v4196_v17  ;;  %v3992_v24 = vld [vmem:[%s12531_s7 + $0xb8] sm:$0xff]  ;;  %v4055_v17 = vld [vmem:[%s12531_s7 + $0x2b0] sm:$0xff]  ;;  %v4086_v53 = vld [vmem:[%s12531_s7 + $0x3a8] sm:$0xff] }
 0x59c   : > { %8359 = vmatpush1.bf16.msra.mxu1 %v8358_v41  ;;  %v3974_v41 = vld [vmem:[%s12531_s7 + $0x28] sm:$0xff] }
 0x59d   : > { %8361 = vmatprep.subr.bf16.mxu1 %v8360_v25  ;;  %8395 = vmatpush1.bf16.msra.mxu0 %v8394_v56  ;;  %v8412_v50 = vpack.c.bf16 %v3990_v2, %v3974_v41  ;;  %v8444_v25 = vpack.c.bf16 %v3992_v24, %v3976_v3  ;;  %v8456_v41 = vpack.c.bf16 %v4088_v12, %v4072_v8  ;;  %v4071_v2 = vld [vmem:[%s12531_s7 + $0x330] sm:$0xff]  ;;  %v4102_v3 = vld [vmem:[%s12531_s7 + $0x428] sm:$0xff] }
 0x59e   : > { %8397 = vmatprep.subr.bf16.mxu0 %v8396_v47  ;;  %v5970_v47 = vld [vmem:[%s12530_s6 + $0x3] ss:$0 sm:$0xff]  ;;  %v4118_v24 = vld [vmem:[%s12531_s7 + $0x4a8] sm:$0xff] }
 0x5a0   : > { %8363 = vmatpush1.bf16.msra.mxu1 %v8362_v20 }
 0x5a1   : > { %8365 = vmatprep.subr.bf16.mxu1 %v8364_v39  ;;  %8399 = vmatpush1.bf16.msra.mxu0 %v8398_v11  ;;  %v3975_v11 = vld [vmem:[%s12531_s7 + $0x30] sm:$0xff] }
 0x5a2   : > { %8401 = vmatprep.subr.bf16.mxu0 %v8400_v13  ;;  %v8446_v13 = vpack.c.bf16 %v3991_v32, %v3975_v11  ;;  %v4151_v11 = vld [vmem:[%s12531_s7 + $0x5b0] sm:$0xff]  ;;  %v4166_v32 = vld [vmem:[%s12531_s7 + $0x628] sm:$0xff] }
 0x5a4   : > { %8367 = vmatpush1.bf16.msra.mxu1 %v8366_v48 }
 0x5a5   : > { %8369 = vmatprep.subr.bf16.mxu1 %v8368_v37  ;;  %8403 = vmatpush1.bf16.msra.mxu0 %v8402_v7  ;;  %v4008_v37 = vld [vmem:[%s12531_s7 + $0x138] sm:$0xff] }
 0x5a6   : > { %8405 = vmatprep.subr.bf16.mxu0 %v8404_v43  ;;  %v8448_v7 = vpack.c.bf16 %v4024_v21, %v4008_v37  ;;  %v4040_v43 = vld [vmem:[%s12531_s7 + $0x238] sm:$0xff] }
 0x5a7   : > { %v8452_v57 = vpack.c.bf16 %v4056_v33, %v4040_v43  ;;  %v4184_v37 = vld [vmem:[%s12531_s7 + $0x6b8] sm:$0xff] }
 0x5a8   : > { %8371 = vmatpush1.bf16.msra.mxu1 %v8370_v36  ;;  %v4005_v36 = vld [vmem:[%s12531_s7 + $0x120] sm:$0xff] }
 0x5a9   : > { %8373 = vmatprep.subr.bf16.mxu1 %v8372_v4  ;;  %8407 = vmatpush1.bf16.msra.mxu0 %v8406_v62  ;;  %v4054_v4 = vld [vmem:[%s12531_s7 + $0x2a8] sm:$0xff]  ;;  %v8418_v46 = vpack.c.bf16 %v4021_v10, %v4005_v36  ;;  %v8436_v36 = vpack.c.bf16 %v4182_v18, %v4166_v32  ;;  %v8468_v10 = vpack.c.bf16 %v4184_v37, %v4168_v26  ;;  %v4076_v32 = vld [vmem:[%s12531_s7 + $0x358] sm:$0xff] }
 0x5aa   : > { %8409 = vmatprep.subr.bf16.mxu0 %v8408_v35  ;;  %v8420_v62 = vpack.c.bf16 %v4054_v4, %v4038_v5  ;;  %v4200_v5 = vld [vmem:[%s12531_s7 + $0x738] sm:$0xff] }
 0x5ab   : > { %v4216_v4 = vld [vmem:[%s12531_s7 + $0x7b8] sm:$0xff] }
 0x5ac   : > { %8375 = vmatpush1.bf16.msra.mxu1 %v8374_v29  ;;  %v4037_v29 = vld [vmem:[%s12531_s7 + $0x220] sm:$0xff]  ;;  %v4092_v18 = vld [vmem:[%s12531_s7 + $0x3d8] sm:$0xff] }
 0x5ad   : > { %8377 = vmatprep.subr.bf16.mxu1 %v8376_v34  ;;  %8411 = vmatpush1.bf16.msra.mxu0 %v8410_v14  ;;  %v4070_v34 = vld [vmem:[%s12531_s7 + $0x328] sm:$0xff]  ;;  %v8422_v35 = vpack.c.bf16 %v4053_v42, %v4037_v29  ;;  %v8440_v29 = vpack.c.bf16 %v4214_v22, %v4198_v30  ;;  %v8472_v42 = vpack.c.bf16 %v4216_v4, %v4200_v5  ;;  %v4108_v30 = vld [vmem:[%s12531_s7 + $0x458] sm:$0xff] }
 0x5ae   : > { %8445 = vmatprep.subr.bf16.mxu0 %v8444_v25  ;;  %v8424_v14 = vpack.c.bf16 %v4086_v53, %v4070_v34  ;;  %v4104_v25 = vld [vmem:[%s12531_s7 + $0x438] sm:$0xff] }
 0x5af   : > { %v3980_v34 = vld [vmem:[%s12531_s7 + $0x58] sm:$0xff] }
 0x5b0   : > { %8379 = vmatpush1.bf16.msra.mxu1 %v8378_v49  ;;  %v8454_v49 = vpack.c.bf16 %v4055_v17, %v4039_v31  ;;  %v3978_v31 = vld [vmem:[%s12531_s7 + $0x48] sm:$0xff]  ;;  %v3996_v53 = vld [vmem:[%s12531_s7 + $0xd8] sm:$0xff] }
 0x5b1   : > { %8413 = vmatprep.subr.bf16.mxu1 %v8412_v50  ;;  %v4087_v50 = vld [vmem:[%s12531_s7 + $0x3b0] sm:$0xff]  ;;  %v3994_v17 = vld [vmem:[%s12531_s7 + $0xc8] sm:$0xff]  ;;  %v4124_v22 = vld [vmem:[%s12531_s7 + $0x4d8] sm:$0xff] }
 0x61e   : > { %v3557_v16 = vpop.f32.mrb[18].mxu0 }
 0x61f   : > { %v7559_v6 = vpop.f32.mrb[19].mxu0 }
 0x620   : > { %v8426_v6 = vpack.c.bf16 %v4085_v23, %v4069_v55  ;;  %v8476_v55 = vpack.c.bf16 %v3994_v17, %v3978_v31  ;;  %v8508_v23 = vpack.c.bf16 %v3996_v53, %v3980_v34  ;;  %v4140_v31 = vld [vmem:[%s12531_s7 + $0x558] sm:$0xff] }
 0x621   : > { %v4156_v17 = vld [vmem:[%s12531_s7 + $0x5d8] sm:$0xff] }
 0x626   : > { %v3406_v27 = vpop.f32.mrb[28].mxu1 }
 0x627   : > { %v3407_v15 = vadd.f32 %v3406_v27, %v10749_v54  ;;  %v7524_v44 = vpop.f32.mrb[29].mxu1  ;;  %v3989_v54 = vld [vmem:[%s12531_s7 + $0xa0] sm:$0xff]  ;;  %v8458_v27 = vpack.c.bf16 %v4087_v50, %v4071_v2  ;;  %v4010_v2 = vld [vmem:[%s12531_s7 + $0x148] sm:$0xff] }
 0x628   : > { %v8414_v0 = vpack.c.bf16 %v3989_v54, %v3973_v52  ;;  %v4117_v44 = vld [vmem:[%s12531_s7 + $0x4a0] sm:$0xff]  ;;  %v4026_v50 = vld [vmem:[%s12531_s7 + $0x1c8] sm:$0xff] }
 0x629   : > { %v3558_v45 = vadd.f32 %v3557_v16, %v3407_v15  ;;  %v4120_v16 = vld [vmem:[%s12531_s7 + $0x4b8] sm:$0xff]  ;;  %v4101_v15 = vld [vmem:[%s12531_s7 + $0x420] sm:$0xff] }
 0x62a   : > { %v4149_v52 = vld [vmem:[%s12531_s7 + $0x5a0] sm:$0xff] }
 0x63e   : > { %v3750_v9 = vpop.f32.mrb[20].mxu0 }
 0x63f   : > { %v7629_v58 = vpop.f32.mrb[21].mxu0 }
 0x640   : > { %v4103_v58 = vld [vmem:[%s12531_s7 + $0x430] sm:$0xff] }
 0x646   : > { %v3661_v61 = vpop.f32.mrb[30].mxu1 }
 0x647   : > { %v3662_v60 = vadd.f32 %v3661_v61, %v3558_v45  ;;  %v7594_v20 = vpop.f32.mrb[31].mxu1  ;;  %v8428_v45 = vpack.c.bf16 %v4118_v24, %v4102_v3  ;;  %v4119_v61 = vld [vmem:[%s12531_s7 + $0x4b0] sm:$0xff]  ;;  %v4012_v3 = vld [vmem:[%s12531_s7 + $0x158] sm:$0xff] }
 0x648   : > { %v4150_v20 = vld [vmem:[%s12531_s7 + $0x5a8] sm:$0xff]  ;;  %v4028_v24 = vld [vmem:[%s12531_s7 + $0x1d8] sm:$0xff] }
 0x649   : > { %v3751_v56 = vadd.f32 %v3750_v9, %v3662_v60  ;;  %v8460_v9 = vpack.c.bf16 %v4120_v16, %v4104_v25  ;;  %v4134_v60 = vld [vmem:[%s12531_s7 + $0x528] sm:$0xff] }
 0x64a   : > { %v8432_v54 = vpack.c.bf16 %v4150_v20, %v4134_v60  ;;  %v4044_v60 = vld [vmem:[%s12531_s7 + $0x258] sm:$0xff] }
 0x64b   : > { %v4060_v20 = vld [vmem:[%s12531_s7 + $0x2d8] sm:$0xff] }
 0x65e   : > { %v3956_v39 = vpop.f32.mrb[22].mxu0 }
 0x65f   : > { %v7699_v19 = vpop.f32.mrb[23].mxu0 }
 0x660   : > { %v8430_v19 = vpack.c.bf16 %v4117_v44, %v4101_v15  ;;  %v8480_v15 = vpack.c.bf16 %v4026_v50, %v4010_v2  ;;  %v8512_v44 = vpack.c.bf16 %v4028_v24, %v4012_v3  ;;  %v4172_v2 = vld [vmem:[%s12531_s7 + $0x658] sm:$0xff] }
 0x661   : > { %v4188_v50 = vld [vmem:[%s12531_s7 + $0x6d8] sm:$0xff] }
 0x666   : > { %v3869_v63 = vpop.f32.mrb[32].mxu1 }
 0x667   : > { %v3870_v51 = vadd.f32 %v3869_v63, %v3751_v56  ;;  %v7664_v48 = vpop.f32.mrb[33].mxu1  ;;  %v4136_v56 = vld [vmem:[%s12531_s7 + $0x538] sm:$0xff]  ;;  %v8462_v63 = vpack.c.bf16 %v4119_v61, %v4103_v58  ;;  %v4042_v58 = vld [vmem:[%s12531_s7 + $0x248] sm:$0xff] }
 0x668   : > { %v4135_v48 = vld [vmem:[%s12531_s7 + $0x530] sm:$0xff]  ;;  %v4058_v61 = vld [vmem:[%s12531_s7 + $0x2c8] sm:$0xff] }
 0x669   : > { %v3957_v38 = vadd.f32 %v3956_v39, %v3870_v51  ;;  %v4152_v39 = vld [vmem:[%s12531_s7 + $0x5b8] sm:$0xff] }
 0x66a   : > { %v8464_v51 = vpack.c.bf16 %v4152_v39, %v4136_v56 }
 0x66b   : > { %v11004_v28 = vadd.f32 %v5970_v47, %v3957_v38  ;;  %v4133_v47 = vld [vmem:[%s12531_s7 + $0x520] sm:$0xff]  ;;  %v8466_v38 = vpack.c.bf16 %v4151_v11, %v4135_v48  ;;  %v4074_v48 = vld [vmem:[%s12531_s7 + $0x348] sm:$0xff] }
 0x66c   : > { %v8434_v21 = vpack.c.bf16 %v4149_v52, %v4133_v47  ;;  %v8484_v47 = vpack.c.bf16 %v4058_v61, %v4042_v58  ;;  %v8516_v52 = vpack.c.bf16 %v4060_v20, %v4044_v60  ;;  %v4090_v11 = vld [vmem:[%s12531_s7 + $0x3c8] sm:$0xff]  ;;  %v4204_v58 = vld [vmem:[%s12531_s7 + $0x758] sm:$0xff] }
 0x66d   : > { %4374 = vmatmul.mubr.f32.vlgmr.msra.gmra.mrb[34].mxu1 %v11004_v28  ;;  %4445 = vmatmul.mubr.f32.vlgmr.msra.gmra.mrb[24].mxu0 %v11004_v28  ;;  %v4220_v61 = vld [vmem:[%s12531_s7 + $0x7d8] sm:$0xff] }
 0x66e   : > { %8415 = vmatpush1.bf16.msra.mxu1 %v8414_v0  ;;  %8447 = vmatpush1.bf16.msra.mxu0 %v8446_v13  ;;  %v4165_v0 = vld [vmem:[%s12531_s7 + $0x620] sm:$0xff] }
 0x66f   : > { %8417 = vmatprep.subr.bf16.mxu1 %v8416_v40  ;;  %8449 = vmatprep.subr.bf16.mxu0 %v8448_v7  ;;  %v4181_v13 = vld [vmem:[%s12531_s7 + $0x6a0] sm:$0xff]  ;;  %v4167_v40 = vld [vmem:[%s12531_s7 + $0x630] sm:$0xff] }
 0x670   : > { %4515 = vmatprep.mubr.f32.mxu1 %v9066_v1  ;;  %4586 = vmatprep.mubr.f32.mxu0 %v9066_v1  ;;  %v4183_v7 = vld [vmem:[%s12531_s7 + $0x6b0] sm:$0xff]  ;;  %v8438_v43 = vpack.c.bf16 %v4181_v13, %v4165_v0  ;;  %v8488_v0 = vpack.c.bf16 %v4090_v11, %v4074_v48  ;;  %v8520_v13 = vpack.c.bf16 %v4092_v18, %v4076_v32  ;;  %v3984_v48 = vld [vmem:[%s12531_s7 + $0x78] sm:$0xff] }
 0x671   : > { %v8470_v33 = vpack.c.bf16 %v4183_v7, %v4167_v40  ;;  %v4106_v40 = vld [vmem:[%s12531_s7 + $0x448] sm:$0xff]  ;;  %v4000_v11 = vld [vmem:[%s12531_s7 + $0xf8] sm:$0xff] }
 0x672   : > { %8419 = vmatpush1.bf16.msra.mxu1 %v8418_v46  ;;  %8451 = vmatpush1.bf16.msra.mxu0 %v8450_v59  ;;  %v4197_v46 = vld [vmem:[%s12531_s7 + $0x720] sm:$0xff]  ;;  %v4122_v7 = vld [vmem:[%s12531_s7 + $0x4c8] sm:$0xff] }
 0x673   : > { %8421 = vmatprep.subr.bf16.mxu1 %v8420_v62  ;;  %8453 = vmatprep.subr.bf16.mxu0 %v8452_v57  ;;  %v4213_v59 = vld [vmem:[%s12531_s7 + $0x7a0] sm:$0xff]  ;;  %v4199_v62 = vld [vmem:[%s12531_s7 + $0x730] sm:$0xff] }
 0x674   : > { %v4215_v57 = vld [vmem:[%s12531_s7 + $0x7b0] sm:$0xff]  ;;  %v8442_v8 = vpack.c.bf16 %v4213_v59, %v4197_v46  ;;  %v8492_v46 = vpack.c.bf16 %v4122_v7, %v4106_v40  ;;  %v8524_v59 = vpack.c.bf16 %v4124_v22, %v4108_v30  ;;  %v4016_v40 = vld [vmem:[%s12531_s7 + $0x178] sm:$0xff] }
 0x675   : > { %v8474_v12 = vpack.c.bf16 %v4215_v57, %v4199_v62  ;;  %v4138_v62 = vld [vmem:[%s12531_s7 + $0x548] sm:$0xff]  ;;  %v4032_v7 = vld [vmem:[%s12531_s7 + $0x1f8] sm:$0xff] }
 0x676   : > { %8423 = vmatpush1.bf16.msra.mxu1 %v8422_v35  ;;  %8455 = vmatpush1.bf16.msra.mxu0 %v8454_v49  ;;  %v3977_v35 = vld [vmem:[%s12531_s7 + $0x40] sm:$0xff]  ;;  %v4154_v57 = vld [vmem:[%s12531_s7 + $0x5c8] sm:$0xff] }
 0x677   : > { %8425 = vmatprep.subr.bf16.mxu1 %v8424_v14  ;;  %8457 = vmatprep.subr.bf16.mxu0 %v8456_v41  ;;  %v3993_v49 = vld [vmem:[%s12531_s7 + $0xc0] sm:$0xff]  ;;  %v3979_v14 = vld [vmem:[%s12531_s7 + $0x50] sm:$0xff] }
 0x678   : > { %v3995_v41 = vld [vmem:[%s12531_s7 + $0xd0] sm:$0xff]  ;;  %v8478_v25 = vpack.c.bf16 %v3993_v49, %v3977_v35  ;;  %v8496_v35 = vpack.c.bf16 %v4154_v57, %v4138_v62  ;;  %v8528_v49 = vpack.c.bf16 %v4156_v17, %v4140_v31  ;;  %v4048_v62 = vld [vmem:[%s12531_s7 + $0x278] sm:$0xff] }
 0x679   : > { %v8510_v16 = vpack.c.bf16 %v3995_v41, %v3979_v14  ;;  %v4170_v14 = vld [vmem:[%s12531_s7 + $0x648] sm:$0xff]  ;;  %v4064_v57 = vld [vmem:[%s12531_s7 + $0x2f8] sm:$0xff] }
 0x67a   : > { %8427 = vmatpush1.bf16.msra.mxu1 %v8426_v6  ;;  %8459 = vmatpush1.bf16.msra.mxu0 %v8458_v27  ;;  %v4009_v6 = vld [vmem:[%s12531_s7 + $0x140] sm:$0xff]  ;;  %v4186_v41 = vld [vmem:[%s12531_s7 + $0x6c8] sm:$0xff] }
 0x67b   : > { %8429 = vmatprep.subr.bf16.mxu1 %v8428_v45  ;;  %8461 = vmatprep.subr.bf16.mxu0 %v8460_v9  ;;  %v4025_v27 = vld [vmem:[%s12531_s7 + $0x1c0] sm:$0xff]  ;;  %v4011_v45 = vld [vmem:[%s12531_s7 + $0x150] sm:$0xff] }
 0x67c   : > { %v4027_v9 = vld [vmem:[%s12531_s7 + $0x1d0] sm:$0xff]  ;;  %v8482_v56 = vpack.c.bf16 %v4025_v27, %v4009_v6  ;;  %v8500_v6 = vpack.c.bf16 %v4186_v41, %v4170_v14  ;;  %v8532_v27 = vpack.c.bf16 %v4188_v50, %v4172_v2  ;;  %v4080_v14 = vld [vmem:[%s12531_s7 + $0x378] sm:$0xff] }
 0x67d   : > { %v8514_v39 = vpack.c.bf16 %v4027_v9, %v4011_v45  ;;  %v4202_v45 = vld [vmem:[%s12531_s7 + $0x748] sm:$0xff]  ;;  %v4096_v41 = vld [vmem:[%s12531_s7 + $0x3f8] sm:$0xff] }
 0x67e   : > { %8431 = vmatpush1.bf16.msra.mxu1 %v8430_v19  ;;  %8463 = vmatpush1.bf16.msra.mxu0 %v8462_v63  ;;  %v4041_v19 = vld [vmem:[%s12531_s7 + $0x240] sm:$0xff]  ;;  %v4218_v9 = vld [vmem:[%s12531_s7 + $0x7c8] sm:$0xff] }
 0x67f   : > { %8433 = vmatprep.subr.bf16.mxu1 %v8432_v54  ;;  %8465 = vmatprep.subr.bf16.mxu0 %v8464_v51  ;;  %v4057_v63 = vld [vmem:[%s12531_s7 + $0x2c0] sm:$0xff]  ;;  %v4043_v54 = vld [vmem:[%s12531_s7 + $0x250] sm:$0xff] }
 0x680   : > { %v4059_v51 = vld [vmem:[%s12531_s7 + $0x2d0] sm:$0xff]  ;;  %v8486_v26 = vpack.c.bf16 %v4057_v63, %v4041_v19  ;;  %v8504_v19 = vpack.c.bf16 %v4218_v9, %v4202_v45  ;;  %v8536_v63 = vpack.c.bf16 %v4220_v61, %v4204_v58  ;;  %v4128_v45 = vld [vmem:[%s12531_s7 + $0x4f8] sm:$0xff]  ;;  %v4109_v61 = vld [vmem:[%s12531_s7 + $0x460] sm:$0xff] }
 0x681   : > { %v8518_v37 = vpack.c.bf16 %v4059_v51, %v4043_v54  ;;  %v3982_v54 = vld [vmem:[%s12531_s7 + $0x68] sm:$0xff] }
 0x682   : > { %8435 = vmatpush1.bf16.msra.mxu1 %v8434_v21  ;;  %8467 = vmatpush1.bf16.msra.mxu0 %v8466_v38  ;;  %v4073_v21 = vld [vmem:[%s12531_s7 + $0x340] sm:$0xff]  ;;  %v3998_v51 = vld [vmem:[%s12531_s7 + $0xe8] sm:$0xff] }
 0x683   : > { %8437 = vmatprep.subr.bf16.mxu1 %v8436_v36  ;;  %8469 = vmatprep.subr.bf16.mxu0 %v8468_v10  ;;  %v4089_v38 = vld [vmem:[%s12531_s7 + $0x3c0] sm:$0xff]  ;;  %v4075_v36 = vld [vmem:[%s12531_s7 + $0x350] sm:$0xff] }
 0x684   : > { %v4091_v10 = vld [vmem:[%s12531_s7 + $0x3d0] sm:$0xff]  ;;  %v8490_v5 = vpack.c.bf16 %v4089_v38, %v4073_v21  ;;  %v8540_v21 = vpack.c.bf16 %v3998_v51, %v3982_v54  ;;  %v8572_v38 = vpack.c.bf16 %v4000_v11, %v3984_v48  ;;  %v4160_v54 = vld [vmem:[%s12531_s7 + $0x5f8] sm:$0xff]  ;;  %v4141_v11 = vld [vmem:[%s12531_s7 + $0x560] sm:$0xff] }
 0x685   : > { %v8522_v4 = vpack.c.bf16 %v4091_v10, %v4075_v36  ;;  %v4014_v36 = vld [vmem:[%s12531_s7 + $0x168] sm:$0xff] }
 0x686   : > { %8439 = vmatpush1.bf16.msra.mxu1 %v8438_v43  ;;  %8471 = vmatpush1.bf16.msra.mxu0 %v8470_v33  ;;  %v4105_v43 = vld [vmem:[%s12531_s7 + $0x440] sm:$0xff]  ;;  %v4030_v10 = vld [vmem:[%s12531_s7 + $0x1e8] sm:$0xff] }
 0x687   : > { %8441 = vmatprep.subr.bf16.mxu1 %v8440_v29  ;;  %8473 = vmatprep.subr.bf16.mxu0 %v8472_v42  ;;  %v4121_v33 = vld [vmem:[%s12531_s7 + $0x4c0] sm:$0xff]  ;;  %v4107_v29 = vld [vmem:[%s12531_s7 + $0x450] sm:$0xff] }
 0x688   : > { %v4123_v42 = vld [vmem:[%s12531_s7 + $0x4d0] sm:$0xff]  ;;  %v8494_v34 = vpack.c.bf16 %v4121_v33, %v4105_v43  ;;  %v8544_v43 = vpack.c.bf16 %v4030_v10, %v4014_v36  ;;  %v8576_v33 = vpack.c.bf16 %v4032_v7, %v4016_v40  ;;  %v4192_v36 = vld [vmem:[%s12531_s7 + $0x6f8] sm:$0xff]  ;;  %v4173_v7 = vld [vmem:[%s12531_s7 + $0x660] sm:$0xff] }
 0x689   : > { %v8526_v53 = vpack.c.bf16 %v4123_v42, %v4107_v29  ;;  %v4046_v29 = vld [vmem:[%s12531_s7 + $0x268] sm:$0xff] }
 0x68a   : > { %8443 = vmatpush1.bf16.msra.mxu1 %v8442_v8  ;;  %8475 = vmatpush1.bf16.msra.mxu0 %v8474_v12  ;;  %v4137_v8 = vld [vmem:[%s12531_s7 + $0x540] sm:$0xff]  ;;  %v4062_v42 = vld [vmem:[%s12531_s7 + $0x2e8] sm:$0xff] }
 0x68b   : > { %8477 = vmatprep.subr.bf16.mxu1 %v8476_v55  ;;  %8509 = vmatprep.subr.bf16.mxu0 %v8508_v23  ;;  %v4153_v12 = vld [vmem:[%s12531_s7 + $0x5c0] sm:$0xff]  ;;  %v4139_v55 = vld [vmem:[%s12531_s7 + $0x550] sm:$0xff] }
 0x68c   : > { %v4155_v23 = vld [vmem:[%s12531_s7 + $0x5d0] sm:$0xff]  ;;  %v8498_v3 = vpack.c.bf16 %v4153_v12, %v4137_v8  ;;  %v8548_v8 = vpack.c.bf16 %v4062_v42, %v4046_v29  ;;  %v8580_v12 = vpack.c.bf16 %v4064_v57, %v4048_v62  ;;  %v4224_v29 = vld [vmem:[%s12531_s7 + $0x7f8] sm:$0xff]  ;;  %v4205_v57 = vld [vmem:[%s12531_s7 + $0x760] sm:$0xff] }
 0x68d   : > { %4516 = vmatmul.mubr.f32.vlgmr.msra.gmra.mrb[36].mxu1 %v11004_v28  ;;  %4587 = vmatmul.mubr.f32.vlgmr.msra.gmra.mrb[26].mxu0 %v11004_v28  ;;  %v8530_v24 = vpack.c.bf16 %v4155_v23, %v4139_v55  ;;  %v4078_v55 = vld [vmem:[%s12531_s7 + $0x368] sm:$0xff] }
 0x68e   : > { %8479 = vmatpush1.bf16.msra.mxu1 %v8478_v25  ;;  %8511 = vmatpush1.bf16.msra.mxu0 %v8510_v16  ;;  %v4169_v25 = vld [vmem:[%s12531_s7 + $0x640] sm:$0xff]  ;;  %v4094_v23 = vld [vmem:[%s12531_s7 + $0x3e8] sm:$0xff] }
 0x68f   : > { %8481 = vmatprep.subr.bf16.mxu1 %v8480_v15  ;;  %8513 = vmatprep.subr.bf16.mxu0 %v8512_v44  ;;  %v4185_v16 = vld [vmem:[%s12531_s7 + $0x6c0] sm:$0xff]  ;;  %v4171_v15 = vld [vmem:[%s12531_s7 + $0x650] sm:$0xff] }
 0x690   : > { %4657 = vmatprep.mubr.f32.mxu1 %v9066_v1  ;;  %4728 = vmatprep.mubr.f32.mxu0 %v9066_v1  ;;  %v4187_v44 = vld [vmem:[%s12531_s7 + $0x6d0] sm:$0xff]  ;;  %v8502_v60 = vpack.c.bf16 %v4185_v16, %v4169_v25  ;;  %v8552_v25 = vpack.c.bf16 %v4094_v23, %v4078_v55  ;;  %v8584_v16 = vpack.c.bf16 %v4096_v41, %v4080_v14  ;;  %v5070_v55 = vld [vmem:[%s12533_s9 + $0x188] sm:$0xff]  ;;  %v5021_v41 = vld [vmem:[%s12533_s9] sm:$0xff] }
 0x691   : > { %v8534_v20 = vpack.c.bf16 %v4187_v44, %v4171_v15  ;;  %v4126_v15 = vld [vmem:[%s12531_s7 + $0x4e8] sm:$0xff]  ;;  %v4112_v44 = vld [vmem:[%s12531_s7 + $0x478] sm:$0xff] }
 0x692   : > { %8483 = vmatpush1.bf16.msra.mxu1 %v8482_v56  ;;  %8515 = vmatpush1.bf16.msra.mxu0 %v8514_v39  ;;  %v4201_v56 = vld [vmem:[%s12531_s7 + $0x740] sm:$0xff] }
 0x693   : > { %8485 = vmatprep.subr.bf16.mxu1 %v8484_v47  ;;  %8517 = vmatprep.subr.bf16.mxu0 %v8516_v52  ;;  %v4217_v39 = vld [vmem:[%s12531_s7 + $0x7c0] sm:$0xff]  ;;  %v4203_v47 = vld [vmem:[%s12531_s7 + $0x750] sm:$0xff] }
 0x694   : > { %v4219_v52 = vld [vmem:[%s12531_s7 + $0x7d0] sm:$0xff]  ;;  %v8506_v32 = vpack.c.bf16 %v4217_v39, %v4201_v56  ;;  %v8588_v56 = vpack.c.bf16 %v4128_v45, %v4112_v44 }
 0x695   : > { %v8538_v18 = vpack.c.bf16 %v4219_v52, %v4203_v47  ;;  %v4111_v39 = vld [vmem:[%s12531_s7 + $0x470] sm:$0xff]  ;;  %v4158_v47 = vld [vmem:[%s12531_s7 + $0x5e8] sm:$0xff]  ;;  %v4144_v52 = vld [vmem:[%s12531_s7 + $0x578] sm:$0xff] }
 0x696   : > { %8487 = vmatpush1.bf16.msra.mxu1 %v8486_v26  ;;  %8519 = vmatpush1.bf16.msra.mxu0 %v8518_v37  ;;  %v3981_v26 = vld [vmem:[%s12531_s7 + $0x60] sm:$0xff]  ;;  %v5023_v45 = vld [vmem:[%s12533_s9 + $0x10] sm:$0xff] }
 0x697   : > { %8489 = vmatprep.subr.bf16.mxu1 %v8488_v0  ;;  %8521 = vmatprep.subr.bf16.mxu0 %v8520_v13  ;;  %v3997_v37 = vld [vmem:[%s12531_s7 + $0xe0] sm:$0xff]  ;;  %v3983_v0 = vld [vmem:[%s12531_s7 + $0x70] sm:$0xff] }
 0x698   : > { %v3999_v13 = vld [vmem:[%s12531_s7 + $0xf0] sm:$0xff]  ;;  %v8542_v30 = vpack.c.bf16 %v3997_v37, %v3981_v26  ;;  %v8592_v26 = vpack.c.bf16 %v4160_v54, %v4144_v52  ;;  %v5025_v54 = vld [vmem:[%s12533_s9 + $0x20] sm:$0xff] }
 0x699   : > { %v8574_v22 = vpack.c.bf16 %v3999_v13, %v3983_v0  ;;  %v4143_v37 = vld [vmem:[%s12531_s7 + $0x570] sm:$0xff]  ;;  %v4190_v0 = vld [vmem:[%s12531_s7 + $0x6e8] sm:$0xff]  ;;  %v4176_v13 = vld [vmem:[%s12531_s7 + $0x678] sm:$0xff] }
 0x69a   : > { %8491 = vmatpush1.bf16.msra.mxu1 %v8490_v5  ;;  %8523 = vmatpush1.bf16.msra.mxu0 %v8522_v4  ;;  %v4013_v5 = vld [vmem:[%s12531_s7 + $0x160] sm:$0xff] }
 0x69b   : > { %8493 = vmatprep.subr.bf16.mxu1 %v8492_v46  ;;  %8525 = vmatprep.subr.bf16.mxu0 %v8524_v59  ;;  %v4029_v4 = vld [vmem:[%s12531_s7 + $0x1e0] sm:$0xff]  ;;  %v4015_v46 = vld [vmem:[%s12531_s7 + $0x170] sm:$0xff] }
 0x69c   : > { %v4031_v59 = vld [vmem:[%s12531_s7 + $0x1f0] sm:$0xff]  ;;  %v8546_v31 = vpack.c.bf16 %v4029_v4, %v4013_v5  ;;  %v8596_v5 = vpack.c.bf16 %v4192_v36, %v4176_v13  ;;  %v5028_v36 = vld [vmem:[%s12533_s9 + $0x38] sm:$0xff] }
 0x69d   : > { %v8578_v17 = vpack.c.bf16 %v4031_v59, %v4015_v46  ;;  %v4175_v4 = vld [vmem:[%s12531_s7 + $0x670] sm:$0xff]  ;;  %v4222_v46 = vld [vmem:[%s12531_s7 + $0x7e8] sm:$0xff]  ;;  %v4208_v59 = vld [vmem:[%s12531_s7 + $0x778] sm:$0xff] }
 0x69e   : > { %8495 = vmatpush1.bf16.msra.mxu1 %v8494_v34  ;;  %8527 = vmatpush1.bf16.msra.mxu0 %v8526_v53  ;;  %v4045_v34 = vld [vmem:[%s12531_s7 + $0x260] sm:$0xff]  ;;  %v5027_v13 = vld [vmem:[%s12533_s9 + $0x30] sm:$0xff] }
 0x69f   : > { %8497 = vmatprep.subr.bf16.mxu1 %v8496_v35  ;;  %8529 = vmatprep.subr.bf16.mxu0 %v8528_v49  ;;  %v4061_v53 = vld [vmem:[%s12531_s7 + $0x2e0] sm:$0xff]  ;;  %v4047_v35 = vld [vmem:[%s12531_s7 + $0x270] sm:$0xff] }
 0x6a0   : > { %v4063_v49 = vld [vmem:[%s12531_s7 + $0x2f0] sm:$0xff]  ;;  %v8550_v2 = vpack.c.bf16 %v4061_v53, %v4045_v34  ;;  %v8600_v34 = vpack.c.bf16 %v4224_v29, %v4208_v59  ;;  %v5029_v59 = vld [vmem:[%s12533_s9 + $0x40] sm:$0xff]  ;;  %v5030_v29 = vld [vmem:[%s12533_s9 + $0x48] sm:$0xff] }
 0x6a1   : > { %v8582_v50 = vpack.c.bf16 %v4063_v49, %v4047_v35  ;;  %v4207_v53 = vld [vmem:[%s12531_s7 + $0x770] sm:$0xff]  ;;  %v5038_v35 = vld [vmem:[%s12533_s9 + $0x88] sm:$0xff]  ;;  %v5069_v49 = vld [vmem:[%s12533_s9 + $0x180] sm:$0xff] }
 0x6a2   : > { %8499 = vmatpush1.bf16.msra.mxu1 %v8498_v3  ;;  %8531 = vmatpush1.bf16.msra.mxu0 %v8530_v24  ;;  %v4077_v3 = vld [vmem:[%s12531_s7 + $0x360] sm:$0xff] }
 0x6a3   : > { %8501 = vmatprep.subr.bf16.mxu1 %v8500_v6  ;;  %8533 = vmatprep.subr.bf16.mxu0 %v8532_v27  ;;  %v4093_v24 = vld [vmem:[%s12531_s7 + $0x3e0] sm:$0xff]  ;;  %v4095_v6 = vld [vmem:[%s12531_s7 + $0x3f0] sm:$0xff]  ;;  %v4110_v27 = vld [vmem:[%s12531_s7 + $0x468] sm:$0xff] }
 0x6a4   : > { %v8554_v9 = vpack.c.bf16 %v4093_v24, %v4077_v3  ;;  %v8636_v3 = vpack.c.bf16 %v5070_v55, %v5069_v49  ;;  %v5053_v24 = vld [vmem:[%s12533_s9 + $0x100] sm:$0xff]  ;;  %v5031_v49 = vld [vmem:[%s12533_s9 + $0x50] sm:$0xff]  ;;  %v5032_v55 = vld [vmem:[%s12533_s9 + $0x58] sm:$0xff] }
 0x6a6   : > { %8503 = vmatpush1.bf16.msra.mxu1 %v8502_v60  ;;  %8535 = vmatpush1.bf16.msra.mxu0 %v8534_v20  ;;  %v4125_v60 = vld [vmem:[%s12531_s7 + $0x4e0] sm:$0xff]  ;;  %v8556_v20 = vpack.c.bf16 %v4126_v15, %v4110_v27  ;;  %v5072_v27 = vld [vmem:[%s12533_s9 + $0x198] sm:$0xff] }
 0x6a7   : > { %8505 = vmatprep.subr.bf16.mxu1 %v8504_v19  ;;  %8537 = vmatprep.subr.bf16.mxu0 %v8536_v63  ;;  %v4127_v19 = vld [vmem:[%s12531_s7 + $0x4f0] sm:$0xff]  ;;  %v4142_v63 = vld [vmem:[%s12531_s7 + $0x568] sm:$0xff]  ;;  %v8558_v51 = vpack.c.bf16 %v4125_v60, %v4109_v61 }
 0x6a8   : > { %v8590_v48 = vpack.c.bf16 %v4127_v19, %v4111_v39  ;;  %v5055_v60 = vld [vmem:[%s12533_s9 + $0x110] sm:$0xff]  ;;  %v5042_v39 = vld [vmem:[%s12533_s9 + $0xa8] sm:$0xff]  ;;  %v5073_v19 = vld [vmem:[%s12533_s9 + $0x1a0] sm:$0xff] }
 0x6aa   : > { %8507 = vmatpush1.bf16.msra.mxu1 %v8506_v32  ;;  %8539 = vmatpush1.bf16.msra.mxu0 %v8538_v18  ;;  %v4157_v32 = vld [vmem:[%s12531_s7 + $0x5e0] sm:$0xff]  ;;  %v8560_v18 = vpack.c.bf16 %v4158_v47, %v4142_v63  ;;  %v5074_v63 = vld [vmem:[%s12533_s9 + $0x1a8] sm:$0xff] }
 0x6ab   : > { %8541 = vmatprep.subr.bf16.mxu1 %v8540_v21  ;;  %8573 = vmatprep.subr.bf16.mxu0 %v8572_v38  ;;  %v4159_v21 = vld [vmem:[%s12531_s7 + $0x5f0] sm:$0xff]  ;;  %v4174_v38 = vld [vmem:[%s12531_s7 + $0x668] sm:$0xff]  ;;  %v8562_v10 = vpack.c.bf16 %v4157_v32, %v4141_v11  ;;  %v8644_v11 = vpack.c.bf16 %v5074_v63, %v5073_v19  ;;  %v5036_v63 = vld [vmem:[%s12533_s9 + $0x78] sm:$0xff] }
 0x6ac   : > { %v8594_v40 = vpack.c.bf16 %v4159_v21, %v4143_v37  ;;  %v5058_v32 = vld [vmem:[%s12533_s9 + $0x128] sm:$0xff]  ;;  %v5075_v37 = vld [vmem:[%s12533_s9 + $0x1b0] sm:$0xff]  ;;  %v5076_v21 = vld [vmem:[%s12533_s9 + $0x1b8] sm:$0xff] }
 0x6ad   : > { %4658 = vmatmul.mubr.f32.vlgmr.msra.gmra.mrb[38].mxu1 %v11004_v28  ;;  %4729 = vmatmul.mubr.f32.vlgmr.msra.gmra.mrb[28].mxu0 %v11004_v28  ;;  %v5035_v19 = vld [vmem:[%s12533_s9 + $0x70] sm:$0xff] }
 0x6ae   : > { %8543 = vmatpush1.bf16.msra.mxu1 %v8542_v30  ;;  %8575 = vmatpush1.bf16.msra.mxu0 %v8574_v22  ;;  %v4189_v30 = vld [vmem:[%s12531_s7 + $0x6e0] sm:$0xff]  ;;  %v8564_v22 = vpack.c.bf16 %v4190_v0, %v4174_v38 }
 0x6af   : > { %8545 = vmatprep.subr.bf16.mxu1 %v8544_v43  ;;  %8577 = vmatprep.subr.bf16.mxu0 %v8576_v33  ;;  %v4191_v43 = vld [vmem:[%s12531_s7 + $0x6f0] sm:$0xff]  ;;  %v4206_v33 = vld [vmem:[%s12531_s7 + $0x768] sm:$0xff]  ;;  %v8566_v42 = vpack.c.bf16 %v4189_v30, %v4173_v7  ;;  %v5060_v30 = vld [vmem:[%s12533_s9 + $0x138] sm:$0xff] }
 0x6b0   : > { %4799 = vmatprep.mubr.f32.mxu1 %v9066_v1  ;;  %4870 = vmatprep.mubr.f32.mxu0 %v9066_v1  ;;  %v4079_v1 = vld [vmem:[%s12531_s7 + $0x370] sm:$0xff]  ;;  %v8598_v62 = vpack.c.bf16 %v4191_v43, %v4175_v4  ;;  %v5077_v4 = vld [vmem:[%s12533_s9 + $0x1c0] sm:$0xff]  ;;  %v5078_v43 = vld [vmem:[%s12533_s9 + $0x1c8] sm:$0xff] }
 0x6b1   : > { %v8586_v58 = vpack.c.bf16 %v4095_v6, %v4079_v1  ;;  %v5040_v1 = vld [vmem:[%s12533_s9 + $0x98] sm:$0xff]  ;;  %v5071_v6 = vld [vmem:[%s12533_s9 + $0x190] sm:$0xff] }
 0x6b2   : > { %8547 = vmatpush1.bf16.msra.mxu1 %v8546_v31  ;;  %8579 = vmatpush1.bf16.msra.mxu0 %v8578_v17  ;;  %v4221_v31 = vld [vmem:[%s12531_s7 + $0x7e0] sm:$0xff]  ;;  %v8568_v17 = vpack.c.bf16 %v4222_v46, %v4206_v33  ;;  %v8640_v61 = vpack.c.bf16 %v5072_v27, %v5071_v6  ;;  %v5059_v7 = vld [vmem:[%s12533_s9 + $0x130] sm:$0xff]  ;;  %v8618_v33 = vpack.c.bf16 %v5028_v36, %v5027_v13  ;;  %v5034_v27 = vld [vmem:[%s12533_s9 + $0x68] sm:$0xff] }
 0x6b3   : > { %8549 = vmatprep.subr.bf16.mxu1 %v8548_v8  ;;  %8581 = vmatprep.subr.bf16.mxu0 %v8580_v12  ;;  %v4223_v8 = vld [vmem:[%s12531_s7 + $0x7f0] sm:$0xff]  ;;  %v5037_v12 = vld [vmem:[%s12533_s9 + $0x80] sm:$0xff]  ;;  %v8570_v23 = vpack.c.bf16 %v4221_v31, %v4205_v57  ;;  %v8650_v46 = vpack.c.bf16 %v5060_v30, %v5059_v7  ;;  %v5062_v31 = vld [vmem:[%s12533_s9 + $0x148] sm:$0xff] }
 0x6b4   : > { %v8602_v14 = vpack.c.bf16 %v4223_v8, %v4207_v53  ;;  %v5061_v57 = vld [vmem:[%s12533_s9 + $0x140] sm:$0xff]  ;;  %v5079_v53 = vld [vmem:[%s12533_s9 + $0x1d0] sm:$0xff]  ;;  %v5080_v8 = vld [vmem:[%s12533_s9 + $0x1d8] sm:$0xff] }
 0x6b5   : > { %v5033_v6 = vld [vmem:[%s12533_s9 + $0x60] sm:$0xff] }
 0x6b6   : > { %8551 = vmatpush1.bf16.msra.mxu1 %v8550_v2  ;;  %8583 = vmatpush1.bf16.msra.mxu0 %v8582_v50  ;;  %v5022_v2 = vld [vmem:[%s12533_s9 + $0x8] sm:$0xff]  ;;  %v8604_v50 = vpack.c.bf16 %v5038_v35, %v5037_v12  ;;  %v8622_v12 = vpack.c.bf16 %v5030_v29, %v5029_v59  ;;  %v8654_v35 = vpack.c.bf16 %v5062_v31, %v5061_v57 }
 0x6b7   : > { %8553 = vmatprep.subr.bf16.mxu1 %v8552_v25  ;;  %8585 = vmatprep.subr.bf16.mxu0 %v8584_v16  ;;  %v5054_v25 = vld [vmem:[%s12533_s9 + $0x108] sm:$0xff]  ;;  %v5039_v16 = vld [vmem:[%s12533_s9 + $0x90] sm:$0xff]  ;;  %v8606_v15 = vpack.c.bf16 %v5022_v2, %v5021_v41  ;;  %v5064_v2 = vld [vmem:[%s12533_s9 + $0x158] sm:$0xff] }
 0x6b8   : > { %v8638_v44 = vpack.c.bf16 %v5054_v25, %v5053_v24  ;;  %v5063_v41 = vld [vmem:[%s12533_s9 + $0x150] sm:$0xff]  ;;  %v5081_v24 = vld [vmem:[%s12533_s9 + $0x1e0] sm:$0xff]  ;;  %v5082_v25 = vld [vmem:[%s12533_s9 + $0x1e8] sm:$0xff] }
 0x6ba   : > { %8555 = vmatpush1.bf16.msra.mxu1 %v8554_v9  ;;  %8587 = vmatpush1.bf16.msra.mxu0 %v8586_v58  ;;  %v5024_v9 = vld [vmem:[%s12533_s9 + $0x18] sm:$0xff]  ;;  %v8608_v58 = vpack.c.bf16 %v5040_v1, %v5039_v16  ;;  %v8626_v16 = vpack.c.bf16 %v5032_v55, %v5031_v49  ;;  %v8658_v1 = vpack.c.bf16 %v5064_v2, %v5063_v41 }
 0x6bb   : > { %8557 = vmatprep.subr.bf16.mxu1 %v8556_v20  ;;  %8589 = vmatprep.subr.bf16.mxu0 %v8588_v56  ;;  %v5056_v20 = vld [vmem:[%s12533_s9 + $0x118] sm:$0xff]  ;;  %v5041_v56 = vld [vmem:[%s12533_s9 + $0xa0] sm:$0xff]  ;;  %v8610_v47 = vpack.c.bf16 %v5024_v9, %v5023_v45  ;;  %v5066_v9 = vld [vmem:[%s12533_s9 + $0x168] sm:$0xff] }
 0x6bc   : > { %v8642_v52 = vpack.c.bf16 %v5056_v20, %v5055_v60  ;;  %v5065_v45 = vld [vmem:[%s12533_s9 + $0x160] sm:$0xff]  ;;  %v5083_v60 = vld [vmem:[%s12533_s9 + $0x1f0] sm:$0xff]  ;;  %v5084_v20 = vld [vmem:[%s12533_s9 + $0x1f8] sm:$0xff] }
 0x6be   : > { %8559 = vmatpush1.bf16.msra.mxu1 %v8558_v51  ;;  %8591 = vmatpush1.bf16.msra.mxu0 %v8590_v48  ;;  %v5026_v51 = vld [vmem:[%s12533_s9 + $0x28] sm:$0xff]  ;;  %v8612_v48 = vpack.c.bf16 %v5042_v39, %v5041_v56  ;;  %v8630_v56 = vpack.c.bf16 %v5034_v27, %v5033_v6  ;;  %v8662_v39 = vpack.c.bf16 %v5066_v9, %v5065_v45 }
 0x6bf   : > { %8561 = vmatprep.subr.bf16.mxu1 %v8560_v18  ;;  %8593 = vmatprep.subr.bf16.mxu0 %v8592_v26  ;;  %v5043_v18 = vld [vmem:[%s12533_s9 + $0xb0] sm:$0xff]  ;;  %v5044_v26 = vld [vmem:[%s12533_s9 + $0xb8] sm:$0xff]  ;;  %v8614_v38 = vpack.c.bf16 %v5026_v51, %v5025_v54  ;;  %v5086_v9 = vld [vmem:[%s12533_s9 + $0x208] sm:$0xff] }
 0x6c0   : > { %v5067_v54 = vld [vmem:[%s12533_s9 + $0x170] sm:$0xff]  ;;  %v5068_v51 = vld [vmem:[%s12533_s9 + $0x178] sm:$0xff] }
 0x6c2   : > { %8563 = vmatpush1.bf16.msra.mxu1 %v8562_v10  ;;  %8595 = vmatpush1.bf16.msra.mxu0 %v8594_v40  ;;  %v8616_v10 = vpack.c.bf16 %v5044_v26, %v5043_v18  ;;  %v8648_v40 = vpack.c.bf16 %v5076_v21, %v5075_v37  ;;  %v8634_v18 = vpack.c.bf16 %v5036_v63, %v5035_v19 }
 0x6c3   : > { %8565 = vmatprep.subr.bf16.mxu1 %v8564_v22  ;;  %8597 = vmatprep.subr.bf16.mxu0 %v8596_v5  ;;  %v5045_v22 = vld [vmem:[%s12533_s9 + $0xc0] sm:$0xff]  ;;  %v5046_v5 = vld [vmem:[%s12533_s9 + $0xc8] sm:$0xff]  ;;  %v8666_v26 = vpack.c.bf16 %v5068_v51, %v5067_v54 }
 0x6c6   : > { %8567 = vmatpush1.bf16.msra.mxu1 %v8566_v42  ;;  %8599 = vmatpush1.bf16.msra.mxu0 %v8598_v62  ;;  %v8620_v42 = vpack.c.bf16 %v5046_v5, %v5045_v22  ;;  %v8652_v62 = vpack.c.bf16 %v5078_v43, %v5077_v4 }
 0x6c7   : > { %8569 = vmatprep.subr.bf16.mxu1 %v8568_v17  ;;  %8601 = vmatprep.subr.bf16.mxu0 %v8600_v34  ;;  %v5047_v17 = vld [vmem:[%s12533_s9 + $0xd0] sm:$0xff]  ;;  %v5048_v34 = vld [vmem:[%s12533_s9 + $0xd8] sm:$0xff] }
 0x6ca   : > { %8571 = vmatpush1.bf16.msra.mxu1 %v8570_v23  ;;  %8603 = vmatpush1.bf16.msra.mxu0 %v8602_v14  ;;  %v8624_v23 = vpack.c.bf16 %v5048_v34, %v5047_v17  ;;  %v8656_v14 = vpack.c.bf16 %v5080_v8, %v5079_v53 }
 0x6cb   : > { %8605 = vmatprep.subr.bf16.mxu1 %v8604_v50  ;;  %8637 = vmatprep.subr.bf16.mxu0 %v8636_v3  ;;  %v5049_v50 = vld [vmem:[%s12533_s9 + $0xe0] sm:$0xff]  ;;  %v5050_v3 = vld [vmem:[%s12533_s9 + $0xe8] sm:$0xff] }
 0x6cd   : > { %4800 = vmatmul.mubr.f32.vlgmr.msra.gmra.mrb[40].mxu1 %v11004_v28  ;;  %4871 = vmatmul.mubr.f32.vlgmr.msra.gmra.mrb[30].mxu0 %v11004_v28  ;;  %v5057_v28 = vld [vmem:[%s12533_s9 + $0x120] sm:$0xff] }
 0x6ce   : > { %8607 = vmatpush3.bf16.msra.mxu1 %v8606_v15  ;;  %8639 = vmatpush3.bf16.msra.mxu0 %v8638_v44  ;;  %v8646_v0 = vpack.c.bf16 %v5058_v32, %v5057_v28  ;;  %v8628_v15 = vpack.c.bf16 %v5050_v3, %v5049_v50  ;;  %v8660_v44 = vpack.c.bf16 %v5082_v25, %v5081_v24  ;;  %v5133_v28 = vld [vmem:[%s12533_s9 + $0x380] sm:$0xff]  ;;  %v5134_v32 = vld [vmem:[%s12533_s9 + $0x388] sm:$0xff] }
 0x6cf   : > { %8609 = vmatprep.subr.bf16.mxu1 %v8608_v58  ;;  %8641 = vmatprep.subr.bf16.mxu0 %v8640_v61  ;;  %v5051_v58 = vld [vmem:[%s12533_s9 + $0xf0] sm:$0xff]  ;;  %v5052_v61 = vld [vmem:[%s12533_s9 + $0xf8] sm:$0xff]  ;;  %v8700_v21 = vpack.c.bf16 %v5134_v32, %v5133_v28 }
 0x6d0   : > { %v5135_v32 = vld [vmem:[%s12533_s9 + $0x390] sm:$0xff] }
 0x6d2   : > { %8611 = vmatpush3.bf16.msra.mxu1 %v8610_v47  ;;  %8643 = vmatpush3.bf16.msra.mxu0 %v8642_v52  ;;  %v8632_v47 = vpack.c.bf16 %v5052_v61, %v5051_v58  ;;  %v8664_v52 = vpack.c.bf16 %v5084_v20, %v5083_v60  ;;  %v5117_v58 = vld [vmem:[%s12533_s9 + $0x300] sm:$0xff]  ;;  %v5118_v61 = vld [vmem:[%s12533_s9 + $0x308] sm:$0xff] }
 0x6d3   : > { %8613 = vmatprep.subr.bf16.mxu1 %v8612_v48  ;;  %8645 = vmatprep.subr.bf16.mxu0 %v8644_v11  ;;  %v5101_v48 = vld [vmem:[%s12533_s9 + $0x280] sm:$0xff]  ;;  %v5102_v11 = vld [vmem:[%s12533_s9 + $0x288] sm:$0xff] }
 0x6d4   : > { %v8668_v37 = vpack.c.bf16 %v5102_v11, %v5101_v48 }
 0x6d6   : > { %8615 = vmatpush3.bf16.msra.mxu1 %v8614_v38  ;;  %8647 = vmatpush3.bf16.msra.mxu0 %v8646_v0  ;;  %v4229_v38 = vlaneseq }
 0x6d7   : > { %8617 = vmatprep.subr.bf16.mxu1 %v8616_v10  ;;  %8649 = vmatprep.subr.bf16.mxu0 %v8648_v40  ;;  %v11765_v10 = vld [vmem:[%s12532_s8] sm:$0xff] }
 0x6d8   : > { %v11758_v0 = vshrl.u32 %v4229_v38, 7 }
 0x6da   : > { %8619 = vmatpush3.bf16.msra.mxu1 %v8618_v33  ;;  %8651 = vmatpush3.bf16.msra.mxu0 %v8650_v46  ;;  %v4231_v13 = vsub.s32 0, %v11758_v0  ;;  %v4239_v36 = vsub.s32 2, %v11758_v0  ;;  %v4235_v40 = vsub.s32 1, %v11758_v0  ;;  %v4243_v7 = vsub.s32 3, %v11758_v0 }
 0x6db   : > { %8621 = vmatprep.subr.bf16.mxu1 %v8620_v42  ;;  %8653 = vmatprep.subr.bf16.mxu0 %v8652_v62  ;;  %v4247_v60 = vsub.s32 4, %v11758_v0  ;;  %v4255_v19 = vsub.s32 6, %v11758_v0  ;;  %v4251_v63 = vsub.s32 5, %v11758_v0  ;;  %v4259_v28 = vsub.s32 7, %v11758_v0  ;;  %v5217_v0 = vld [vmem:[%s12533_s9 + $0x620] sm:$0xff] }
 0x6dc   : > { %v4232_v30 = vrot.slane %v11765_v10, %v4231_v13  ;;  %v4240_v22 = vrot.slane %v11765_v10, %v4239_v36  ;;  %v4236_v5 = vrot.slane %v11765_v10, %v4235_v40  ;;  %v4244_v4 = vrot.slane %v11765_v10, %v4243_v7 }
 0x6de   : > { %8623 = vmatpush3.bf16.msra.mxu1 %v8622_v12  ;;  %8655 = vmatpush3.bf16.msra.mxu0 %v8654_v35 }
 0x6df   : > { %8625 = vmatprep.subr.bf16.mxu1 %v8624_v23  ;;  %8657 = vmatprep.subr.bf16.mxu0 %v8656_v14 }
 0x6e2   : > { %8627 = vmatpush3.bf16.msra.mxu1 %v8626_v16  ;;  %8659 = vmatpush3.bf16.msra.mxu0 %v8658_v1 }
 0x6e3   : > { %8629 = vmatprep.subr.bf16.mxu1 %v8628_v15  ;;  %8661 = vmatprep.subr.bf16.mxu0 %v8660_v44  ;;  %v5085_v15 = vld [vmem:[%s12533_s9 + $0x200] sm:$0xff] }
 0x6e4   : > { %v8670_v38 = vpack.c.bf16 %v5086_v9, %v5085_v15  ;;  %v5140_v9 = vld [vmem:[%s12533_s9 + $0x3b8] sm:$0xff] }
 0x6e6   : > { %8631 = vmatpush3.bf16.msra.mxu1 %v8630_v56  ;;  %8663 = vmatpush3.bf16.msra.mxu0 %v8662_v39 }
 0x6e7   : > { %8633 = vmatprep.subr.bf16.mxu1 %v8632_v47  ;;  %8665 = vmatprep.subr.bf16.mxu0 %v8664_v52  ;;  %v5103_v47 = vld [vmem:[%s12533_s9 + $0x290] sm:$0xff]  ;;  %v5104_v52 = vld [vmem:[%s12533_s9 + $0x298] sm:$0xff] }
 0x6ea   : > { %8635 = vmatpush3.bf16.msra.mxu1 %v8634_v18  ;;  %8667 = vmatpush3.bf16.msra.mxu0 %v8666_v26  ;;  %v5136_v18 = vld [vmem:[%s12533_s9 + $0x398] sm:$0xff] }
 0x6eb   : > { %8669 = vmatprep.subr.bf16.mxu1 %v8668_v37  ;;  %8701 = vmatprep.subr.bf16.mxu0 %v8700_v21 }
 0x740   : > { %v4375_v43 = vpop.f32.mrb[34].mxu1  ;;  %v4446_v33 = vpop.f32.mrb[24].mxu0 }
 0x741   : > { %v4376_v46 = vadd.f32 %v4375_v43, %v4232_v30  ;;  %v4447_v59 = vadd.f32 %v4446_v33, %v4240_v22  ;;  %v4377_v29 = vpop.f32.mrb[35].mxu1  ;;  %v4448_v42 = vpop.f32.mrb[25].mxu0  ;;  %v5087_v43 = vld [vmem:[%s12533_s9 + $0x210] sm:$0xff]  ;;  %v5088_v33 = vld [vmem:[%s12533_s9 + $0x218] sm:$0xff] }
 0x742   : > { %v4378_v62 = vadd.f32 %v4377_v29, %v4236_v5  ;;  %v4449_v57 = vadd.f32 %v4448_v42, %v4244_v4  ;;  %v8702_v5 = vpack.c.bf16 %v5118_v61, %v5117_v58  ;;  %v8672_v4 = vpack.c.bf16 %v5104_v52, %v5103_v47 }
 0x743   : > { %v4893_v31 = vmul.f32 0.044715, %v4376_v46  ;;  %v4895_v17 = vmul.f32 0.044715, %v4447_v59  ;;  %v4877_v11 = vmul.f32 0.5, %v4376_v46  ;;  %v4879_v37 = vmul.f32 0.5, %v4447_v59 }
 0x744   : > { %v4894_v34 = vmul.f32 0.044715, %v4378_v62  ;;  %v4896_v53 = vmul.f32 0.044715, %v4449_v57  ;;  %v4878_v56 = vmul.f32 0.5, %v4378_v62  ;;  %v4880_v51 = vmul.f32 0.5, %v4449_v57 }
 0x745   : > { %v4909_v8 = vmul.f32 %v4893_v31, %v4376_v46  ;;  %v4911_v12 = vmul.f32 %v4895_v17, %v4447_v59  ;;  %v4248_v29 = vrot.slane %v11765_v10, %v4247_v60  ;;  %v4256_v42 = vrot.slane %v11765_v10, %v4255_v19  ;;  %v5105_v31 = vld [vmem:[%s12533_s9 + $0x2a0] sm:$0xff]  ;;  %v5106_v17 = vld [vmem:[%s12533_s9 + $0x2a8] sm:$0xff] }
 0x746   : > { %v4910_v35 = vmul.f32 %v4894_v34, %v4378_v62  ;;  %v4912_v49 = vmul.f32 %v4896_v53, %v4449_v57  ;;  %v4252_v34 = vrot.slane %v11765_v10, %v4251_v63  ;;  %v4260_v53 = vrot.slane %v11765_v10, %v4259_v28  ;;  %v5089_v10 = vld [vmem:[%s12533_s9 + $0x220] sm:$0xff] }
 0x747   : > { %v4925_v55 = vmul.f32 %v4909_v8, %v4376_v46  ;;  %v4927_v23 = vmul.f32 %v4911_v12, %v4447_v59  ;;  %v5137_v8 = vld [vmem:[%s12533_s9 + $0x3a0] sm:$0xff]  ;;  %v5138_v12 = vld [vmem:[%s12533_s9 + $0x3a8] sm:$0xff] }
 0x748   : > { %v4926_v14 = vmul.f32 %v4910_v35, %v4378_v62  ;;  %v4928_v41 = vmul.f32 %v4912_v49, %v4449_v57  ;;  %v8674_v35 = vpack.c.bf16 %v5088_v33, %v5087_v43 }
 0x749   : > { %v4941_v2 = vadd.f32 %v4925_v55, %v4376_v46  ;;  %v4943_v50 = vadd.f32 %v4927_v23, %v4447_v59  ;;  %v5119_v46 = vld [vmem:[%s12533_s9 + $0x310] sm:$0xff] }
 0x74a   : > { %v4942_v3 = vadd.f32 %v4926_v14, %v4378_v62  ;;  %v4944_v24 = vadd.f32 %v4928_v41, %v4449_v57  ;;  %v8704_v62 = vpack.c.bf16 %v5136_v18, %v5135_v32  ;;  %v5120_v57 = vld [vmem:[%s12533_s9 + $0x318] sm:$0xff]  ;;  %v8676_v14 = vpack.c.bf16 %v5106_v17, %v5105_v31  ;;  %v5090_v41 = vld [vmem:[%s12533_s9 + $0x228] sm:$0xff] }
 0x74b   : > { %v4957_v25 = vmul.f32 0.7978846, %v4941_v2  ;;  %v4959_v6 = vmul.f32 0.7978846, %v4943_v50  ;;  %v8706_v23 = vpack.c.bf16 %v5120_v57, %v5119_v46  ;;  %v5121_v2 = vld [vmem:[%s12533_s9 + $0x320] sm:$0xff]  ;;  %v5126_v57 = vld [vmem:[%s12533_s9 + $0x348] sm:$0xff] }
 0x74c   : > { %v4958_v16 = vmul.f32 0.7978846, %v4942_v3  ;;  %v4960_v1 = vmul.f32 0.7978846, %v4944_v24 }
 0x74d   : > { %8932 = vtanh.f32 %v4957_v25 }
 0x74e   : > { %8934 = vtanh.f32 %v4958_v16  ;;  %v8708_v16 = vpack.c.bf16 %v5138_v12, %v5137_v8  ;;  %v5111_v12 = vld [vmem:[%s12533_s9 + $0x2d0] sm:$0xff] }
 0x74f   : > { %8936 = vtanh.f32 %v4960_v1  ;;  %v5122_v1 = vld [vmem:[%s12533_s9 + $0x328] sm:$0xff] }
 0x750   : > { %8938 = vtanh.f32 %v4959_v6  ;;  %v5107_v6 = vld [vmem:[%s12533_s9 + $0x2b0] sm:$0xff] }
 0x757   : > { %v8933_v27 = vpop.eup %8932 }
 0x758   : > { %v8935_v44 = vpop.eup %8934  ;;  %v4989_v45 = vadd.f32 1.0, %v8933_v27  ;;  %v5108_v27 = vld [vmem:[%s12533_s9 + $0x2b8] sm:$0xff] }
 0x759   : > { %v8937_v20 = vpop.eup %8936  ;;  %v4990_v39 = vadd.f32 1.0, %v8935_v44 }
 0x75a   : > { %v8939_v54 = vpop.eup %8938  ;;  %v4992_v48 = vadd.f32 1.0, %v8937_v20  ;;  %v5005_v22 = vmul.f32 %v4989_v45, %v4877_v11  ;;  %v5139_v45 = vld [vmem:[%s12533_s9 + $0x3b0] sm:$0xff]  ;;  %v8678_v20 = vpack.c.bf16 %v5090_v41, %v5089_v10  ;;  %v5124_v11 = vld [vmem:[%s12533_s9 + $0x338] sm:$0xff] }
 0x75b   : > { %v5006_v26 = vmul.f32 %v4990_v39, %v4878_v56  ;;  %v4991_v21 = vadd.f32 1.0, %v8939_v54  ;;  %v5091_v56 = vld [vmem:[%s12533_s9 + $0x230] sm:$0xff]  ;;  %v5092_v39 = vld [vmem:[%s12533_s9 + $0x238] sm:$0xff]  ;;  %v8710_v54 = vpack.c.bf16 %v5122_v1, %v5121_v2 }
 0x75c   : > { %v5008_v30 = vmul.f32 %v4992_v48, %v4880_v51  ;;  %v8680_v51 = vpack.c.bf16 %v5108_v27, %v5107_v6  ;;  %v5123_v48 = vld [vmem:[%s12533_s9 + $0x330] sm:$0xff]  ;;  %v8682_v33 = vpack.c.bf16 %v5092_v39, %v5091_v56  ;;  %v5145_v56 = vld [vmem:[%s12533_s9 + $0x3e0] sm:$0xff]  ;;  %v5146_v39 = vld [vmem:[%s12533_s9 + $0x3e8] sm:$0xff] }
 0x75d   : > { %5348 = vmatprep.mubr.f32.mxu1 %v5006_v26  ;;  %v5007_v59 = vmul.f32 %v4991_v21, %v4879_v37  ;;  %v8712_v26 = vpack.c.bf16 %v5140_v9, %v5139_v45  ;;  %v5109_v37 = vld [vmem:[%s12533_s9 + $0x2c0] sm:$0xff]  ;;  %v5110_v21 = vld [vmem:[%s12533_s9 + $0x2c8] sm:$0xff]  ;;  %v8714_v46 = vpack.c.bf16 %v5124_v11, %v5123_v48  ;;  %v5095_v2 = vld [vmem:[%s12533_s9 + $0x250] sm:$0xff] }
 0x75e   : > { %5418 = vmatprep.mubr.f32.mxu0 %v5008_v30  ;;  %5349 = vmatmul.mubr.f32.vlgmr.msra.gmra.mrb[42].mxu1 %v5005_v22  ;;  %v5141_v22 = vld [vmem:[%s12533_s9 + $0x3c0] sm:$0xff]  ;;  %v5098_v48 = vld [vmem:[%s12533_s9 + $0x268] sm:$0xff] }
 0x75f   : > { %5419 = vmatmul.mubr.f32.vlgmr.msra.gmra.mrb[32].mxu0 %v5007_v59  ;;  %8671 = vmatpush3.bf16.msra.mxu1 %v8670_v38  ;;  %v5093_v59 = vld [vmem:[%s12533_s9 + $0x240] sm:$0xff] }
 0x760   : > { %8703 = vmatpush3.bf16.msra.mxu0 %v8702_v5  ;;  %v4517_v49 = vpop.f32.mrb[36].mxu1  ;;  %v4588_v55 = vpop.f32.mrb[26].mxu0  ;;  %8673 = vmatprep.subr.bf16.mxu1 %v8672_v4  ;;  %v5142_v5 = vld [vmem:[%s12533_s9 + $0x3c8] sm:$0xff]  ;;  %v5129_v11 = vld [vmem:[%s12533_s9 + $0x360] sm:$0xff] }
 0x761   : > { %v11854_v50 = vadd.f32 %v4517_v49, %v4248_v29  ;;  %v11856_v3 = vadd.f32 %v4588_v55, %v4256_v42  ;;  %v4519_v24 = vpop.f32.mrb[37].mxu1  ;;  %v4590_v25 = vpop.f32.mrb[27].mxu0  ;;  %8705 = vmatprep.subr.bf16.mxu0 %v8704_v62  ;;  %v8684_v29 = vpack.c.bf16 %v5110_v21, %v5109_v37  ;;  %v5094_v42 = vld [vmem:[%s12533_s9 + $0x248] sm:$0xff]  ;;  %v5125_v62 = vld [vmem:[%s12533_s9 + $0x340] sm:$0xff]  ;;  %v8716_v8 = vpack.c.bf16 %v5142_v5, %v5141_v22  ;;  %v5143_v49 = vld [vmem:[%s12533_s9 + $0x3d0] sm:$0xff] }
 0x762   : > { %v11867_v15 = vadd.f32 %v4519_v24, %v4252_v34  ;;  %v11869_v44 = vadd.f32 %v4590_v25, %v4260_v53  ;;  %v5144_v55 = vld [vmem:[%s12533_s9 + $0x3d8] sm:$0xff]  ;;  %v8686_v10 = vpack.c.bf16 %v5094_v42, %v5093_v59  ;;  %v8718_v41 = vpack.c.bf16 %v5126_v57, %v5125_v62  ;;  %v5127_v25 = vld [vmem:[%s12533_s9 + $0x350] sm:$0xff]  ;;  %v5166_v42 = vld [vmem:[%s12533_s9 + $0x488] sm:$0xff] }
 0x763   : > { %v4897_v58 = vmul.f32 0.044715, %v11854_v50  ;;  %v4899_v61 = vmul.f32 0.044715, %v11856_v3  ;;  %8675 = vmatpush3.bf16.msra.mxu1 %v8674_v35  ;;  %v5112_v35 = vld [vmem:[%s12533_s9 + $0x2d8] sm:$0xff]  ;;  %v8720_v9 = vpack.c.bf16 %v5144_v55, %v5143_v49  ;;  %v5147_v21 = vld [vmem:[%s12533_s9 + $0x3f0] sm:$0xff] }
 0x764   : > { %v4898_v47 = vmul.f32 0.044715, %v11867_v15  ;;  %v4900_v52 = vmul.f32 0.044715, %v11869_v44  ;;  %8707 = vmatpush3.bf16.msra.mxu0 %v8706_v23  ;;  %8677 = vmatprep.subr.bf16.mxu1 %v8676_v14  ;;  %v5096_v24 = vld [vmem:[%s12533_s9 + $0x258] sm:$0xff]  ;;  %v8688_v1 = vpack.c.bf16 %v5112_v35, %v5111_v12  ;;  %v5099_v22 = vld [vmem:[%s12533_s9 + $0x270] sm:$0xff] }
 0x765   : > { %v4913_v32 = vmul.f32 %v4897_v58, %v11854_v50  ;;  %v4915_v18 = vmul.f32 %v4899_v61, %v11856_v3  ;;  %8709 = vmatprep.subr.bf16.mxu0 %v8708_v16  ;;  %v5128_v58 = vld [vmem:[%s12533_s9 + $0x358] sm:$0xff]  ;;  %v5113_v61 = vld [vmem:[%s12533_s9 + $0x2e0] sm:$0xff]  ;;  %v5198_v57 = vld [vmem:[%s12533_s9 + $0x588] sm:$0xff] }
 0x766   : > { %v4914_v38 = vmul.f32 %v4898_v47, %v11867_v15  ;;  %v4916_v30 = vmul.f32 %v4900_v52, %v11869_v44  ;;  %v8690_v47 = vpack.c.bf16 %v5096_v24, %v5095_v2  ;;  %v8722_v52 = vpack.c.bf16 %v5128_v58, %v5127_v25  ;;  %v5116_v37 = vld [vmem:[%s12533_s9 + $0x2f8] sm:$0xff]  ;;  %v5197_v62 = vld [vmem:[%s12533_s9 + $0x580] sm:$0xff]  ;;  %v5182_v12 = vld [vmem:[%s12533_s9 + $0x508] sm:$0xff] }
 0x767   : > { %v4929_v4 = vmul.f32 %v4913_v32, %v11854_v50  ;;  %v4931_v43 = vmul.f32 %v4915_v18, %v11856_v3  ;;  %8679 = vmatpush3.bf16.msra.mxu1 %v8678_v20  ;;  %v5114_v20 = vld [vmem:[%s12533_s9 + $0x2e8] sm:$0xff]  ;;  %v8724_v32 = vpack.c.bf16 %v5146_v39, %v5145_v56  ;;  %v8764_v24 = vpack.c.bf16 %v5198_v57, %v5197_v62 }
 0x768   : > { %8711 = vmatpush3.bf16.msra.mxu0 %v8710_v54  ;;  %8681 = vmatprep.subr.bf16.mxu1 %v8680_v51  ;;  %v4930_v31 = vmul.f32 %v4914_v38, %v11867_v15  ;;  %v4932_v17 = vmul.f32 %v4916_v30, %v11869_v44  ;;  %v8692_v54 = vpack.c.bf16 %v5114_v20, %v5113_v61  ;;  %v5097_v51 = vld [vmem:[%s12533_s9 + $0x260] sm:$0xff]  ;;  %v5130_v18 = vld [vmem:[%s12533_s9 + $0x368] sm:$0xff]  ;;  %v5148_v38 = vld [vmem:[%s12533_s9 + $0x3f8] sm:$0xff]  ;;  %v4883_v56 = vmul.f32 0.5, %v11856_v3 }
 0x769   : > { %v4945_v34 = vadd.f32 %v4929_v4, %v11854_v50  ;;  %v4947_v53 = vadd.f32 %v4931_v43, %v11856_v3  ;;  %8713 = vmatprep.subr.bf16.mxu0 %v8712_v26  ;;  %v5115_v26 = vld [vmem:[%s12533_s9 + $0x2f0] sm:$0xff]  ;;  %v8694_v30 = vpack.c.bf16 %v5098_v48, %v5097_v51  ;;  %v8726_v5 = vpack.c.bf16 %v5130_v18, %v5129_v11  ;;  %v5100_v43 = vld [vmem:[%s12533_s9 + $0x278] sm:$0xff]  ;;  %v5169_v18 = vld [vmem:[%s12533_s9 + $0x4a0] sm:$0xff] }
 0x76a   : > { %v4946_v23 = vadd.f32 %v4930_v31, %v11867_v15  ;;  %v4948_v14 = vadd.f32 %v4932_v17, %v11869_v44  ;;  %v8696_v4 = vpack.c.bf16 %v5116_v37, %v5115_v26  ;;  %v8728_v59 = vpack.c.bf16 %v5148_v38, %v5147_v21  ;;  %v5149_v31 = vld [vmem:[%s12533_s9 + $0x400] sm:$0xff]  ;;  %v5150_v17 = vld [vmem:[%s12533_s9 + $0x408] sm:$0xff]  ;;  %v5200_v61 = vld [vmem:[%s12533_s9 + $0x598] sm:$0xff] }
 0x76b   : > { %8683 = vmatpush3.bf16.msra.mxu1 %v8682_v33  ;;  %v4961_v16 = vmul.f32 0.7978846, %v4945_v34  ;;  %v4963_v45 = vmul.f32 0.7978846, %v4947_v53  ;;  %v5131_v33 = vld [vmem:[%s12533_s9 + $0x370] sm:$0xff]  ;;  %v8698_v53 = vpack.c.bf16 %v5100_v43, %v5099_v22  ;;  %v8734_v25 = vpack.c.bf16 %v5150_v17, %v5149_v31  ;;  %v5152_v51 = vld [vmem:[%s12533_s9 + $0x418] sm:$0xff] }
 0x76c   : > { %8715 = vmatpush3.bf16.msra.mxu0 %v8714_v46  ;;  %8685 = vmatprep.subr.bf16.mxu1 %v8684_v29  ;;  %v4962_v6 = vmul.f32 0.7978846, %v4946_v23  ;;  %v4964_v27 = vmul.f32 0.7978846, %v4948_v14  ;;  %v5132_v46 = vld [vmem:[%s12533_s9 + $0x378] sm:$0xff]  ;;  %v5165_v29 = vld [vmem:[%s12533_s9 + $0x480] sm:$0xff] }
 0x76d   : > { %8717 = vmatprep.subr.bf16.mxu0 %v8716_v8  ;;  %8940 = vtanh.f32 %v4961_v16  ;;  %v5181_v8 = vld [vmem:[%s12533_s9 + $0x500] sm:$0xff]  ;;  %v8730_v49 = vpack.c.bf16 %v5132_v46, %v5131_v33  ;;  %v8732_v23 = vpack.c.bf16 %v5166_v42, %v5165_v29  ;;  %v12028_v14 = vld [vmem:[%s12532_s8 + $0x8] sm:$0xff]  ;;  %v5167_v16 = vld [vmem:[%s12533_s9 + $0x490] sm:$0xff] }
 0x76e   : > { %8942 = vtanh.f32 %v4962_v6  ;;  %v8766_v58 = vpack.c.bf16 %v5182_v12, %v5181_v8  ;;  %v5183_v3 = vld [vmem:[%s12533_s9 + $0x510] sm:$0xff]  ;;  %v5170_v26 = vld [vmem:[%s12533_s9 + $0x4a8] sm:$0xff]  ;;  %v4268_v37 = vrot.slane %v12028_v14, %v4235_v40  ;;  %v5201_v21 = vld [vmem:[%s12533_s9 + $0x5a0] sm:$0xff] }
 0x76f   : > { %8687 = vmatpush3.bf16.msra.mxu1 %v8686_v10  ;;  %8944 = vtanh.f32 %v4964_v27  ;;  %v4884_v27 = vmul.f32 0.5, %v11869_v44  ;;  %v4264_v44 = vrot.slane %v12028_v14, %v4231_v13  ;;  %v4272_v13 = vrot.slane %v12028_v14, %v4239_v36  ;;  %v5202_v38 = vld [vmem:[%s12533_s9 + $0x5a8] sm:$0xff]  ;;  %v5185_v33 = vld [vmem:[%s12533_s9 + $0x520] sm:$0xff]  ;;  %v5171_v31 = vld [vmem:[%s12533_s9 + $0x4b0] sm:$0xff] }
 0x770   : > { %8719 = vmatpush3.bf16.msra.mxu0 %v8718_v41  ;;  %8689 = vmatprep.subr.bf16.mxu1 %v8688_v1  ;;  %8946 = vtanh.f32 %v4963_v45  ;;  %v4882_v41 = vmul.f32 0.5, %v11867_v15  ;;  %v5168_v1 = vld [vmem:[%s12533_s9 + $0x498] sm:$0xff]  ;;  %v5199_v15 = vld [vmem:[%s12533_s9 + $0x590] sm:$0xff]  ;;  %v4276_v36 = vrot.slane %v12028_v14, %v4243_v7  ;;  %v5153_v7 = vld [vmem:[%s12533_s9 + $0x420] sm:$0xff]  ;;  %v8772_v62 = vpack.c.bf16 %v5202_v38, %v5201_v21 }
 0x771   : > { %8721 = vmatprep.subr.bf16.mxu0 %v8720_v9  ;;  %v4881_v9 = vmul.f32 0.5, %v11854_v50  ;;  %v8768_v11 = vpack.c.bf16 %v5200_v61, %v5199_v15  ;;  %v5154_v43 = vld [vmem:[%s12533_s9 + $0x428] sm:$0xff]  ;;  %v5172_v17 = vld [vmem:[%s12533_s9 + $0x4b8] sm:$0xff]  ;;  %v5203_v8 = vld [vmem:[%s12533_s9 + $0x5b0] sm:$0xff] }
 0x772   : > { %v5186_v57 = vld [vmem:[%s12533_s9 + $0x528] sm:$0xff]  ;;  %v5204_v12 = vld [vmem:[%s12533_s9 + $0x5b8] sm:$0xff]  ;;  %v5207_v21 = vld [vmem:[%s12533_s9 + $0x5d0] sm:$0xff] }
 0x773   : > { %8691 = vmatpush3.bf16.msra.mxu1 %v8690_v47  ;;  %v5208_v38 = vld [vmem:[%s12533_s9 + $0x5d8] sm:$0xff] }
 0x774   : > { %8723 = vmatpush3.bf16.msra.mxu0 %v8722_v52  ;;  %8693 = vmatprep.subr.bf16.mxu1 %v8692_v54  ;;  %v8736_v52 = vpack.c.bf16 %v5168_v1, %v5167_v16  ;;  %v5151_v54 = vld [vmem:[%s12533_s9 + $0x410] sm:$0xff]  ;;  %v5188_v1 = vld [vmem:[%s12533_s9 + $0x538] sm:$0xff] }
 0x775   : > { %8725 = vmatprep.subr.bf16.mxu0 %v8724_v32  ;;  %v5184_v32 = vld [vmem:[%s12533_s9 + $0x518] sm:$0xff]  ;;  %v5187_v16 = vld [vmem:[%s12533_s9 + $0x530] sm:$0xff] }
 0x776   : > { %v8770_v40 = vpack.c.bf16 %v5184_v32, %v5183_v3  ;;  %v5189_v3 = vld [vmem:[%s12533_s9 + $0x540] sm:$0xff] }
 0x777   : > { %v8941_v34 = vpop.eup %8940  ;;  %8695 = vmatpush3.bf16.msra.mxu1 %v8694_v30  ;;  %v8738_v30 = vpack.c.bf16 %v5152_v51, %v5151_v54  ;;  %v5158_v51 = vld [vmem:[%s12533_s9 + $0x448] sm:$0xff] }
 0x778   : > { %v8943_v35 = vpop.eup %8942  ;;  %8727 = vmatpush3.bf16.msra.mxu0 %v8726_v5  ;;  %8697 = vmatprep.subr.bf16.mxu1 %v8696_v4  ;;  %v4993_v55 = vadd.f32 1.0, %v8941_v34  ;;  %v8740_v4 = vpack.c.bf16 %v5170_v26, %v5169_v18 }
 0x779   : > { %v8945_v10 = vpop.eup %8944  ;;  %8729 = vmatprep.subr.bf16.mxu0 %v8728_v59  ;;  %v4994_v2 = vadd.f32 1.0, %v8943_v35 }
 0x77a   : > { %v8947_v6 = vpop.eup %8946  ;;  %v4996_v45 = vadd.f32 1.0, %v8945_v10  ;;  %v5009_v47 = vmul.f32 %v4993_v55, %v4881_v9  ;;  %v8742_v55 = vpack.c.bf16 %v5154_v43, %v5153_v7  ;;  %v5156_v10 = vld [vmem:[%s12533_s9 + $0x438] sm:$0xff]  ;;  %v5173_v9 = vld [vmem:[%s12533_s9 + $0x4c0] sm:$0xff]  ;;  %v5191_v43 = vld [vmem:[%s12533_s9 + $0x550] sm:$0xff] }
 0x77b   : > { %8699 = vmatpush3.bf16.msra.mxu1 %v8698_v53  ;;  %v5010_v20 = vmul.f32 %v4994_v2, %v4882_v41  ;;  %v4995_v39 = vadd.f32 1.0, %v8947_v6  ;;  %v5160_v7 = vld [vmem:[%s12533_s9 + $0x458] sm:$0xff] }
 0x77c   : > { %8731 = vmatpush3.bf16.msra.mxu0 %v8730_v49  ;;  %v5012_v50 = vmul.f32 %v4996_v45, %v4884_v27  ;;  %8733 = vmatprep.subr.bf16.mxu1 %v8732_v23  ;;  %v5155_v23 = vld [vmem:[%s12533_s9 + $0x430] sm:$0xff]  ;;  %v8776_v45 = vpack.c.bf16 %v5204_v12, %v5203_v8  ;;  %v5177_v8 = vld [vmem:[%s12533_s9 + $0x4e0] sm:$0xff]  ;;  %v5178_v12 = vld [vmem:[%s12533_s9 + $0x4e8] sm:$0xff] }
 0x77d   : > { %5488 = vmatprep.mubr.f32.mxu1 %v5010_v20  ;;  %v5011_v48 = vmul.f32 %v4995_v39, %v4883_v56  ;;  %8765 = vmatprep.subr.bf16.mxu0 %v8764_v24  ;;  %v8774_v24 = vpack.c.bf16 %v5186_v57, %v5185_v33  ;;  %v5205_v20 = vld [vmem:[%s12533_s9 + $0x5c0] sm:$0xff]  ;;  %v5206_v56 = vld [vmem:[%s12533_s9 + $0x5c8] sm:$0xff] }
 0x77e   : > { %5558 = vmatprep.mubr.f32.mxu0 %v5012_v50  ;;  %5489 = vmatmul.mubr.f32.vlgmr.msra.gmra.mrb[44].mxu1 %v5009_v47  ;;  %v8746_v50 = vpack.c.bf16 %v5156_v10, %v5155_v23  ;;  %v8778_v47 = vpack.c.bf16 %v5188_v1, %v5187_v16  ;;  %v8780_v26 = vpack.c.bf16 %v5206_v56, %v5205_v20  ;;  %v5194_v16 = vld [vmem:[%s12533_s9 + $0x568] sm:$0xff]  ;;  %v5179_v1 = vld [vmem:[%s12533_s9 + $0x4f0] sm:$0xff]  ;;  %v5164_v20 = vld [vmem:[%s12533_s9 + $0x478] sm:$0xff] }
 0x77f   : > { %5559 = vmatmul.mubr.f32.vlgmr.msra.gmra.mrb[34].mxu0 %v5011_v48  ;;  %8735 = vmatpush3.bf16.msra.mxu1 %v8734_v25  ;;  %v8744_v25 = vpack.c.bf16 %v5172_v17, %v5171_v31  ;;  %v5190_v48 = vld [vmem:[%s12533_s9 + $0x548] sm:$0xff]  ;;  %v8784_v31 = vpack.c.bf16 %v5208_v38, %v5207_v21  ;;  %v5192_v17 = vld [vmem:[%s12533_s9 + $0x558] sm:$0xff]  ;;  %v8756_v10 = vpack.c.bf16 %v5178_v12, %v5177_v8  ;;  %v5195_v56 = vld [vmem:[%s12533_s9 + $0x570] sm:$0xff] }
 0x780   : > { %8767 = vmatpush3.bf16.msra.mxu0 %v8766_v58  ;;  %v4659_v22 = vpop.f32.mrb[38].mxu1  ;;  %v4730_v5 = vpop.f32.mrb[28].mxu0  ;;  %8737 = vmatprep.subr.bf16.mxu1 %v8736_v52  ;;  %v5174_v58 = vld [vmem:[%s12533_s9 + $0x4c8] sm:$0xff]  ;;  %v5157_v52 = vld [vmem:[%s12533_s9 + $0x440] sm:$0xff]  ;;  %v8786_v23 = vpack.c.bf16 %v5192_v17, %v5191_v43 }
 0x781   : > { %v12091_v46 = vadd.f32 %v4659_v22, %v4264_v44  ;;  %v12093_v59 = vadd.f32 %v4730_v5, %v4272_v13  ;;  %v4661_v29 = vpop.f32.mrb[39].mxu1  ;;  %v4732_v42 = vpop.f32.mrb[29].mxu0  ;;  %8769 = vmatprep.subr.bf16.mxu0 %v8768_v11  ;;  %v8748_v54 = vpack.c.bf16 %v5174_v58, %v5173_v9  ;;  %v8750_v5 = vpack.c.bf16 %v5158_v51, %v5157_v52  ;;  %v5163_v58 = vld [vmem:[%s12533_s9 + $0x470] sm:$0xff]  ;;  %v5261_v52 = vld [vmem:[%s12533_s9 + $0x780] sm:$0xff] }
 0x782   : > { %v12104_v34 = vadd.f32 %v4661_v29, %v4268_v37  ;;  %v12106_v53 = vadd.f32 %v4732_v42, %v4276_v36  ;;  %v5175_v37 = vld [vmem:[%s12533_s9 + $0x4d0] sm:$0xff]  ;;  %v5176_v36 = vld [vmem:[%s12533_s9 + $0x4d8] sm:$0xff]  ;;  %v5213_v51 = vld [vmem:[%s12533_s9 + $0x600] sm:$0xff] }
 0x783   : > { %v4901_v35 = vmul.f32 0.044715, %v12091_v46  ;;  %v4903_v49 = vmul.f32 0.044715, %v12093_v59  ;;  %8739 = vmatpush3.bf16.msra.mxu1 %v8738_v30  ;;  %v8752_v29 = vpack.c.bf16 %v5176_v36, %v5175_v37  ;;  %v5245_v37 = vld [vmem:[%s12533_s9 + $0x700] sm:$0xff]  ;;  %v5246_v36 = vld [vmem:[%s12533_s9 + $0x708] sm:$0xff] }
 0x784   : > { %v4902_v41 = vmul.f32 0.044715, %v12104_v34  ;;  %v4904_v2 = vmul.f32 0.044715, %v12106_v53  ;;  %8771 = vmatpush3.bf16.msra.mxu0 %v8770_v40  ;;  %8741 = vmatprep.subr.bf16.mxu1 %v8740_v4  ;;  %v8782_v40 = vpack.c.bf16 %v5190_v48, %v5189_v3  ;;  %v5159_v4 = vld [vmem:[%s12533_s9 + $0x450] sm:$0xff]  ;;  %v5214_v3 = vld [vmem:[%s12533_s9 + $0x608] sm:$0xff]  ;;  %v8830_v17 = vpack.c.bf16 %v5246_v36, %v5245_v37 }
 0x785   : > { %v4917_v6 = vmul.f32 %v4901_v35, %v12091_v46  ;;  %v4919_v27 = vmul.f32 %v4903_v49, %v12093_v59  ;;  %8773 = vmatprep.subr.bf16.mxu0 %v8772_v62  ;;  %v5209_v35 = vld [vmem:[%s12533_s9 + $0x5e0] sm:$0xff]  ;;  %v5210_v49 = vld [vmem:[%s12533_s9 + $0x5e8] sm:$0xff]  ;;  %v4886_v38 = vmul.f32 0.5, %v12104_v34  ;;  %v4888_v43 = vmul.f32 0.5, %v12106_v53  ;;  %v5251_v36 = vld [vmem:[%s12533_s9 + $0x730] sm:$0xff] }
 0x786   : > { %v4918_v15 = vmul.f32 %v4902_v41, %v12104_v34  ;;  %v4920_v61 = vmul.f32 %v4904_v2, %v12106_v53  ;;  %v5161_v41 = vld [vmem:[%s12533_s9 + $0x460] sm:$0xff]  ;;  %v5162_v2 = vld [vmem:[%s12533_s9 + $0x468] sm:$0xff] }
 0x787   : > { %v4933_v39 = vmul.f32 %v4917_v6, %v12091_v46  ;;  %v4935_v44 = vmul.f32 %v4919_v27, %v12093_v59  ;;  %8743 = vmatpush3.bf16.msra.mxu1 %v8742_v55  ;;  %v8754_v55 = vpack.c.bf16 %v5160_v7, %v5159_v4  ;;  %v5180_v6 = vld [vmem:[%s12533_s9 + $0x4f8] sm:$0xff]  ;;  %v5211_v27 = vld [vmem:[%s12533_s9 + $0x5f0] sm:$0xff]  ;;  %v8758_v9 = vpack.c.bf16 %v5162_v2, %v5161_v41  ;;  %v5233_v41 = vld [vmem:[%s12533_s9 + $0x6a0] sm:$0xff] }
 0x788   : > { %8775 = vmatpush3.bf16.msra.mxu0 %v8774_v24  ;;  %8745 = vmatprep.subr.bf16.mxu1 %v8744_v25  ;;  %v4934_v13 = vmul.f32 %v4918_v15, %v12104_v34  ;;  %v4936_v11 = vmul.f32 %v4920_v61, %v12106_v53  ;;  %v5193_v24 = vld [vmem:[%s12533_s9 + $0x560] sm:$0xff]  ;;  %v8788_v25 = vpack.c.bf16 %v5210_v49, %v5209_v35  ;;  %v5232_v4 = vld [vmem:[%s12533_s9 + $0x698] sm:$0xff]  ;;  %v5247_v49 = vld [vmem:[%s12533_s9 + $0x710] sm:$0xff] }
 0x789   : > { %v4949_v32 = vadd.f32 %v4933_v39, %v12091_v46  ;;  %v4951_v18 = vadd.f32 %v4935_v44, %v12093_v59  ;;  %8777 = vmatprep.subr.bf16.mxu0 %v8776_v45  ;;  %v5212_v45 = vld [vmem:[%s12533_s9 + $0x5f8] sm:$0xff]  ;;  %v8790_v15 = vpack.c.bf16 %v5194_v16, %v5193_v24  ;;  %v8760_v61 = vpack.c.bf16 %v5180_v6, %v5179_v1  ;;  %v5234_v2 = vld [vmem:[%s12533_s9 + $0x6a8] sm:$0xff] }
 0x78a   : > { %v4950_v30 = vadd.f32 %v4934_v13, %v12104_v34  ;;  %v4952_v22 = vadd.f32 %v4936_v11, %v12106_v53  ;;  %v5196_v39 = vld [vmem:[%s12533_s9 + $0x578] sm:$0xff]  ;;  %v8792_v44 = vpack.c.bf16 %v5212_v45, %v5211_v27  ;;  %v8762_v13 = vpack.c.bf16 %v5164_v20, %v5163_v58  ;;  %v5266_v16 = vld [vmem:[%s12533_s9 + $0x7a8] sm:$0xff] }
 0x78b   : > { %8747 = vmatpush3.bf16.msra.mxu1 %v8746_v50  ;;  %v4965_v33 = vmul.f32 0.7978846, %v4949_v32  ;;  %v4967_v57 = vmul.f32 0.7978846, %v4951_v18  ;;  %v5229_v50 = vld [vmem:[%s12533_s9 + $0x680] sm:$0xff]  ;;  %v8794_v32 = vpack.c.bf16 %v5196_v39, %v5195_v56  ;;  %v4280_v34 = vrot.slane %v12028_v14, %v4247_v60  ;;  %v5215_v60 = vld [vmem:[%s12533_s9 + $0x610] sm:$0xff] }
 0x78c   : > { %8779 = vmatpush3.bf16.msra.mxu0 %v8778_v47  ;;  %8749 = vmatprep.subr.bf16.mxu1 %v8748_v54  ;;  %v4966_v42 = vmul.f32 0.7978846, %v4950_v30  ;;  %v4968_v62 = vmul.f32 0.7978846, %v4952_v22  ;;  %v5230_v47 = vld [vmem:[%s12533_s9 + $0x688] sm:$0xff]  ;;  %v5216_v35 = vld [vmem:[%s12533_s9 + $0x618] sm:$0xff]  ;;  %v4284_v24 = vrot.slane %v12028_v14, %v4251_v63  ;;  %v8804_v45 = vpack.c.bf16 %v5234_v2, %v5233_v41 }
 0x78d   : > { %8781 = vmatprep.subr.bf16.mxu0 %v8780_v26  ;;  %8948 = vtanh.f32 %v4965_v33  ;;  %v5262_v54 = vld [vmem:[%s12533_s9 + $0x788] sm:$0xff]  ;;  %v8796_v26 = vpack.c.bf16 %v5230_v47, %v5229_v50  ;;  %v8802_v1 = vpack.c.bf16 %v5216_v35, %v5215_v60  ;;  %v5235_v39 = vld [vmem:[%s12533_s9 + $0x6b0] sm:$0xff] }
 0x78e   : > { %8950 = vtanh.f32 %v4966_v42  ;;  %v8828_v22 = vpack.c.bf16 %v5262_v54, %v5261_v52  ;;  %v5263_v42 = vld [vmem:[%s12533_s9 + $0x790] sm:$0xff]  ;;  %v5250_v56 = vld [vmem:[%s12533_s9 + $0x728] sm:$0xff]  ;;  %v5268_v54 = vld [vmem:[%s12533_s9 + $0x7b8] sm:$0xff] }
 0x78f   : > { %8751 = vmatpush3.bf16.msra.mxu1 %v8750_v5  ;;  %8952 = vtanh.f32 %v4968_v62  ;;  %v8798_v5 = vpack.c.bf16 %v5214_v3, %v5213_v51  ;;  %v5264_v62 = vld [vmem:[%s12533_s9 + $0x798] sm:$0xff]  ;;  %v5267_v52 = vld [vmem:[%s12533_s9 + $0x7b0] sm:$0xff] }
 0x790   : > { %8783 = vmatpush3.bf16.msra.mxu0 %v8782_v40  ;;  %8753 = vmatprep.subr.bf16.mxu1 %v8752_v29  ;;  %8954 = vtanh.f32 %v4967_v57  ;;  %v5231_v40 = vld [vmem:[%s12533_s9 + $0x690] sm:$0xff]  ;;  %v4885_v29 = vmul.f32 0.5, %v12091_v46 }
 0x791   : > { %8785 = vmatprep.subr.bf16.mxu0 %v8784_v31  ;;  %v4887_v31 = vmul.f32 0.5, %v12093_v59  ;;  %v8800_v12 = vpack.c.bf16 %v5232_v4, %v5231_v40  ;;  %v5238_v40 = vld [vmem:[%s12533_s9 + $0x6c8] sm:$0xff] }
 0x793   : > { %8755 = vmatpush3.bf16.msra.mxu1 %v8754_v55  ;;  %v4288_v55 = vrot.slane %v12028_v14, %v4255_v19  ;;  %v4292_v19 = vrot.slane %v12028_v14, %v4259_v28  ;;  %v5218_v28 = vld [vmem:[%s12533_s9 + $0x628] sm:$0xff]  ;;  %v5249_v14 = vld [vmem:[%s12533_s9 + $0x720] sm:$0xff] }
 0x794   : > { %8787 = vmatpush3.bf16.msra.mxu0 %v8786_v23  ;;  %8757 = vmatprep.subr.bf16.mxu1 %v8756_v10  ;;  %v8832_v23 = vpack.c.bf16 %v5264_v62, %v5263_v42  ;;  %v5248_v10 = vld [vmem:[%s12533_s9 + $0x718] sm:$0xff] }
 0x795   : > { %8789 = vmatprep.subr.bf16.mxu0 %v8788_v25  ;;  %v5265_v25 = vld [vmem:[%s12533_s9 + $0x7a0] sm:$0xff]  ;;  %v8834_v63 = vpack.c.bf16 %v5248_v10, %v5247_v49  ;;  %v5272_v10 = vld [vmem:[%s12533_s9 + $0x7d8] sm:$0xff] }
 0x796   : > { %v8836_v20 = vpack.c.bf16 %v5266_v16, %v5265_v25  ;;  %v5223_v25 = vld [vmem:[%s12533_s9 + $0x650] sm:$0xff]  ;;  %v5224_v16 = vld [vmem:[%s12533_s9 + $0x658] sm:$0xff] }
 0x797   : > { %v8949_v48 = vpop.eup %8948  ;;  %8759 = vmatpush3.bf16.msra.mxu1 %v8758_v9 }
 0x798   : > { %v8951_v11 = vpop.eup %8950  ;;  %8791 = vmatpush3.bf16.msra.mxu0 %v8790_v15  ;;  %8761 = vmatprep.subr.bf16.mxu1 %v8760_v61  ;;  %v4997_v18 = vadd.f32 1.0, %v8949_v48  ;;  %v8806_v48 = vpack.c.bf16 %v5218_v28, %v5217_v0 }
 0x799   : > { %v8953_v21 = vpop.eup %8952  ;;  %8793 = vmatprep.subr.bf16.mxu0 %v8792_v44  ;;  %v4998_v30 = vadd.f32 1.0, %v8951_v11  ;;  %v5236_v44 = vld [vmem:[%s12533_s9 + $0x6b8] sm:$0xff] }
 0x79a   : > { %v8955_v7 = vpop.eup %8954  ;;  %v5000_v33 = vadd.f32 1.0, %v8953_v21  ;;  %v5013_v8 = vmul.f32 %v4997_v18, %v4885_v29  ;;  %v5220_v11 = vld [vmem:[%s12533_s9 + $0x638] sm:$0xff]  ;;  %v8808_v37 = vpack.c.bf16 %v5236_v44, %v5235_v39  ;;  %v8818_v39 = vpack.c.bf16 %v5224_v16, %v5223_v25 }
 0x79b   : > { %8763 = vmatpush3.bf16.msra.mxu1 %v8762_v13  ;;  %v5014_v57 = vmul.f32 %v4998_v30, %v4886_v38  ;;  %v4999_v53 = vadd.f32 1.0, %v8955_v7  ;;  %v5219_v13 = vld [vmem:[%s12533_s9 + $0x630] sm:$0xff]  ;;  %v5252_v21 = vld [vmem:[%s12533_s9 + $0x738] sm:$0xff] }
 0x79c   : > { %8795 = vmatpush3.bf16.msra.mxu0 %v8794_v32  ;;  %v5016_v46 = vmul.f32 %v5000_v33, %v4888_v43  ;;  %8797 = vmatprep.subr.bf16.mxu1 %v8796_v26  ;;  %v8838_v26 = vpack.c.bf16 %v5250_v56, %v5249_v14  ;;  %v5269_v43 = vld [vmem:[%s12533_s9 + $0x7c0] sm:$0xff]  ;;  %v5270_v33 = vld [vmem:[%s12533_s9 + $0x7c8] sm:$0xff]  ;;  %v8810_v42 = vpack.c.bf16 %v5220_v11, %v5219_v13  ;;  %v5256_v14 = vld [vmem:[%s12533_s9 + $0x758] sm:$0xff] }
 0x79d   : > { %5628 = vmatprep.mubr.f32.mxu1 %v5014_v57  ;;  %v5015_v59 = vmul.f32 %v4999_v53, %v4887_v31  ;;  %8829 = vmatprep.subr.bf16.mxu0 %v8828_v22  ;;  %v8840_v22 = vpack.c.bf16 %v5268_v54, %v5267_v52  ;;  %v8842_v62 = vpack.c.bf16 %v5252_v21, %v5251_v36  ;;  %v5221_v57 = vld [vmem:[%s12533_s9 + $0x640] sm:$0xff]  ;;  %v5222_v53 = vld [vmem:[%s12533_s9 + $0x648] sm:$0xff]  ;;  %v5243_v11 = vld [vmem:[%s12533_s9 + $0x6f0] sm:$0xff] }
 0x79e   : > { %5698 = vmatprep.mubr.f32.mxu0 %v5016_v46  ;;  %5629 = vmatmul.mubr.f32.vlgmr.msra.gmra.mrb[46].mxu1 %v5013_v8  ;;  %v5254_v46 = vld [vmem:[%s12533_s9 + $0x748] sm:$0xff]  ;;  %v8844_v49 = vpack.c.bf16 %v5270_v33, %v5269_v43  ;;  %v5225_v54 = vld [vmem:[%s12533_s9 + $0x660] sm:$0xff] }
 0x79f   : > { %5699 = vmatmul.mubr.f32.vlgmr.msra.gmra.mrb[36].mxu0 %v5015_v59  ;;  %8799 = vmatpush3.bf16.msra.mxu1 %v8798_v5  ;;  %v5237_v5 = vld [vmem:[%s12533_s9 + $0x6c0] sm:$0xff]  ;;  %v5239_v59 = vld [vmem:[%s12533_s9 + $0x6d0] sm:$0xff]  ;;  %v5274_v56 = vld [vmem:[%s12533_s9 + $0x7e8] sm:$0xff] }
 0x7a0   : > { %8831 = vmatpush3.bf16.msra.mxu0 %v8830_v17  ;;  %v4801_v6 = vpop.f32.mrb[40].mxu1  ;;  %v4872_v27 = vpop.f32.mrb[30].mxu0  ;;  %8801 = vmatprep.subr.bf16.mxu1 %v8800_v12  ;;  %v8812_v31 = vpack.c.bf16 %v5238_v40, %v5237_v5  ;;  %v5253_v17 = vld [vmem:[%s12533_s9 + $0x740] sm:$0xff]  ;;  %v5258_v13 = vld [vmem:[%s12533_s9 + $0x768] sm:$0xff]  ;;  %v5259_v5 = vld [vmem:[%s12533_s9 + $0x770] sm:$0xff] }
 0x7a1   : > { %v12323_v9 = vadd.f32 %v4801_v6, %v4280_v34  ;;  %v12325_v58 = vadd.f32 %v4872_v27, %v4288_v55  ;;  %v4803_v15 = vpop.f32.mrb[41].mxu1  ;;  %v4874_v61 = vpop.f32.mrb[31].mxu0  ;;  %8833 = vmatprep.subr.bf16.mxu0 %v8832_v23  ;;  %v5240_v55 = vld [vmem:[%s12533_s9 + $0x6d8] sm:$0xff]  ;;  %v5271_v23 = vld [vmem:[%s12533_s9 + $0x7d0] sm:$0xff] }
 0x7a2   : > { %v12336_v50 = vadd.f32 %v4803_v15, %v4284_v24  ;;  %v12338_v47 = vadd.f32 %v4874_v61, %v4292_v19  ;;  %v8814_v24 = vpack.c.bf16 %v5222_v53, %v5221_v57  ;;  %v8846_v19 = vpack.c.bf16 %v5254_v46, %v5253_v17  ;;  %v5241_v15 = vld [vmem:[%s12533_s9 + $0x6e0] sm:$0xff]  ;;  %v5242_v61 = vld [vmem:[%s12533_s9 + $0x6e8] sm:$0xff]  ;;  %v5260_v40 = vld [vmem:[%s12533_s9 + $0x778] sm:$0xff] }
 0x7a3   : > { %v4905_v51 = vmul.f32 0.044715, %v12323_v9  ;;  %v4907_v3 = vmul.f32 0.044715, %v12325_v58  ;;  %8803 = vmatpush3.bf16.msra.mxu1 %v8802_v1  ;;  %v5255_v1 = vld [vmem:[%s12533_s9 + $0x750] sm:$0xff]  ;;  %v8816_v27 = vpack.c.bf16 %v5240_v55, %v5239_v59  ;;  %v8848_v28 = vpack.c.bf16 %v5272_v10, %v5271_v23 }
 0x7a4   : > { %v4906_v32 = vmul.f32 0.044715, %v12336_v50  ;;  %v4908_v18 = vmul.f32 0.044715, %v12338_v47  ;;  %8835 = vmatpush3.bf16.msra.mxu0 %v8834_v63  ;;  %8805 = vmatprep.subr.bf16.mxu1 %v8804_v45  ;;  %v8850_v44 = vpack.c.bf16 %v5256_v14, %v5255_v1  ;;  %v8820_v52 = vpack.c.bf16 %v5242_v61, %v5241_v15 }
 0x7a5   : > { %v4921_v38 = vmul.f32 %v4905_v51, %v12323_v9  ;;  %v4923_v30 = vmul.f32 %v4907_v3, %v12325_v58  ;;  %8837 = vmatprep.subr.bf16.mxu0 %v8836_v20  ;;  %v5273_v20 = vld [vmem:[%s12533_s9 + $0x7e0] sm:$0xff]  ;;  %v5226_v51 = vld [vmem:[%s12533_s9 + $0x668] sm:$0xff]  ;;  %v8858_v33 = vpack.c.bf16 %v5260_v40, %v5259_v5  ;;  %v4889_v17 = vmul.f32 0.5, %v12323_v9 }
 0x7a6   : > { %v4922_v4 = vmul.f32 %v4906_v32, %v12336_v50  ;;  %v4924_v7 = vmul.f32 %v4908_v18, %v12338_v47  ;;  %v5257_v3 = vld [vmem:[%s12533_s9 + $0x760] sm:$0xff]  ;;  %v5244_v32 = vld [vmem:[%s12533_s9 + $0x6f8] sm:$0xff]  ;;  %v5275_v18 = vld [vmem:[%s12533_s9 + $0x7f0] sm:$0xff] }
 0x7a7   : > { %v4937_v29 = vmul.f32 %v4921_v38, %v12323_v9  ;;  %v4939_v34 = vmul.f32 %v4923_v30, %v12325_v58  ;;  %8807 = vmatpush3.bf16.msra.mxu1 %v8806_v48  ;;  %v8852_v48 = vpack.c.bf16 %v5274_v56, %v5273_v20  ;;  %v8854_v36 = vpack.c.bf16 %v5258_v13, %v5257_v3  ;;  %v5227_v38 = vld [vmem:[%s12533_s9 + $0x670] sm:$0xff]  ;;  %v5228_v30 = vld [vmem:[%s12533_s9 + $0x678] sm:$0xff] }
 0x7a8   : > { %8839 = vmatpush3.bf16.msra.mxu0 %v8838_v26  ;;  %8809 = vmatprep.subr.bf16.mxu1 %v8808_v37  ;;  %v4938_v8 = vmul.f32 %v4922_v4, %v12336_v50  ;;  %v4940_v12 = vmul.f32 %v4924_v7, %v12338_v47  ;;  %v5276_v26 = vld [vmem:[%s12533_s9 + $0x7f8] sm:$0xff]  ;;  %v8822_v37 = vpack.c.bf16 %v5226_v51, %v5225_v54 }
 0x7a9   : > { %v4953_v60 = vadd.f32 %v4937_v29, %v12323_v9  ;;  %v4955_v35 = vadd.f32 %v4939_v34, %v12325_v58  ;;  %8841 = vmatprep.subr.bf16.mxu0 %v8840_v22  ;;  %v8824_v21 = vpack.c.bf16 %v5244_v32, %v5243_v11  ;;  %v8856_v22 = vpack.c.bf16 %v5276_v26, %v5275_v18 }
 0x7aa   : > { %v4954_v41 = vadd.f32 %v4938_v8, %v12336_v50  ;;  %v4956_v2 = vadd.f32 %v4940_v12, %v12338_v47  ;;  %v8826_v7 = vpack.c.bf16 %v5228_v30, %v5227_v38  ;;  %v4891_v8 = vmul.f32 0.5, %v12325_v58 }
 0x7ab   : > { %8811 = vmatpush3.bf16.msra.mxu1 %v8810_v42  ;;  %v4969_v6 = vmul.f32 0.7978846, %v4953_v60  ;;  %v4971_v0 = vmul.f32 0.7978846, %v4955_v35  ;;  %v4890_v42 = vmul.f32 0.5, %v12336_v50 }
 0x7ac   : > { %8843 = vmatpush3.bf16.msra.mxu0 %v8842_v62  ;;  %8813 = vmatprep.subr.bf16.mxu1 %v8812_v31  ;;  %v4970_v63 = vmul.f32 0.7978846, %v4954_v41  ;;  %v4972_v45 = vmul.f32 0.7978846, %v4956_v2  ;;  %v4892_v31 = vmul.f32 0.5, %v12338_v47 }
 0x7ad   : > { %8845 = vmatprep.subr.bf16.mxu0 %v8844_v49  ;;  %8956 = vtanh.f32 %v4969_v6  ;;  %v5971_v47 = vld [vmem:[%s12534_s10] ss:$0 sm:$0xff] }
 0x7ae   : > { %8958 = vtanh.f32 %v4970_v63 }
 0x7af   : > { %8815 = vmatpush3.bf16.msra.mxu1 %v8814_v24  ;;  %8960 = vtanh.f32 %v4972_v45 }
 0x7b0   : > { %8847 = vmatpush3.bf16.msra.mxu0 %v8846_v19  ;;  %8817 = vmatprep.subr.bf16.mxu1 %v8816_v27  ;;  %8962 = vtanh.f32 %v4971_v0 }
 0x7b1   : > { %8849 = vmatprep.subr.bf16.mxu0 %v8848_v28 }
 0x7b3   : > { %8819 = vmatpush3.bf16.msra.mxu1 %v8818_v39 }
 0x7b4   : > { %8851 = vmatpush3.bf16.msra.mxu0 %v8850_v44  ;;  %8821 = vmatprep.subr.bf16.mxu1 %v8820_v52 }
 0x7b5   : > { %8853 = vmatprep.subr.bf16.mxu0 %v8852_v48 }
 0x7b7   : > { %v8957_v4 = vpop.eup %8956  ;;  %8823 = vmatpush3.bf16.msra.mxu1 %v8822_v37 }
 0x7b8   : > { %v8959_v43 = vpop.eup %8958  ;;  %8855 = vmatpush3.bf16.msra.mxu0 %v8854_v36  ;;  %8825 = vmatprep.subr.bf16.mxu1 %v8824_v21  ;;  %v5001_v29 = vadd.f32 1.0, %v8957_v4 }
 0x7b9   : > { %v8961_v34 = vpop.eup %8960  ;;  %8857 = vmatprep.subr.bf16.mxu0 %v8856_v22  ;;  %v5002_v62 = vadd.f32 1.0, %v8959_v43 }
 0x7ba   : > { %v8963_v57 = vpop.eup %8962  ;;  %v5004_v53 = vadd.f32 1.0, %v8961_v34  ;;  %v5017_v35 = vmul.f32 %v5001_v29, %v4889_v17 }
 0x7bb   : > { %8827 = vmatpush3.bf16.msra.mxu1 %v8826_v7  ;;  %v5018_v46 = vmul.f32 %v5002_v62, %v4890_v42  ;;  %v5003_v12 = vadd.f32 1.0, %v8963_v57 }
 0x7bc   : > { %8859 = vmatpush3.bf16.msra.mxu0 %v8858_v33  ;;  %v5020_v60 = vmul.f32 %v5004_v53, %v4892_v31 }
 0x7bd   : > { %5768 = vmatprep.mubr.f32.mxu1 %v5018_v46  ;;  %v5019_v49 = vmul.f32 %v5003_v12, %v4891_v8 }
 0x7be   : > { %5838 = vmatprep.mubr.f32.mxu0 %v5020_v60  ;;  %5769 = vmatmul.mubr.f32.vlgmr.msra.gmra.mrb[48].mxu1 %v5017_v35 }
 0x7bf   : > { %5839 = vmatmul.mubr.f32.vlgmr.msra.gmra.mrb[38].mxu0 %v5019_v49 }
 0x831   : > { %v6478_v50 = vpop.f32.mrb[42].mxu1 }
 0x832   : > { %v6513_v59 = vpop.f32.mrb[32].mxu0  ;;  %v6479_v9 = vpop.f32.mrb[43].mxu1 }
 0x833   : > { %v6480_v55 = vadd.f32 %v6479_v9, %v6478_v50  ;;  %v6514_v23 = vpop.f32.mrb[33].mxu0 }
 0x834   : > { %v6515_v10 = vadd.f32 %v6514_v23, %v6513_v59 }
 0x835   : > { %v5351_v58 = vadd.f32 %v6480_v55, %v5971_v47 }
 0x837   : > { %v5421_v41 = vadd.f32 %v6515_v10, %v5351_v58 }
 0x851   : > { %v6548_v2 = vpop.f32.mrb[44].mxu1 }
 0x852   : > { %v6583_v24 = vpop.f32.mrb[34].mxu0  ;;  %v6549_v19 = vpop.f32.mrb[45].mxu1 }
 0x853   : > { %v6550_v25 = vadd.f32 %v6549_v19, %v6548_v2  ;;  %v6584_v16 = vpop.f32.mrb[35].mxu0 }
 0x854   : > { %v6585_v1 = vadd.f32 %v6584_v16, %v6583_v24 }
 0x855   : > { %v5491_v6 = vadd.f32 %v6550_v25, %v5421_v41 }
 0x857   : > { %v5561_v27 = vadd.f32 %v6585_v1, %v5491_v6 }
 0x871   : > { %v6618_v63 = vpop.f32.mrb[46].mxu1 }
 0x872   : > { %v6653_v45 = vpop.f32.mrb[36].mxu0  ;;  %v6619_v0 = vpop.f32.mrb[47].mxu1 }
 0x873   : > { %v6620_v28 = vadd.f32 %v6619_v0, %v6618_v63  ;;  %v6654_v14 = vpop.f32.mrb[37].mxu0 }
 0x874   : > { %v6655_v15 = vadd.f32 %v6654_v14, %v6653_v45 }
 0x875   : > { %v5631_v61 = vadd.f32 %v6620_v28, %v5561_v27 }
 0x877   : > { %v5701_v20 = vadd.f32 %v6655_v15, %v5631_v61 }
 0x891   : > { %v6688_v56 = vpop.f32.mrb[48].mxu1 }
 0x892   : > { %v6723_v39 = vpop.f32.mrb[38].mxu0  ;;  %v6689_v44 = vpop.f32.mrb[49].mxu1 }
 0x893   : > { %v6690_v52 = vadd.f32 %v6689_v44, %v6688_v56  ;;  %v6724_v54 = vpop.f32.mrb[39].mxu0 }
 0x894   : > { %v6725_v51 = vadd.f32 %v6724_v54, %v6723_v39 }
 0x895   : > { %v5771_v3 = vadd.f32 %v6690_v52, %v5701_v20 }
 0x897   : > { %v5841_v48 = vadd.f32 %v6725_v51, %v5771_v3 }
 0x899   : > { %5845 = vst.msk [vmem:[%s405_s22] sm:$0x3] %vm5844_vm4, %v5841_v48 }
 0x89a   : > { %9006 = shalt.err (!%p9003_p7)
}
 0x89b   : > { %s9007_s25 = scalar_lea.hbm %s12482_s26, 32  ;;  %s9011_s22 = scalar_lea.hbm %s12535_s11, 64 }
 0x89c   : > { %p9008_p8 = scmp.ne.s32.totalorder %s12482_s26, %s9007_s25  ;;  %p9012_p1 = scmp.lt.u32.totalorder %s12482_s26, %s12535_s11 }
 0x89d   : > { %p9013_p0 = scmp.lt.u32.totalorder %s9011_s22, %s9007_s25  ;;  %p9015_p6 = scmp.lt.u32.totalorder %s9007_s25, %s12482_s26 }
 0x89e   : > { %p9009_p11 = pnand %p9008_p8, %p12593_p9 }
 0x89f   : > { %p9014_p5 = por %p9013_p0, %p9012_p1 }
 0x8a0   : > { %p9010_p13 = pneg %p9009_p11 }
 0x8a1   : > { %p9016_p10 = por %p9015_p6, %p9014_p5 }
 0x8a3   : > { %p9017_p12 = pnand %p9016_p10, %p9010_p13 }
 0x8a5   : > { %9020 = shalt.err (!%p9017_p12)
}
 0x8a6   : > { %8875 = dma.vmem_to_hbm [thread:$0]  (%p12593_p9), %s12484_s4, 32, %s12482_s26, %s5847_s24  }
 0x8a7 PF: > { %p8887_p2 = scmp.ge.s32.totalorder %s9059_s20, 2  ;;  %s5872_s12 = sand.u32 1, %s9047_s17  }
 0x8a8   : > { %p12594_p3 = scmp.ne.s32.totalorder %s12564_s28, 0  ;;  %s5873_s21 = scalar_lea.sflag [#allocation4], %s5872_s12 }
 0x8aa   : > { %p8882_p4 = pnand %p8887_p2, %p12594_p3 }
 0x8ac   : > { %9042 = dma.done.wait (!%p8882_p4), %s5873_s21, 32  }
 0x8ad   : > { %9044 = vsyncadd (!%p8882_p4), %s5873_s21, 4294967264  ;;  %s12595_s13 = sld [smem:[#allocation8_spill]]  ;;  %p22_p7 = scmp.ge.s32.totalorder %s9153_s23, 4  }
 0x8ae   : > { %s12596_s17 = smov %s9051_s18  ;;  %s12597_s18 = smov %s9055_s19 }
 0x8af   : > { %s12599_s20 = smov %s9153_s23  ;;  %24 = sbr.rel (!%p22_p7) target bundleno = 6 (0x6), region = 116 }
 0x8b3   : > { %s12598_s19 = smov %s12595_s13 }
 0x8b6   :  { %5878 = vsyncpa [#allocation3], 1 }
 0x8b7   :  { %5880 = vsyncpa [#allocation3 + $0x1], 1 }
 0x8b8   :  { %5881 = vsyncpa [#allocation4], 1 }
 0x8b9   :  { %5883 = vsyncpa [#allocation4 + $0x1], 1 }

</bundles_post_ra>
